<compile_context>
chip_gen: v7x
topology: tpu7x:2x2x1
jax: 0.10.0
libtpu: 0.0.40
codegen_flags: <defaults>
</compile_context>

<pallas_src>
import functools

import jax
import jax.numpy as jnp
from jax.experimental import pallas as pl
from jax.experimental.pallas import tpu as pltpu

# Keep the pure-JAX reference matmuls in true f32 so the self-check is tight.
jax.config.update("jax_default_matmul_precision", "highest")


# ---------------------------------------------------------------------------
# Kernel
# ---------------------------------------------------------------------------
def _layernorm(h, gamma, beta, eps=1e-5):
    # One-pass stats (review item); biased variance like torch.nn.LayerNorm.
    mean = jnp.mean(h, axis=-1, keepdims=True)
    var = jnp.maximum(jnp.mean(h * h, axis=-1, keepdims=True) - mean * mean, 0.0)
    return (h - mean) * jax.lax.rsqrt(var + eps) * gamma + beta


def _deepergcn_kernel(src_ref, dst_ref, dstT_ref, x_ref, ea_ref,
                      wn_ref, bn_ref, we_ref, be_ref,
                      lng_ref, lnb_ref, t_ref,
                      w1_ref, b1_ref, mg_ref, mb_ref, w2_ref, b2_ref,
                      wo_ref, bo_ref, out_ref, *, num_layers):
    f32 = jnp.float32
    E = src_ref.shape[0]
    N = x_ref.shape[0]

    # Graph incidence one-hots built in-kernel (gather/scatter -> MXU matmuls).
    iota_en = jax.lax.broadcasted_iota(jnp.int32, (E, N), 1)
    iota_ne = jax.lax.broadcasted_iota(jnp.int32, (N, E), 0)
    S = (src_ref[...] == iota_en).astype(f32)     # (E,N): gathers h[src]
    D = (dst_ref[...] == iota_en).astype(f32)     # (E,N): broadcasts per-dst values to edges
    DT = (dstT_ref[...] == iota_ne).astype(f32)   # (N,E): segment-sum over dst

    # Node / edge encoders.
    x = jnp.dot(x_ref[...], wn_ref[...], preferred_element_type=f32) + bn_ref[...]
    e = jax.nn.sigmoid(
        jnp.dot(ea_ref[...], we_ref[...], preferred_element_type=f32) + be_ref[...])

    def genconv(h, i):
        # message: relu(h[src] + edge_attr) + eps
        msg = jnp.maximum(jnp.dot(S, h, preferred_element_type=f32) + e, 0.0) + 1e-7
        logits = msg * t_ref[i:i + 1, :]                        # learnable temperature t
        # softmax over incoming edges of each destination node; subtracting a
        # per-channel constant is exact (cancels within every dst group).
        z = jnp.exp(logits - jnp.max(logits, axis=0, keepdims=True))
        denom = jnp.dot(DT, z, preferred_element_type=f32)      # (N,H) per-dst sums
        alpha = z / jnp.dot(D, denom, preferred_element_type=f32)
        agg = jnp.dot(DT, alpha * msg, preferred_element_type=f32)
        out = agg + h                                           # GENConv residual add
        # GENConv MLP: Linear(H,2H) -> LayerNorm -> ReLU -> Linear(2H,H)
        y = jnp.dot(out, w1_ref[i], preferred_element_type=f32) + b1_ref[i:i + 1, :]
        y = jnp.maximum(_layernorm(y, mg_ref[i:i + 1, :], mb_ref[i:i + 1, :]), 0.0)
        return jnp.dot(y, w2_ref[i], preferred_element_type=f32) + b2_ref[i:i + 1, :]

    # layers[0]: conv only (matches DeeperGCN.forward).
    x = genconv(x, 0)
    # layers[1:]: 'res+'  x = x + conv(dropout(relu(norm(x))))  (dropout = eval identity)
    for i in range(1, num_layers):
        h = jnp.maximum(_layernorm(x, lng_ref[i:i + 1, :], lnb_ref[i:i + 1, :]), 0.0)
        x = x + genconv(h, i)
    # final: layers[0].act(layers[0].norm(x)), dropout (identity), lin_out
    x = jnp.maximum(_layernorm(x, lng_ref[0:1, :], lnb_ref[0:1, :]), 0.0)
    out = jnp.dot(x, wo_ref[...], preferred_element_type=f32) + bo_ref[...]
    out_ref[...] = out.astype(out_ref.dtype)


# ---------------------------------------------------------------------------
# Wrapper
# ---------------------------------------------------------------------------
def deepergcn_forward(x_node, edge_attr, edge_index, params, *, num_layers):
    """x_node: (N, n_in_node), edge_attr: (E, n_in_edge), edge_index: (2, E) int.

    Returns (N, n_out_node_props). Eval-mode forward (dropout = identity)."""
    N = x_node.shape[0]
    E = edge_attr.shape[0]
    Dout = params["w_out"].shape[1]

    src = edge_index[0].reshape(E, 1).astype(jnp.int32)
    dst = edge_index[1].reshape(E, 1).astype(jnp.int32)
    dst_row = edge_index[1].reshape(1, E).astype(jnp.int32)

    inputs = (src, dst, dst_row, x_node, edge_attr,
              params["w_node"], params["b_node"], params["w_edge"], params["b_edge"],
              params["ln_g"], params["ln_b"], params["t"],
              params["w1"], params["b1"], params["mlp_g"], params["mlp_b"],
              params["w2"], params["b2"], params["w_out"], params["b_out"])

    def full_spec(a):
        zeros = (0,) * a.ndim
        return pl.BlockSpec(a.shape, lambda i, _z=zeros: _z)

    kernel = functools.partial(_deepergcn_kernel, num_layers=num_layers)

    return pl.pallas_call(
        kernel,
        out_shape=jax.ShapeDtypeStruct((N, Dout), x_node.dtype),
        grid=(1,),
        in_specs=[full_spec(a) for a in inputs],
        out_specs=pl.BlockSpec((N, Dout), lambda i: (0, 0)),
        compiler_params=pltpu.CompilerParams(
            dimension_semantics=("arbitrary",),
            vmem_limit_bytes=32 * 1024 * 1024),
    )(*inputs)


# ---------------------------------------------------------------------------
# Pure-JAX reference (faithful to the PyTorch module math) + param init
# ---------------------------------------------------------------------------
def reference_forward(x_node, edge_attr, edge_index, params, *, num_layers):
    src = edge_index[0]
    dst = edge_index[1]
    N = x_node.shape[0]

    def ln(h, g, b, eps=1e-5):
        m = jnp.mean(h, axis=-1, keepdims=True)
        v = jnp.mean((h - m) ** 2, axis=-1, keepdims=True)
        return (h - m) / jnp.sqrt(v + eps) * g + b

    x = x_node @ params["w_node"] + params["b_node"]
    e = jax.nn.sigmoid(edge_attr @ params["w_edge"] + params["b_edge"])

    def genconv(h, i):
        msg = jnp.maximum(h[src] + e, 0.0) + 1e-7
        logits = msg * params["t"][i, 0]
        seg_max = jax.ops.segment_max(logits, dst, num_segments=N)
        z = jnp.exp(logits - seg_max[dst])
        denom = jax.ops.segment_sum(z, dst, num_segments=N)
        alpha = z / denom[dst]
        agg = jax.ops.segment_sum(alpha * msg, dst, num_segments=N)
        out = agg + h
        y = out @ params["w1"][i] + params["b1"][i]
        y = jnp.maximum(ln(y, params["mlp_g"][i], params["mlp_b"][i]), 0.0)
        return y @ params["w2"][i] + params["b2"][i]

    x = genconv(x, 0)
    for i in range(1, num_layers):
        h = jnp.maximum(ln(x, params["ln_g"][i], params["ln_b"][i]), 0.0)
        x = x + genconv(h, i)
    x = jnp.maximum(ln(x, params["ln_g"][0], params["ln_b"][0]), 0.0)
    return x @ params["w_out"] + params["b_out"]


def init_params(key, n_in_node, n_in_edge, hidden, n_out, num_layers):
    H, H2 = hidden, 2 * hidden
    ks = jax.random.split(key, 14)
    s = 0.1
    f32 = jnp.float32
    return dict(
        w_node=s * jax.random.normal(ks[0], (n_in_node, H), f32),
        b_node=s * jax.random.normal(ks[1], (1, H), f32),
        w_edge=s * jax.random.normal(ks[2], (n_in_edge, H), f32),
        b_edge=s * jax.random.normal(ks[3], (1, H), f32),
        ln_g=1.0 + s * jax.random.normal(ks[4], (num_layers, H), f32),   # DeepGCNLayer norms
        ln_b=s * jax.random.normal(ks[5], (num_layers, H), f32),
        t=jnp.ones((num_layers, 1), f32),                                # GENConv t=1.0 (learn_t)
        w1=s * jax.random.normal(ks[6], (num_layers, H, H2), f32),       # GENConv MLP Linear 1
        b1=s * jax.random.normal(ks[7], (num_layers, H2), f32),
        mlp_g=1.0 + s * jax.random.normal(ks[8], (num_layers, H2), f32), # GENConv MLP LayerNorm
        mlp_b=s * jax.random.normal(ks[9], (num_layers, H2), f32),
        w2=s * jax.random.normal(ks[10], (num_layers, H2, H), f32),      # GENConv MLP Linear 2
        b2=s * jax.random.normal(ks[11], (num_layers, H), f32),
        w_out=s * jax.random.normal(ks[12], (H, n_out), f32),            # lin_out
        b_out=s * jax.random.normal(ks[13], (1, n_out), f32),
    )


if __name__ == "__main__":
    N, E = 16, 48                      # nodes, directed edges
    n_in_node, n_in_edge = 4, 4
    hidden, n_out = 32, 8
    num_layers = 3

    key = jax.random.PRNGKey(0)
    kx, ke, kg, kp = jax.random.split(key, 4)
    x_node = jax.random.normal(kx, (N, n_in_node), jnp.float32)
    edge_attr = jax.random.normal(ke, (E, n_in_edge), jnp.float32)
    edge_index = jax.random.randint(kg, (2, E), 0, N, jnp.int32)

    params = init_params(kp, n_in_node, n_in_edge, hidden, n_out, num_layers)

    out = deepergcn_forward(x_node, edge_attr, edge_index, params,
                            num_layers=num_layers)
    out = jax.block_until_ready(out)

    ref = reference_forward(x_node, edge_attr, edge_index, params,
                            num_layers=num_layers)
    assert out.shape == (N, n_out), out.shape
    err = float(jnp.max(jnp.abs(out - ref)))
    assert jnp.allclose(out, ref, atol=2e-4, rtol=2e-4), err

    print("KERNEL_OK")
</pallas_src>

<mosaic_0001>
module attributes {stable_mosaic.version = 11 : i64} {
  func.func @_deepergcn_kernel(%arg0: i32, %arg1: memref<48x1xi32, #tpu.memory_space<vmem>>, %arg2: memref<48x1xi32, #tpu.memory_space<vmem>>, %arg3: memref<1x48xi32, #tpu.memory_space<vmem>>, %arg4: memref<16x4xf32, #tpu.memory_space<vmem>>, %arg5: memref<48x4xf32, #tpu.memory_space<vmem>>, %arg6: memref<4x32xf32, #tpu.memory_space<vmem>>, %arg7: memref<1x32xf32, #tpu.memory_space<vmem>>, %arg8: memref<4x32xf32, #tpu.memory_space<vmem>>, %arg9: memref<1x32xf32, #tpu.memory_space<vmem>>, %arg10: memref<3x32xf32, #tpu.memory_space<vmem>>, %arg11: memref<3x32xf32, #tpu.memory_space<vmem>>, %arg12: memref<3x1xf32, #tpu.memory_space<vmem>>, %arg13: memref<3x32x64xf32, #tpu.memory_space<vmem>>, %arg14: memref<3x64xf32, #tpu.memory_space<vmem>>, %arg15: memref<3x64xf32, #tpu.memory_space<vmem>>, %arg16: memref<3x64xf32, #tpu.memory_space<vmem>>, %arg17: memref<3x64x32xf32, #tpu.memory_space<vmem>>, %arg18: memref<3x32xf32, #tpu.memory_space<vmem>>, %arg19: memref<32x8xf32, #tpu.memory_space<vmem>>, %arg20: memref<1x8xf32, #tpu.memory_space<vmem>>, %arg21: memref<16x8xf32, #tpu.memory_space<vmem>>) attributes {dimension_semantics = [#tpu.dimension_semantics<arbitrary>], iteration_bounds = array<i64: 1>, scalar_prefetch = 0 : i64, scratch_operands = 0 : i64, tpu.core_type = #tpu.core_type<tc>, window_params = [{pipeline_mode = #tpu.pipeline_mode<synchronous>, transform_indices = @transform_0, window_bounds = array<i64: 48, 1>}, {pipeline_mode = #tpu.pipeline_mode<synchronous>, transform_indices = @transform_1, window_bounds = array<i64: 48, 1>}, {pipeline_mode = #tpu.pipeline_mode<synchronous>, transform_indices = @transform_2, window_bounds = array<i64: 1, 48>}, {pipeline_mode = #tpu.pipeline_mode<synchronous>, transform_indices = @transform_3, window_bounds = array<i64: 16, 4>}, {pipeline_mode = #tpu.pipeline_mode<synchronous>, transform_indices = @transform_4, window_bounds = array<i64: 48, 4>}, {pipeline_mode = #tpu.pipeline_mode<synchronous>, transform_indices = @transform_5, window_bounds = array<i64: 4, 32>}, {pipeline_mode = #tpu.pipeline_mode<synchronous>, transform_indices = @transform_6, window_bounds = array<i64: 1, 32>}, {pipeline_mode = #tpu.pipeline_mode<synchronous>, transform_indices = @transform_7, window_bounds = array<i64: 4, 32>}, {pipeline_mode = #tpu.pipeline_mode<synchronous>, transform_indices = @transform_8, window_bounds = array<i64: 1, 32>}, {pipeline_mode = #tpu.pipeline_mode<synchronous>, transform_indices = @transform_9, window_bounds = array<i64: 3, 32>}, {pipeline_mode = #tpu.pipeline_mode<synchronous>, transform_indices = @transform_10, window_bounds = array<i64: 3, 32>}, {pipeline_mode = #tpu.pipeline_mode<synchronous>, transform_indices = @transform_11, window_bounds = array<i64: 3, 1>}, {pipeline_mode = #tpu.pipeline_mode<synchronous>, transform_indices = @transform_12, window_bounds = array<i64: 3, 32, 64>}, {pipeline_mode = #tpu.pipeline_mode<synchronous>, transform_indices = @transform_13, window_bounds = array<i64: 3, 64>}, {pipeline_mode = #tpu.pipeline_mode<synchronous>, transform_indices = @transform_14, window_bounds = array<i64: 3, 64>}, {pipeline_mode = #tpu.pipeline_mode<synchronous>, transform_indices = @transform_15, window_bounds = array<i64: 3, 64>}, {pipeline_mode = #tpu.pipeline_mode<synchronous>, transform_indices = @transform_16, window_bounds = array<i64: 3, 64, 32>}, {pipeline_mode = #tpu.pipeline_mode<synchronous>, transform_indices = @transform_17, window_bounds = array<i64: 3, 32>}, {pipeline_mode = #tpu.pipeline_mode<synchronous>, transform_indices = @transform_18, window_bounds = array<i64: 32, 8>}, {pipeline_mode = #tpu.pipeline_mode<synchronous>, transform_indices = @transform_19, window_bounds = array<i64: 1, 8>}, {pipeline_mode = #tpu.pipeline_mode<synchronous>, transform_indices = @transform_20, window_bounds = array<i64: 16, 8>}]} {
    %0 = tpu.iota {dimensions = array<i32: 1>} : vector<48x16xi32>
    %1 = tpu.iota {dimensions = array<i32: 0>} : vector<16x48xi32>
    %c0 = arith.constant 0 : index
    %c0_0 = arith.constant 0 : index
    %2 = vector.load %arg1[%c0, %c0_0] : memref<48x1xi32, #tpu.memory_space<vmem>>, vector<48x1xi32>
    %3 = vector.broadcast %2 : vector<48x1xi32> to vector<48x16xi32>
    %4 = arith.cmpi eq, %3, %0 : vector<48x16xi32>
    %5 = arith.extui %4 : vector<48x16xi1> to vector<48x16xi32>
    %6 = arith.sitofp %5 : vector<48x16xi32> to vector<48x16xf32>
    %c0_1 = arith.constant 0 : index
    %c0_2 = arith.constant 0 : index
    %7 = vector.load %arg2[%c0_1, %c0_2] : memref<48x1xi32, #tpu.memory_space<vmem>>, vector<48x1xi32>
    %8 = vector.broadcast %7 : vector<48x1xi32> to vector<48x16xi32>
    %9 = arith.cmpi eq, %8, %0 : vector<48x16xi32>
    %10 = arith.extui %9 : vector<48x16xi1> to vector<48x16xi32>
    %11 = arith.sitofp %10 : vector<48x16xi32> to vector<48x16xf32>
    %c0_3 = arith.constant 0 : index
    %c0_4 = arith.constant 0 : index
    %12 = vector.load %arg3[%c0_3, %c0_4] : memref<1x48xi32, #tpu.memory_space<vmem>>, vector<1x48xi32>
    %13 = vector.broadcast %12 : vector<1x48xi32> to vector<16x48xi32>
    %14 = arith.cmpi eq, %13, %1 : vector<16x48xi32>
    %15 = arith.extui %14 : vector<16x48xi1> to vector<16x48xi32>
    %16 = arith.sitofp %15 : vector<16x48xi32> to vector<16x48xf32>
    %c0_5 = arith.constant 0 : index
    %c0_6 = arith.constant 0 : index
    %17 = vector.load %arg4[%c0_5, %c0_6] : memref<16x4xf32, #tpu.memory_space<vmem>>, vector<16x4xf32>
    %c0_7 = arith.constant 0 : index
    %c0_8 = arith.constant 0 : index
    %18 = vector.load %arg6[%c0_7, %c0_8] : memref<4x32xf32, #tpu.memory_space<vmem>>, vector<4x32xf32>
    %cst = arith.constant dense<0.000000e+00> : vector<16x32xf32>
    %19 = tpu.matmul %17, %18, %cst {dimension_numbers = #tpu.dot_dimension_numbers<[1], [0], [0], [1], [0, 0, 1, 1], [], []>, precision = #tpu.contract_precision<fp32>} : vector<16x4xf32>, vector<4x32xf32>, vector<16x32xf32> -> vector<16x32xf32>
    %c0_9 = arith.constant 0 : index
    %c0_10 = arith.constant 0 : index
    %20 = vector.load %arg7[%c0_9, %c0_10] : memref<1x32xf32, #tpu.memory_space<vmem>>, vector<1x32xf32>
    %21 = vector.broadcast %20 : vector<1x32xf32> to vector<16x32xf32>
    %22 = arith.addf %19, %21 : vector<16x32xf32>
    %c0_11 = arith.constant 0 : index
    %c0_12 = arith.constant 0 : index
    %23 = vector.load %arg5[%c0_11, %c0_12] : memref<48x4xf32, #tpu.memory_space<vmem>>, vector<48x4xf32>
    %c0_13 = arith.constant 0 : index
    %c0_14 = arith.constant 0 : index
    %24 = vector.load %arg8[%c0_13, %c0_14] : memref<4x32xf32, #tpu.memory_space<vmem>>, vector<4x32xf32>
    %cst_15 = arith.constant dense<0.000000e+00> : vector<48x32xf32>
    %25 = tpu.matmul %23, %24, %cst_15 {dimension_numbers = #tpu.dot_dimension_numbers<[1], [0], [0], [1], [0, 0, 1, 1], [], []>, precision = #tpu.contract_precision<fp32>} : vector<48x4xf32>, vector<4x32xf32>, vector<48x32xf32> -> vector<48x32xf32>
    %c0_16 = arith.constant 0 : index
    %c0_17 = arith.constant 0 : index
    %26 = vector.load %arg9[%c0_16, %c0_17] : memref<1x32xf32, #tpu.memory_space<vmem>>, vector<1x32xf32>
    %27 = vector.broadcast %26 : vector<1x32xf32> to vector<48x32xf32>
    %28 = arith.addf %25, %27 : vector<48x32xf32>
    %29 = arith.negf %28 : vector<48x32xf32>
    %30 = math.exp %29 : vector<48x32xf32>
    %cst_18 = arith.constant 1.000000e+00 : f32
    %31 = vector.broadcast %cst_18 : f32 to vector<48x32xf32>
    %32 = arith.addf %31, %30 : vector<48x32xf32>
    %33 = arith.divf %31, %32 : vector<48x32xf32>
    %cst_19 = arith.constant dense<0.000000e+00> : vector<48x32xf32>
    %34 = tpu.matmul %6, %22, %cst_19 {dimension_numbers = #tpu.dot_dimension_numbers<[1], [0], [0], [1], [0, 0, 1, 1], [], []>, precision = #tpu.contract_precision<fp32>} : vector<48x16xf32>, vector<16x32xf32>, vector<48x32xf32> -> vector<48x32xf32>
    %35 = arith.addf %34, %33 : vector<48x32xf32>
    %cst_20 = arith.constant 0.000000e+00 : f32
    %36 = vector.broadcast %cst_20 : f32 to vector<48x32xf32>
    %37 = arith.maximumf %35, %36 : vector<48x32xf32>
    %cst_21 = arith.constant 1.000000e-07 : f32
    %38 = vector.broadcast %cst_21 : f32 to vector<48x32xf32>
    %39 = arith.addf %37, %38 : vector<48x32xf32>
    %c0_22 = arith.constant 0 : index
    %c0_23 = arith.constant 0 : index
    %40 = vector.load %arg12[%c0_22, %c0_23] : memref<3x1xf32, #tpu.memory_space<vmem>>, vector<1x1xf32>
    %41 = vector.broadcast %40 : vector<1x1xf32> to vector<48x32xf32>
    %42 = arith.mulf %39, %41 : vector<48x32xf32>
    %cst_24 = arith.constant dense<0xFF800000> : vector<32xf32>
    %43 = vector.multi_reduction <maximumf>, %42, %cst_24 [0] : vector<48x32xf32> to vector<32xf32>
    %44 = vector.shape_cast %43 : vector<32xf32> to vector<1x32xf32>
    %45 = vector.broadcast %44 : vector<1x32xf32> to vector<48x32xf32>
    %46 = arith.subf %42, %45 : vector<48x32xf32>
    %47 = math.exp %46 : vector<48x32xf32>
    %cst_25 = arith.constant dense<0.000000e+00> : vector<16x32xf32>
    %48 = tpu.matmul %16, %47, %cst_25 {dimension_numbers = #tpu.dot_dimension_numbers<[1], [0], [0], [1], [0, 0, 1, 1], [], []>, precision = #tpu.contract_precision<fp32>} : vector<16x48xf32>, vector<48x32xf32>, vector<16x32xf32> -> vector<16x32xf32>
    %cst_26 = arith.constant dense<0.000000e+00> : vector<48x32xf32>
    %49 = tpu.matmul %11, %48, %cst_26 {dimension_numbers = #tpu.dot_dimension_numbers<[1], [0], [0], [1], [0, 0, 1, 1], [], []>, precision = #tpu.contract_precision<fp32>} : vector<48x16xf32>, vector<16x32xf32>, vector<48x32xf32> -> vector<48x32xf32>
    %50 = arith.divf %47, %49 : vector<48x32xf32>
    %51 = arith.mulf %50, %39 : vector<48x32xf32>
    %cst_27 = arith.constant dense<0.000000e+00> : vector<16x32xf32>
    %52 = tpu.matmul %16, %51, %cst_27 {dimension_numbers = #tpu.dot_dimension_numbers<[1], [0], [0], [1], [0, 0, 1, 1], [], []>, precision = #tpu.contract_precision<fp32>} : vector<16x48xf32>, vector<48x32xf32>, vector<16x32xf32> -> vector<16x32xf32>
    %53 = arith.addf %52, %22 : vector<16x32xf32>
    %c0_28 = arith.constant 0 : index
    %c0_29 = arith.constant 0 : index
    %c0_30 = arith.constant 0 : index
    %54 = vector.load %arg13[%c0_28, %c0_29, %c0_30] : memref<3x32x64xf32, #tpu.memory_space<vmem>>, vector<1x32x64xf32>
    %55 = vector.shape_cast %54 : vector<1x32x64xf32> to vector<32x64xf32>
    %cst_31 = arith.constant dense<0.000000e+00> : vector<16x64xf32>
    %56 = tpu.matmul %53, %55, %cst_31 {dimension_numbers = #tpu.dot_dimension_numbers<[1], [0], [0], [1], [0, 0, 1, 1], [], []>, precision = #tpu.contract_precision<fp32>} : vector<16x32xf32>, vector<32x64xf32>, vector<16x64xf32> -> vector<16x64xf32>
    %c0_32 = arith.constant 0 : index
    %c0_33 = arith.constant 0 : index
    %57 = vector.load %arg14[%c0_32, %c0_33] : memref<3x64xf32, #tpu.memory_space<vmem>>, vector<1x64xf32>
    %58 = vector.broadcast %57 : vector<1x64xf32> to vector<16x64xf32>
    %59 = arith.addf %56, %58 : vector<16x64xf32>
    %c0_34 = arith.constant 0 : index
    %c0_35 = arith.constant 0 : index
    %60 = vector.load %arg15[%c0_34, %c0_35] : memref<3x64xf32, #tpu.memory_space<vmem>>, vector<1x64xf32>
    %c0_36 = arith.constant 0 : index
    %c0_37 = arith.constant 0 : index
    %61 = vector.load %arg16[%c0_36, %c0_37] : memref<3x64xf32, #tpu.memory_space<vmem>>, vector<1x64xf32>
    %cst_38 = arith.constant dense<0.000000e+00> : vector<16xf32>
    %62 = vector.multi_reduction <add>, %59, %cst_38 [1] : vector<16x64xf32> to vector<16xf32>
    %63 = vector.shape_cast %62 : vector<16xf32> to vector<16x1xf32>
    %cst_39 = arith.constant 6.400000e+01 : f32
    %64 = vector.broadcast %cst_39 : f32 to vector<16x1xf32>
    %65 = arith.divf %63, %64 : vector<16x1xf32>
    %66 = arith.mulf %59, %59 : vector<16x64xf32>
    %cst_40 = arith.constant dense<0.000000e+00> : vector<16xf32>
    %67 = vector.multi_reduction <add>, %66, %cst_40 [1] : vector<16x64xf32> to vector<16xf32>
    %68 = vector.shape_cast %67 : vector<16xf32> to vector<16x1xf32>
    %cst_41 = arith.constant 6.400000e+01 : f32
    %69 = vector.broadcast %cst_41 : f32 to vector<16x1xf32>
    %70 = arith.divf %68, %69 : vector<16x1xf32>
    %71 = arith.mulf %65, %65 : vector<16x1xf32>
    %72 = arith.subf %70, %71 : vector<16x1xf32>
    %cst_42 = arith.constant 0.000000e+00 : f32
    %73 = vector.broadcast %cst_42 : f32 to vector<16x1xf32>
    %74 = arith.maximumf %72, %73 : vector<16x1xf32>
    %75 = vector.broadcast %65 : vector<16x1xf32> to vector<16x64xf32>
    %76 = arith.subf %59, %75 : vector<16x64xf32>
    %cst_43 = arith.constant 9.99999974E-6 : f32
    %77 = vector.broadcast %cst_43 : f32 to vector<16x1xf32>
    %78 = arith.addf %74, %77 : vector<16x1xf32>
    %79 = math.rsqrt %78 : vector<16x1xf32>
    %80 = vector.broadcast %79 : vector<16x1xf32> to vector<16x64xf32>
    %81 = arith.mulf %76, %80 : vector<16x64xf32>
    %82 = vector.broadcast %60 : vector<1x64xf32> to vector<16x64xf32>
    %83 = arith.mulf %81, %82 : vector<16x64xf32>
    %84 = vector.broadcast %61 : vector<1x64xf32> to vector<16x64xf32>
    %85 = arith.addf %83, %84 : vector<16x64xf32>
    %cst_44 = arith.constant 0.000000e+00 : f32
    %86 = vector.broadcast %cst_44 : f32 to vector<16x64xf32>
    %87 = arith.maximumf %85, %86 : vector<16x64xf32>
    %c0_45 = arith.constant 0 : index
    %c0_46 = arith.constant 0 : index
    %c0_47 = arith.constant 0 : index
    %88 = vector.load %arg17[%c0_45, %c0_46, %c0_47] : memref<3x64x32xf32, #tpu.memory_space<vmem>>, vector<1x64x32xf32>
    %89 = vector.shape_cast %88 : vector<1x64x32xf32> to vector<64x32xf32>
    %cst_48 = arith.constant dense<0.000000e+00> : vector<16x32xf32>
    %90 = tpu.matmul %87, %89, %cst_48 {dimension_numbers = #tpu.dot_dimension_numbers<[1], [0], [0], [1], [0, 0, 1, 1], [], []>, precision = #tpu.contract_precision<fp32>} : vector<16x64xf32>, vector<64x32xf32>, vector<16x32xf32> -> vector<16x32xf32>
    %c0_49 = arith.constant 0 : index
    %c0_50 = arith.constant 0 : index
    %91 = vector.load %arg18[%c0_49, %c0_50] : memref<3x32xf32, #tpu.memory_space<vmem>>, vector<1x32xf32>
    %92 = vector.broadcast %91 : vector<1x32xf32> to vector<16x32xf32>
    %93 = arith.addf %90, %92 : vector<16x32xf32>
    %c1 = arith.constant 1 : index
    %c0_51 = arith.constant 0 : index
    %94 = vector.load %arg10[%c1, %c0_51] : memref<3x32xf32, #tpu.memory_space<vmem>>, vector<1x32xf32>
    %c1_52 = arith.constant 1 : index
    %c0_53 = arith.constant 0 : index
    %95 = vector.load %arg11[%c1_52, %c0_53] : memref<3x32xf32, #tpu.memory_space<vmem>>, vector<1x32xf32>
    %cst_54 = arith.constant dense<0.000000e+00> : vector<16xf32>
    %96 = vector.multi_reduction <add>, %93, %cst_54 [1] : vector<16x32xf32> to vector<16xf32>
    %97 = vector.shape_cast %96 : vector<16xf32> to vector<16x1xf32>
    %cst_55 = arith.constant 3.200000e+01 : f32
    %98 = vector.broadcast %cst_55 : f32 to vector<16x1xf32>
    %99 = arith.divf %97, %98 : vector<16x1xf32>
    %100 = arith.mulf %93, %93 : vector<16x32xf32>
    %cst_56 = arith.constant dense<0.000000e+00> : vector<16xf32>
    %101 = vector.multi_reduction <add>, %100, %cst_56 [1] : vector<16x32xf32> to vector<16xf32>
    %102 = vector.shape_cast %101 : vector<16xf32> to vector<16x1xf32>
    %cst_57 = arith.constant 3.200000e+01 : f32
    %103 = vector.broadcast %cst_57 : f32 to vector<16x1xf32>
    %104 = arith.divf %102, %103 : vector<16x1xf32>
    %105 = arith.mulf %99, %99 : vector<16x1xf32>
    %106 = arith.subf %104, %105 : vector<16x1xf32>
    %cst_58 = arith.constant 0.000000e+00 : f32
    %107 = vector.broadcast %cst_58 : f32 to vector<16x1xf32>
    %108 = arith.maximumf %106, %107 : vector<16x1xf32>
    %109 = vector.broadcast %99 : vector<16x1xf32> to vector<16x32xf32>
    %110 = arith.subf %93, %109 : vector<16x32xf32>
    %cst_59 = arith.constant 9.99999974E-6 : f32
    %111 = vector.broadcast %cst_59 : f32 to vector<16x1xf32>
    %112 = arith.addf %108, %111 : vector<16x1xf32>
    %113 = math.rsqrt %112 : vector<16x1xf32>
    %114 = vector.broadcast %113 : vector<16x1xf32> to vector<16x32xf32>
    %115 = arith.mulf %110, %114 : vector<16x32xf32>
    %116 = vector.broadcast %94 : vector<1x32xf32> to vector<16x32xf32>
    %117 = arith.mulf %115, %116 : vector<16x32xf32>
    %118 = vector.broadcast %95 : vector<1x32xf32> to vector<16x32xf32>
    %119 = arith.addf %117, %118 : vector<16x32xf32>
    %cst_60 = arith.constant 0.000000e+00 : f32
    %120 = vector.broadcast %cst_60 : f32 to vector<16x32xf32>
    %121 = arith.maximumf %119, %120 : vector<16x32xf32>
    %cst_61 = arith.constant dense<0.000000e+00> : vector<48x32xf32>
    %122 = tpu.matmul %6, %121, %cst_61 {dimension_numbers = #tpu.dot_dimension_numbers<[1], [0], [0], [1], [0, 0, 1, 1], [], []>, precision = #tpu.contract_precision<fp32>} : vector<48x16xf32>, vector<16x32xf32>, vector<48x32xf32> -> vector<48x32xf32>
    %123 = arith.addf %122, %33 : vector<48x32xf32>
    %cst_62 = arith.constant 0.000000e+00 : f32
    %124 = vector.broadcast %cst_62 : f32 to vector<48x32xf32>
    %125 = arith.maximumf %123, %124 : vector<48x32xf32>
    %cst_63 = arith.constant 1.000000e-07 : f32
    %126 = vector.broadcast %cst_63 : f32 to vector<48x32xf32>
    %127 = arith.addf %125, %126 : vector<48x32xf32>
    %c1_64 = arith.constant 1 : index
    %c0_65 = arith.constant 0 : index
    %128 = vector.load %arg12[%c1_64, %c0_65] : memref<3x1xf32, #tpu.memory_space<vmem>>, vector<1x1xf32>
    %129 = vector.broadcast %128 : vector<1x1xf32> to vector<48x32xf32>
    %130 = arith.mulf %127, %129 : vector<48x32xf32>
    %cst_66 = arith.constant dense<0xFF800000> : vector<32xf32>
    %131 = vector.multi_reduction <maximumf>, %130, %cst_66 [0] : vector<48x32xf32> to vector<32xf32>
    %132 = vector.shape_cast %131 : vector<32xf32> to vector<1x32xf32>
    %133 = vector.broadcast %132 : vector<1x32xf32> to vector<48x32xf32>
    %134 = arith.subf %130, %133 : vector<48x32xf32>
    %135 = math.exp %134 : vector<48x32xf32>
    %cst_67 = arith.constant dense<0.000000e+00> : vector<16x32xf32>
    %136 = tpu.matmul %16, %135, %cst_67 {dimension_numbers = #tpu.dot_dimension_numbers<[1], [0], [0], [1], [0, 0, 1, 1], [], []>, precision = #tpu.contract_precision<fp32>} : vector<16x48xf32>, vector<48x32xf32>, vector<16x32xf32> -> vector<16x32xf32>
    %cst_68 = arith.constant dense<0.000000e+00> : vector<48x32xf32>
    %137 = tpu.matmul %11, %136, %cst_68 {dimension_numbers = #tpu.dot_dimension_numbers<[1], [0], [0], [1], [0, 0, 1, 1], [], []>, precision = #tpu.contract_precision<fp32>} : vector<48x16xf32>, vector<16x32xf32>, vector<48x32xf32> -> vector<48x32xf32>
    %138 = arith.divf %135, %137 : vector<48x32xf32>
    %139 = arith.mulf %138, %127 : vector<48x32xf32>
    %cst_69 = arith.constant dense<0.000000e+00> : vector<16x32xf32>
    %140 = tpu.matmul %16, %139, %cst_69 {dimension_numbers = #tpu.dot_dimension_numbers<[1], [0], [0], [1], [0, 0, 1, 1], [], []>, precision = #tpu.contract_precision<fp32>} : vector<16x48xf32>, vector<48x32xf32>, vector<16x32xf32> -> vector<16x32xf32>
    %141 = arith.addf %140, %121 : vector<16x32xf32>
    %c1_70 = arith.constant 1 : index
    %c0_71 = arith.constant 0 : index
    %c0_72 = arith.constant 0 : index
    %142 = vector.load %arg13[%c1_70, %c0_71, %c0_72] : memref<3x32x64xf32, #tpu.memory_space<vmem>>, vector<1x32x64xf32>
    %143 = vector.shape_cast %142 : vector<1x32x64xf32> to vector<32x64xf32>
    %cst_73 = arith.constant dense<0.000000e+00> : vector<16x64xf32>
    %144 = tpu.matmul %141, %143, %cst_73 {dimension_numbers = #tpu.dot_dimension_numbers<[1], [0], [0], [1], [0, 0, 1, 1], [], []>, precision = #tpu.contract_precision<fp32>} : vector<16x32xf32>, vector<32x64xf32>, vector<16x64xf32> -> vector<16x64xf32>
    %c1_74 = arith.constant 1 : index
    %c0_75 = arith.constant 0 : index
    %145 = vector.load %arg14[%c1_74, %c0_75] : memref<3x64xf32, #tpu.memory_space<vmem>>, vector<1x64xf32>
    %146 = vector.broadcast %145 : vector<1x64xf32> to vector<16x64xf32>
    %147 = arith.addf %144, %146 : vector<16x64xf32>
    %c1_76 = arith.constant 1 : index
    %c0_77 = arith.constant 0 : index
    %148 = vector.load %arg15[%c1_76, %c0_77] : memref<3x64xf32, #tpu.memory_space<vmem>>, vector<1x64xf32>
    %c1_78 = arith.constant 1 : index
    %c0_79 = arith.constant 0 : index
    %149 = vector.load %arg16[%c1_78, %c0_79] : memref<3x64xf32, #tpu.memory_space<vmem>>, vector<1x64xf32>
    %cst_80 = arith.constant dense<0.000000e+00> : vector<16xf32>
    %150 = vector.multi_reduction <add>, %147, %cst_80 [1] : vector<16x64xf32> to vector<16xf32>
    %151 = vector.shape_cast %150 : vector<16xf32> to vector<16x1xf32>
    %cst_81 = arith.constant 6.400000e+01 : f32
    %152 = vector.broadcast %cst_81 : f32 to vector<16x1xf32>
    %153 = arith.divf %151, %152 : vector<16x1xf32>
    %154 = arith.mulf %147, %147 : vector<16x64xf32>
    %cst_82 = arith.constant dense<0.000000e+00> : vector<16xf32>
    %155 = vector.multi_reduction <add>, %154, %cst_82 [1] : vector<16x64xf32> to vector<16xf32>
    %156 = vector.shape_cast %155 : vector<16xf32> to vector<16x1xf32>
    %cst_83 = arith.constant 6.400000e+01 : f32
    %157 = vector.broadcast %cst_83 : f32 to vector<16x1xf32>
    %158 = arith.divf %156, %157 : vector<16x1xf32>
    %159 = arith.mulf %153, %153 : vector<16x1xf32>
    %160 = arith.subf %158, %159 : vector<16x1xf32>
    %cst_84 = arith.constant 0.000000e+00 : f32
    %161 = vector.broadcast %cst_84 : f32 to vector<16x1xf32>
    %162 = arith.maximumf %160, %161 : vector<16x1xf32>
    %163 = vector.broadcast %153 : vector<16x1xf32> to vector<16x64xf32>
    %164 = arith.subf %147, %163 : vector<16x64xf32>
    %cst_85 = arith.constant 9.99999974E-6 : f32
    %165 = vector.broadcast %cst_85 : f32 to vector<16x1xf32>
    %166 = arith.addf %162, %165 : vector<16x1xf32>
    %167 = math.rsqrt %166 : vector<16x1xf32>
    %168 = vector.broadcast %167 : vector<16x1xf32> to vector<16x64xf32>
    %169 = arith.mulf %164, %168 : vector<16x64xf32>
    %170 = vector.broadcast %148 : vector<1x64xf32> to vector<16x64xf32>
    %171 = arith.mulf %169, %170 : vector<16x64xf32>
    %172 = vector.broadcast %149 : vector<1x64xf32> to vector<16x64xf32>
    %173 = arith.addf %171, %172 : vector<16x64xf32>
    %cst_86 = arith.constant 0.000000e+00 : f32
    %174 = vector.broadcast %cst_86 : f32 to vector<16x64xf32>
    %175 = arith.maximumf %173, %174 : vector<16x64xf32>
    %c1_87 = arith.constant 1 : index
    %c0_88 = arith.constant 0 : index
    %c0_89 = arith.constant 0 : index
    %176 = vector.load %arg17[%c1_87, %c0_88, %c0_89] : memref<3x64x32xf32, #tpu.memory_space<vmem>>, vector<1x64x32xf32>
    %177 = vector.shape_cast %176 : vector<1x64x32xf32> to vector<64x32xf32>
    %cst_90 = arith.constant dense<0.000000e+00> : vector<16x32xf32>
    %178 = tpu.matmul %175, %177, %cst_90 {dimension_numbers = #tpu.dot_dimension_numbers<[1], [0], [0], [1], [0, 0, 1, 1], [], []>, precision = #tpu.contract_precision<fp32>} : vector<16x64xf32>, vector<64x32xf32>, vector<16x32xf32> -> vector<16x32xf32>
    %c1_91 = arith.constant 1 : index
    %c0_92 = arith.constant 0 : index
    %179 = vector.load %arg18[%c1_91, %c0_92] : memref<3x32xf32, #tpu.memory_space<vmem>>, vector<1x32xf32>
    %180 = vector.broadcast %179 : vector<1x32xf32> to vector<16x32xf32>
    %181 = arith.addf %178, %180 : vector<16x32xf32>
    %182 = arith.addf %93, %181 : vector<16x32xf32>
    %c2 = arith.constant 2 : index
    %c0_93 = arith.constant 0 : index
    %183 = vector.load %arg10[%c2, %c0_93] : memref<3x32xf32, #tpu.memory_space<vmem>>, vector<1x32xf32>
    %c2_94 = arith.constant 2 : index
    %c0_95 = arith.constant 0 : index
    %184 = vector.load %arg11[%c2_94, %c0_95] : memref<3x32xf32, #tpu.memory_space<vmem>>, vector<1x32xf32>
    %cst_96 = arith.constant dense<0.000000e+00> : vector<16xf32>
    %185 = vector.multi_reduction <add>, %182, %cst_96 [1] : vector<16x32xf32> to vector<16xf32>
    %186 = vector.shape_cast %185 : vector<16xf32> to vector<16x1xf32>
    %cst_97 = arith.constant 3.200000e+01 : f32
    %187 = vector.broadcast %cst_97 : f32 to vector<16x1xf32>
    %188 = arith.divf %186, %187 : vector<16x1xf32>
    %189 = arith.mulf %182, %182 : vector<16x32xf32>
    %cst_98 = arith.constant dense<0.000000e+00> : vector<16xf32>
    %190 = vector.multi_reduction <add>, %189, %cst_98 [1] : vector<16x32xf32> to vector<16xf32>
    %191 = vector.shape_cast %190 : vector<16xf32> to vector<16x1xf32>
    %cst_99 = arith.constant 3.200000e+01 : f32
    %192 = vector.broadcast %cst_99 : f32 to vector<16x1xf32>
    %193 = arith.divf %191, %192 : vector<16x1xf32>
    %194 = arith.mulf %188, %188 : vector<16x1xf32>
    %195 = arith.subf %193, %194 : vector<16x1xf32>
    %cst_100 = arith.constant 0.000000e+00 : f32
    %196 = vector.broadcast %cst_100 : f32 to vector<16x1xf32>
    %197 = arith.maximumf %195, %196 : vector<16x1xf32>
    %198 = vector.broadcast %188 : vector<16x1xf32> to vector<16x32xf32>
    %199 = arith.subf %182, %198 : vector<16x32xf32>
    %cst_101 = arith.constant 9.99999974E-6 : f32
    %200 = vector.broadcast %cst_101 : f32 to vector<16x1xf32>
    %201 = arith.addf %197, %200 : vector<16x1xf32>
    %202 = math.rsqrt %201 : vector<16x1xf32>
    %203 = vector.broadcast %202 : vector<16x1xf32> to vector<16x32xf32>
    %204 = arith.mulf %199, %203 : vector<16x32xf32>
    %205 = vector.broadcast %183 : vector<1x32xf32> to vector<16x32xf32>
    %206 = arith.mulf %204, %205 : vector<16x32xf32>
    %207 = vector.broadcast %184 : vector<1x32xf32> to vector<16x32xf32>
    %208 = arith.addf %206, %207 : vector<16x32xf32>
    %cst_102 = arith.constant 0.000000e+00 : f32
    %209 = vector.broadcast %cst_102 : f32 to vector<16x32xf32>
    %210 = arith.maximumf %208, %209 : vector<16x32xf32>
    %cst_103 = arith.constant dense<0.000000e+00> : vector<48x32xf32>
    %211 = tpu.matmul %6, %210, %cst_103 {dimension_numbers = #tpu.dot_dimension_numbers<[1], [0], [0], [1], [0, 0, 1, 1], [], []>, precision = #tpu.contract_precision<fp32>} : vector<48x16xf32>, vector<16x32xf32>, vector<48x32xf32> -> vector<48x32xf32>
    %212 = arith.addf %211, %33 : vector<48x32xf32>
    %cst_104 = arith.constant 0.000000e+00 : f32
    %213 = vector.broadcast %cst_104 : f32 to vector<48x32xf32>
    %214 = arith.maximumf %212, %213 : vector<48x32xf32>
    %cst_105 = arith.constant 1.000000e-07 : f32
    %215 = vector.broadcast %cst_105 : f32 to vector<48x32xf32>
    %216 = arith.addf %214, %215 : vector<48x32xf32>
    %c2_106 = arith.constant 2 : index
    %c0_107 = arith.constant 0 : index
    %217 = vector.load %arg12[%c2_106, %c0_107] : memref<3x1xf32, #tpu.memory_space<vmem>>, vector<1x1xf32>
    %218 = vector.broadcast %217 : vector<1x1xf32> to vector<48x32xf32>
    %219 = arith.mulf %216, %218 : vector<48x32xf32>
    %cst_108 = arith.constant dense<0xFF800000> : vector<32xf32>
    %220 = vector.multi_reduction <maximumf>, %219, %cst_108 [0] : vector<48x32xf32> to vector<32xf32>
    %221 = vector.shape_cast %220 : vector<32xf32> to vector<1x32xf32>
    %222 = vector.broadcast %221 : vector<1x32xf32> to vector<48x32xf32>
    %223 = arith.subf %219, %222 : vector<48x32xf32>
    %224 = math.exp %223 : vector<48x32xf32>
    %cst_109 = arith.constant dense<0.000000e+00> : vector<16x32xf32>
    %225 = tpu.matmul %16, %224, %cst_109 {dimension_numbers = #tpu.dot_dimension_numbers<[1], [0], [0], [1], [0, 0, 1, 1], [], []>, precision = #tpu.contract_precision<fp32>} : vector<16x48xf32>, vector<48x32xf32>, vector<16x32xf32> -> vector<16x32xf32>
    %cst_110 = arith.constant dense<0.000000e+00> : vector<48x32xf32>
    %226 = tpu.matmul %11, %225, %cst_110 {dimension_numbers = #tpu.dot_dimension_numbers<[1], [0], [0], [1], [0, 0, 1, 1], [], []>, precision = #tpu.contract_precision<fp32>} : vector<48x16xf32>, vector<16x32xf32>, vector<48x32xf32> -> vector<48x32xf32>
    %227 = arith.divf %224, %226 : vector<48x32xf32>
    %228 = arith.mulf %227, %216 : vector<48x32xf32>
    %cst_111 = arith.constant dense<0.000000e+00> : vector<16x32xf32>
    %229 = tpu.matmul %16, %228, %cst_111 {dimension_numbers = #tpu.dot_dimension_numbers<[1], [0], [0], [1], [0, 0, 1, 1], [], []>, precision = #tpu.contract_precision<fp32>} : vector<16x48xf32>, vector<48x32xf32>, vector<16x32xf32> -> vector<16x32xf32>
    %230 = arith.addf %229, %210 : vector<16x32xf32>
    %c2_112 = arith.constant 2 : index
    %c0_113 = arith.constant 0 : index
    %c0_114 = arith.constant 0 : index
    %231 = vector.load %arg13[%c2_112, %c0_113, %c0_114] : memref<3x32x64xf32, #tpu.memory_space<vmem>>, vector<1x32x64xf32>
    %232 = vector.shape_cast %231 : vector<1x32x64xf32> to vector<32x64xf32>
    %cst_115 = arith.constant dense<0.000000e+00> : vector<16x64xf32>
    %233 = tpu.matmul %230, %232, %cst_115 {dimension_numbers = #tpu.dot_dimension_numbers<[1], [0], [0], [1], [0, 0, 1, 1], [], []>, precision = #tpu.contract_precision<fp32>} : vector<16x32xf32>, vector<32x64xf32>, vector<16x64xf32> -> vector<16x64xf32>
    %c2_116 = arith.constant 2 : index
    %c0_117 = arith.constant 0 : index
    %234 = vector.load %arg14[%c2_116, %c0_117] : memref<3x64xf32, #tpu.memory_space<vmem>>, vector<1x64xf32>
    %235 = vector.broadcast %234 : vector<1x64xf32> to vector<16x64xf32>
    %236 = arith.addf %233, %235 : vector<16x64xf32>
    %c2_118 = arith.constant 2 : index
    %c0_119 = arith.constant 0 : index
    %237 = vector.load %arg15[%c2_118, %c0_119] : memref<3x64xf32, #tpu.memory_space<vmem>>, vector<1x64xf32>
    %c2_120 = arith.constant 2 : index
    %c0_121 = arith.constant 0 : index
    %238 = vector.load %arg16[%c2_120, %c0_121] : memref<3x64xf32, #tpu.memory_space<vmem>>, vector<1x64xf32>
    %cst_122 = arith.constant dense<0.000000e+00> : vector<16xf32>
    %239 = vector.multi_reduction <add>, %236, %cst_122 [1] : vector<16x64xf32> to vector<16xf32>
    %240 = vector.shape_cast %239 : vector<16xf32> to vector<16x1xf32>
    %cst_123 = arith.constant 6.400000e+01 : f32
    %241 = vector.broadcast %cst_123 : f32 to vector<16x1xf32>
    %242 = arith.divf %240, %241 : vector<16x1xf32>
    %243 = arith.mulf %236, %236 : vector<16x64xf32>
    %cst_124 = arith.constant dense<0.000000e+00> : vector<16xf32>
    %244 = vector.multi_reduction <add>, %243, %cst_124 [1] : vector<16x64xf32> to vector<16xf32>
    %245 = vector.shape_cast %244 : vector<16xf32> to vector<16x1xf32>
    %cst_125 = arith.constant 6.400000e+01 : f32
    %246 = vector.broadcast %cst_125 : f32 to vector<16x1xf32>
    %247 = arith.divf %245, %246 : vector<16x1xf32>
    %248 = arith.mulf %242, %242 : vector<16x1xf32>
    %249 = arith.subf %247, %248 : vector<16x1xf32>
    %cst_126 = arith.constant 0.000000e+00 : f32
    %250 = vector.broadcast %cst_126 : f32 to vector<16x1xf32>
    %251 = arith.maximumf %249, %250 : vector<16x1xf32>
    %252 = vector.broadcast %242 : vector<16x1xf32> to vector<16x64xf32>
    %253 = arith.subf %236, %252 : vector<16x64xf32>
    %cst_127 = arith.constant 9.99999974E-6 : f32
    %254 = vector.broadcast %cst_127 : f32 to vector<16x1xf32>
    %255 = arith.addf %251, %254 : vector<16x1xf32>
    %256 = math.rsqrt %255 : vector<16x1xf32>
    %257 = vector.broadcast %256 : vector<16x1xf32> to vector<16x64xf32>
    %258 = arith.mulf %253, %257 : vector<16x64xf32>
    %259 = vector.broadcast %237 : vector<1x64xf32> to vector<16x64xf32>
    %260 = arith.mulf %258, %259 : vector<16x64xf32>
    %261 = vector.broadcast %238 : vector<1x64xf32> to vector<16x64xf32>
    %262 = arith.addf %260, %261 : vector<16x64xf32>
    %cst_128 = arith.constant 0.000000e+00 : f32
    %263 = vector.broadcast %cst_128 : f32 to vector<16x64xf32>
    %264 = arith.maximumf %262, %263 : vector<16x64xf32>
    %c2_129 = arith.constant 2 : index
    %c0_130 = arith.constant 0 : index
    %c0_131 = arith.constant 0 : index
    %265 = vector.load %arg17[%c2_129, %c0_130, %c0_131] : memref<3x64x32xf32, #tpu.memory_space<vmem>>, vector<1x64x32xf32>
    %266 = vector.shape_cast %265 : vector<1x64x32xf32> to vector<64x32xf32>
    %cst_132 = arith.constant dense<0.000000e+00> : vector<16x32xf32>
    %267 = tpu.matmul %264, %266, %cst_132 {dimension_numbers = #tpu.dot_dimension_numbers<[1], [0], [0], [1], [0, 0, 1, 1], [], []>, precision = #tpu.contract_precision<fp32>} : vector<16x64xf32>, vector<64x32xf32>, vector<16x32xf32> -> vector<16x32xf32>
    %c2_133 = arith.constant 2 : index
    %c0_134 = arith.constant 0 : index
    %268 = vector.load %arg18[%c2_133, %c0_134] : memref<3x32xf32, #tpu.memory_space<vmem>>, vector<1x32xf32>
    %269 = vector.broadcast %268 : vector<1x32xf32> to vector<16x32xf32>
    %270 = arith.addf %267, %269 : vector<16x32xf32>
    %271 = arith.addf %182, %270 : vector<16x32xf32>
    %c0_135 = arith.constant 0 : index
    %c0_136 = arith.constant 0 : index
    %272 = vector.load %arg10[%c0_135, %c0_136] : memref<3x32xf32, #tpu.memory_space<vmem>>, vector<1x32xf32>
    %c0_137 = arith.constant 0 : index
    %c0_138 = arith.constant 0 : index
    %273 = vector.load %arg11[%c0_137, %c0_138] : memref<3x32xf32, #tpu.memory_space<vmem>>, vector<1x32xf32>
    %cst_139 = arith.constant dense<0.000000e+00> : vector<16xf32>
    %274 = vector.multi_reduction <add>, %271, %cst_139 [1] : vector<16x32xf32> to vector<16xf32>
    %275 = vector.shape_cast %274 : vector<16xf32> to vector<16x1xf32>
    %cst_140 = arith.constant 3.200000e+01 : f32
    %276 = vector.broadcast %cst_140 : f32 to vector<16x1xf32>
    %277 = arith.divf %275, %276 : vector<16x1xf32>
    %278 = arith.mulf %271, %271 : vector<16x32xf32>
    %cst_141 = arith.constant dense<0.000000e+00> : vector<16xf32>
    %279 = vector.multi_reduction <add>, %278, %cst_141 [1] : vector<16x32xf32> to vector<16xf32>
    %280 = vector.shape_cast %279 : vector<16xf32> to vector<16x1xf32>
    %cst_142 = arith.constant 3.200000e+01 : f32
    %281 = vector.broadcast %cst_142 : f32 to vector<16x1xf32>
    %282 = arith.divf %280, %281 : vector<16x1xf32>
    %283 = arith.mulf %277, %277 : vector<16x1xf32>
    %284 = arith.subf %282, %283 : vector<16x1xf32>
    %cst_143 = arith.constant 0.000000e+00 : f32
    %285 = vector.broadcast %cst_143 : f32 to vector<16x1xf32>
    %286 = arith.maximumf %284, %285 : vector<16x1xf32>
    %287 = vector.broadcast %277 : vector<16x1xf32> to vector<16x32xf32>
    %288 = arith.subf %271, %287 : vector<16x32xf32>
    %cst_144 = arith.constant 9.99999974E-6 : f32
    %289 = vector.broadcast %cst_144 : f32 to vector<16x1xf32>
    %290 = arith.addf %286, %289 : vector<16x1xf32>
    %291 = math.rsqrt %290 : vector<16x1xf32>
    %292 = vector.broadcast %291 : vector<16x1xf32> to vector<16x32xf32>
    %293 = arith.mulf %288, %292 : vector<16x32xf32>
    %294 = vector.broadcast %272 : vector<1x32xf32> to vector<16x32xf32>
    %295 = arith.mulf %293, %294 : vector<16x32xf32>
    %296 = vector.broadcast %273 : vector<1x32xf32> to vector<16x32xf32>
    %297 = arith.addf %295, %296 : vector<16x32xf32>
    %cst_145 = arith.constant 0.000000e+00 : f32
    %298 = vector.broadcast %cst_145 : f32 to vector<16x32xf32>
    %299 = arith.maximumf %297, %298 : vector<16x32xf32>
    %c0_146 = arith.constant 0 : index
    %c0_147 = arith.constant 0 : index
    %300 = vector.load %arg19[%c0_146, %c0_147] : memref<32x8xf32, #tpu.memory_space<vmem>>, vector<32x8xf32>
    %cst_148 = arith.constant dense<0.000000e+00> : vector<16x8xf32>
    %301 = tpu.matmul %299, %300, %cst_148 {dimension_numbers = #tpu.dot_dimension_numbers<[1], [0], [0], [1], [0, 0, 1, 1], [], []>, precision = #tpu.contract_precision<fp32>} : vector<16x32xf32>, vector<32x8xf32>, vector<16x8xf32> -> vector<16x8xf32>
    %c0_149 = arith.constant 0 : index
    %c0_150 = arith.constant 0 : index
    %302 = vector.load %arg20[%c0_149, %c0_150] : memref<1x8xf32, #tpu.memory_space<vmem>>, vector<1x8xf32>
    %303 = vector.broadcast %302 : vector<1x8xf32> to vector<16x8xf32>
    %304 = arith.addf %301, %303 : vector<16x8xf32>
    %c0_151 = arith.constant 0 : index
    %c0_152 = arith.constant 0 : index
    %305 = vector.load %arg21[%c0_151, %c0_152] : memref<16x8xf32, #tpu.memory_space<vmem>>, vector<16x8xf32>
    tpu.vector_store %arg21[%c0_151, %c0_152], %304 {strides = array<i32>} : memref<16x8xf32, #tpu.memory_space<vmem>>, vector<16x8xf32>,
    return
  }
  func.func @transform_0(%arg0: i32) -> (i32, i32) {
    %c0_i32 = arith.constant 0 : i32
    %c0_i32_0 = arith.constant 0 : i32
    %c0_i32_1 = arith.constant 0 : i32
    return %c0_i32, %c0_i32_0 : i32, i32
  }
  func.func @transform_1(%arg0: i32) -> (i32, i32) {
    %c0_i32 = arith.constant 0 : i32
    %c0_i32_0 = arith.constant 0 : i32
    %c0_i32_1 = arith.constant 0 : i32
    return %c0_i32, %c0_i32_0 : i32, i32
  }
  func.func @transform_2(%arg0: i32) -> (i32, i32) {
    %c0_i32 = arith.constant 0 : i32
    %c0_i32_0 = arith.constant 0 : i32
    %c0_i32_1 = arith.constant 0 : i32
    return %c0_i32, %c0_i32_0 : i32, i32
  }
  func.func @transform_3(%arg0: i32) -> (i32, i32) {
    %c0_i32 = arith.constant 0 : i32
    %c0_i32_0 = arith.constant 0 : i32
    %c0_i32_1 = arith.constant 0 : i32
    return %c0_i32, %c0_i32_0 : i32, i32
  }
  func.func @transform_4(%arg0: i32) -> (i32, i32) {
    %c0_i32 = arith.constant 0 : i32
    %c0_i32_0 = arith.constant 0 : i32
    %c0_i32_1 = arith.constant 0 : i32
    return %c0_i32, %c0_i32_0 : i32, i32
  }
  func.func @transform_5(%arg0: i32) -> (i32, i32) {
    %c0_i32 = arith.constant 0 : i32
    %c0_i32_0 = arith.constant 0 : i32
    %c0_i32_1 = arith.constant 0 : i32
    return %c0_i32, %c0_i32_0 : i32, i32
  }
  func.func @transform_6(%arg0: i32) -> (i32, i32) {
    %c0_i32 = arith.constant 0 : i32
    %c0_i32_0 = arith.constant 0 : i32
    %c0_i32_1 = arith.constant 0 : i32
    return %c0_i32, %c0_i32_0 : i32, i32
  }
  func.func @transform_7(%arg0: i32) -> (i32, i32) {
    %c0_i32 = arith.constant 0 : i32
    %c0_i32_0 = arith.constant 0 : i32
    %c0_i32_1 = arith.constant 0 : i32
    return %c0_i32, %c0_i32_0 : i32, i32
  }
  func.func @transform_8(%arg0: i32) -> (i32, i32) {
    %c0_i32 = arith.constant 0 : i32
    %c0_i32_0 = arith.constant 0 : i32
    %c0_i32_1 = arith.constant 0 : i32
    return %c0_i32, %c0_i32_0 : i32, i32
  }
  func.func @transform_9(%arg0: i32) -> (i32, i32) {
    %c0_i32 = arith.constant 0 : i32
    %c0_i32_0 = arith.constant 0 : i32
    %c0_i32_1 = arith.constant 0 : i32
    return %c0_i32, %c0_i32_0 : i32, i32
  }
  func.func @transform_10(%arg0: i32) -> (i32, i32) {
    %c0_i32 = arith.constant 0 : i32
    %c0_i32_0 = arith.constant 0 : i32
    %c0_i32_1 = arith.constant 0 : i32
    return %c0_i32, %c0_i32_0 : i32, i32
  }
  func.func @transform_11(%arg0: i32) -> (i32, i32) {
    %c0_i32 = arith.constant 0 : i32
    %c0_i32_0 = arith.constant 0 : i32
    %c0_i32_1 = arith.constant 0 : i32
    return %c0_i32, %c0_i32_0 : i32, i32
  }
  func.func @transform_12(%arg0: i32) -> (i32, i32, i32) {
    %c0_i32 = arith.constant 0 : i32
    %c0_i32_0 = arith.constant 0 : i32
    %c0_i32_1 = arith.constant 0 : i32
    %c0_i32_2 = arith.constant 0 : i32
    return %c0_i32, %c0_i32_0, %c0_i32_1 : i32, i32, i32
  }
  func.func @transform_13(%arg0: i32) -> (i32, i32) {
    %c0_i32 = arith.constant 0 : i32
    %c0_i32_0 = arith.constant 0 : i32
    %c0_i32_1 = arith.constant 0 : i32
    return %c0_i32, %c0_i32_0 : i32, i32
  }
  func.func @transform_14(%arg0: i32) -> (i32, i32) {
    %c0_i32 = arith.constant 0 : i32
    %c0_i32_0 = arith.constant 0 : i32
    %c0_i32_1 = arith.constant 0 : i32
    return %c0_i32, %c0_i32_0 : i32, i32
  }
  func.func @transform_15(%arg0: i32) -> (i32, i32) {
    %c0_i32 = arith.constant 0 : i32
    %c0_i32_0 = arith.constant 0 : i32
    %c0_i32_1 = arith.constant 0 : i32
    return %c0_i32, %c0_i32_0 : i32, i32
  }
  func.func @transform_16(%arg0: i32) -> (i32, i32, i32) {
    %c0_i32 = arith.constant 0 : i32
    %c0_i32_0 = arith.constant 0 : i32
    %c0_i32_1 = arith.constant 0 : i32
    %c0_i32_2 = arith.constant 0 : i32
    return %c0_i32, %c0_i32_0, %c0_i32_1 : i32, i32, i32
  }
  func.func @transform_17(%arg0: i32) -> (i32, i32) {
    %c0_i32 = arith.constant 0 : i32
    %c0_i32_0 = arith.constant 0 : i32
    %c0_i32_1 = arith.constant 0 : i32
    return %c0_i32, %c0_i32_0 : i32, i32
  }
  func.func @transform_18(%arg0: i32) -> (i32, i32) {
    %c0_i32 = arith.constant 0 : i32
    %c0_i32_0 = arith.constant 0 : i32
    %c0_i32_1 = arith.constant 0 : i32
    return %c0_i32, %c0_i32_0 : i32, i32
  }
  func.func @transform_19(%arg0: i32) -> (i32, i32) {
    %c0_i32 = arith.constant 0 : i32
    %c0_i32_0 = arith.constant 0 : i32
    %c0_i32_1 = arith.constant 0 : i32
    return %c0_i32, %c0_i32_0 : i32, i32
  }
  func.func @transform_20(%arg0: i32) -> (i32, i32) {
    %c0_i32 = arith.constant 0 : i32
    %c0_i32_0 = arith.constant 0 : i32
    %c0_i32_1 = arith.constant 0 : i32
    return %c0_i32, %c0_i32_0 : i32, i32
  }
}

</mosaic_0001>

<bundles_post_ra>
// kernel: tpu_custom_call.1
= control target key start
LH: loop header
LB: loop body
LE: loop exit
PB: predicated region body
PF: predicated region fallthrough
CT: control target
= control target key end

     0   :  { %vm182_vm0 = vcmask 1043456   ;;  %vm175_vm1 = vcmask 31744   ;;  %v17788_v3 = vmov 0   ;;  %v65_v9 = vlaneseq  ;;  %s19804_s5 = inlined_call_operand.vmem [shape: f32[4,32], index: 5, kind: input, shape index: {}]   ;;  %s19805_s3 = inlined_call_operand.vmem [shape: f32[16,4], index: 3, kind: input, shape index: {}]   ;;  %s19806_s0 = inlined_call_operand.vmem [shape: s32[48,1], index: 0, kind: input, shape index: {}]   ;;  %s19807_s7 = inlined_call_operand.vmem [shape: f32[4,32], index: 7, kind: input, shape index: {}]   ;;  %s19808_s4 = inlined_call_operand.vmem [shape: f32[48,4], index: 4, kind: input, shape index: {}]   ;;  %s19809_s2 = inlined_call_operand.vmem [shape: s32[1,48], index: 2, kind: input, shape index: {}]   ;;  %s19810_s1 = inlined_call_operand.vmem [shape: s32[48,1], index: 1, kind: input, shape index: {}]   ;;  %s19811_s11 = inlined_call_operand.vmem [shape: f32[3,1], index: 11, kind: input, shape index: {}]   ;;  %s19812_s6 = inlined_call_operand.vmem [shape: f32[1,32], index: 6, kind: input, shape index: {}]   ;;  %s19813_s8 = inlined_call_operand.vmem [shape: f32[1,32], index: 8, kind: input, shape index: {}]   ;;  %s19814_s12 = inlined_call_operand.vmem [shape: f32[3,32,64], index: 12, kind: input, shape index: {}]   ;;  %s19815_s13 = inlined_call_operand.vmem [shape: f32[3,64], index: 13, kind: input, shape index: {}]   ;;  %s19816_s16 = inlined_call_operand.vmem [shape: f32[3,64,32], index: 16, kind: input, shape index: {}]   ;;  %s19817_s14 = inlined_call_operand.vmem [shape: f32[3,64], index: 14, kind: input, shape index: {}]   ;;  %s19818_s15 = inlined_call_operand.vmem [shape: f32[3,64], index: 15, kind: input, shape index: {}]   ;;  %s19819_s17 = inlined_call_operand.vmem [shape: f32[3,32], index: 17, kind: input, shape index: {}]   ;;  %s19820_s9 = inlined_call_operand.vmem [shape: f32[3,32], index: 9, kind: input, shape index: {}]   ;;  %s19821_s10 = inlined_call_operand.vmem [shape: f32[3,32], index: 10, kind: input, shape index: {}]   ;;  %s19822_s18 = inlined_call_operand.vmem [shape: f32[32,8], index: 18, kind: input, shape index: {}]   ;;  %s19823_s19 = inlined_call_operand.vmem [shape: f32[1,8], index: 19, kind: input, shape index: {}]   ;;  %s19824_s20 = inlined_call_operand.vmem [shape: f32[16,8], index: 20, kind: output, shape index: {}]  }
   0x1   :  { %19918 = sst [smem:[#allocation46_spill]] %s19804_s5  ;;  %17665 = vset.pattern.permute.xlu0 %v17788_v3  ;;  %17666 = vset.pattern.permute.xlu1 %v17788_v3  ;;  %v18014_v53 = vld [vmem:[%s19809_s2] ss:$0 sm:$0xff]  ;;  %v113_v58 = vld [vmem:[%s19810_s1 + $0x8] sm:$0xff]  ;;  %vm1407_vm4 = vcmask 130048   ;;  %vm2159_vm11 = vcmask 392192  }
   0x2   :  { %19919 = sst [smem:[#allocation47_spill]] %s19805_s3  ;;  %s19923_s23 = sld [smem:[#allocation46_spill]]  ;;  %v17926_v15 = vshrl.u32 %v65_v9, 7  ;;  %v112_v54 = vld [vmem:[%s19810_s1] sm:$0xff]  ;;  %vm2123_vm12 = vcmask 261120  }
   0x3   :  { %19920 = sst [smem:[#allocation48_spill]] %s19806_s0  ;;  %s19924_s25 = sld [smem:[#allocation47_spill]] }
   0x4   :  { %19921 = sst [smem:[#allocation49_spill]] %s19807_s7  ;;  %v17952_v23 = vadd.s32 8, %v17926_v15  ;;  %vm159_vm10 = vcmp.eq.s32.totalorder %v18014_v53, %v17926_v15  ;;  %v13341_v15 = vld [vmem:[%s19813_s8] ss:$0 sm:$0xff] }
   0x5   :  { %19922 = sst [smem:[#allocation50_spill]] %s19808_s4  ;;  %s19925_s4 = sld [smem:[#allocation48_spill]] }
   0x6   :  { %s19926_s7 = sld [smem:[#allocation49_spill]]  ;;  %s19927_s28 = sld [smem:[#allocation50_spill]]  ;;  %vm160_vm2 = vcmp.eq.s32.totalorder %v18014_v53, %v17952_v23 }
   0x8   :  { %v167_v0 = vld [vmem:[%s19923_s23] sm:$0xf] }
   0x9   :  { %v165_v1 = vld [vmem:[%s19924_s25] sm:$0xff]  ;;  %v166_v2 = vld [vmem:[%s19924_s25 + $0x8] sm:$0xff]  ;;  %v184_v4 = vsel %vm182_vm0, %v167_v0, 0 }
   0xa   :  { %v177_v5 = vsel %vm175_vm1, %v165_v1, 0  ;;  %v180_v6 = vsel %vm175_vm1, %v166_v2, 0  ;;  %v17913_v10 = vand.u32 4294901760, %v184_v4 }
   0xb   :  { %v70_v7 = vld [vmem:[%s19925_s4] sm:$0xff]  ;;  %v72_v8 = vld [vmem:[%s19925_s4 + $0x10] sm:$0xff]  ;;  %v17915_v11 = vand.u32 4294901760, %v177_v5  ;;  %v17917_v12 = vand.u32 4294901760, %v180_v6  ;;  %v71_v13 = vld [vmem:[%s19925_s4 + $0x8] sm:$0xff] }
   0xc   :  { %77 = vperm.xlu0 %17665, %v70_v7   ;;  %83 = vperm.xlu1 %17666, %v72_v8   ;;  %v73_v14 = vld [vmem:[%s19925_s4 + $0x18] sm:$0xff]  ;;  %v17936_v18 = vsub.f32 %v184_v4, %v17913_v10  ;;  %v74_v19 = vld [vmem:[%s19925_s4 + $0x20] sm:$0xff]  ;;  %v676_v22 = vld [vmem:[%s19927_s28 + $0x8] sm:$0xff] }
   0xd   :  { %14495 = vmatprep.subr.mxu0 %v17913_v10  ;;  %v17930_v16 = vsub.f32 %v177_v5, %v17915_v11  ;;  %v17933_v17 = vsub.f32 %v180_v6, %v17917_v12  ;;  %v681_v20 = vld [vmem:[%s19926_s7] sm:$0xf]  ;;  %v677_v28 = vld [vmem:[%s19927_s28 + $0x10] sm:$0xff]  ;;  %v678_v29 = vld [vmem:[%s19927_s28 + $0x18] sm:$0xff]  ;;  %v693_v33 = vsel %vm175_vm1, %v676_v22, 0 }
   0xe   :  { %14496 = vmatpush3.msra.mxu0 %v17913_v10  ;;  %v675_v21 = vld [vmem:[%s19927_s28] sm:$0xff]  ;;  %v17957_v26 = vand.u32 4294901760, %v17936_v18  ;;  %v708_v27 = vsel %vm182_vm0, %v681_v20, 0  ;;  %v75_v30 = vld [vmem:[%s19925_s4 + $0x28] sm:$0xff]  ;;  %v696_v34 = vsel %vm175_vm1, %v677_v28, 0  ;;  %v17988_v40 = vand.u32 4294901760, %v693_v33 }
   0xf   :  { %v254_v24 = vand.u32 4294901760, %v17930_v16  ;;  %v264_v25 = vand.u32 4294901760, %v17933_v17  ;;  %v17969_v31 = vand.u32 4294901760, %v708_v27  ;;  %v690_v32 = vsel %vm175_vm1, %v675_v21, 0  ;;  %v679_v35 = vld [vmem:[%s19927_s28 + $0x20] sm:$0xff]  ;;  %v680_v44 = vld [vmem:[%s19927_s28 + $0x28] sm:$0xff] }
  0x10   :  { %80 = vperm.xlu0 %17665, %v71_v13   ;;  %86 = vperm.xlu1 %17666, %v73_v14   ;;  %v276_v38 = vsub.f32 %v17936_v18, %v17957_v26  ;;  %v17985_v39 = vand.u32 4294901760, %v690_v32  ;;  %v17990_v41 = vand.u32 4294901760, %v696_v34  ;;  %v699_v42 = vsel %vm175_vm1, %v678_v29, 0  ;;  %v114_v6 = vld [vmem:[%s19810_s1 + $0x10] sm:$0xff]  ;;  %v115_v14 = vld [vmem:[%s19810_s1 + $0x18] sm:$0xff]  ;;  %v116_v29 = vld [vmem:[%s19810_s1 + $0x20] sm:$0xff] }
  0x11   :  { %v255_v36 = vsub.f32 %v17930_v16, %v254_v24  ;;  %v265_v37 = vsub.f32 %v17933_v17, %v264_v25  ;;  %14525 = vmatprep.subr.mxu1 %v17969_v31  ;;  %v702_v43 = vsel %vm175_vm1, %v679_v35, 0  ;;  %v18002_v49 = vsub.f32 %v693_v33, %v17988_v40  ;;  %v117_v33 = vld [vmem:[%s19810_s1 + $0x28] sm:$0xff] }
  0x12   :  { %v277_v47 = vand.u32 4294901760, %v276_v38  ;;  %v17998_v48 = vsub.f32 %v690_v32, %v17985_v39  ;;  %14526 = vmatpush3.msra.mxu1 %v17969_v31  ;;  %v18005_v50 = vsub.f32 %v696_v34, %v17990_v41  ;;  %v18007_v51 = vand.u32 4294901760, %v699_v42 }
  0x13   :  { %v256_v45 = vand.u32 4294901760, %v255_v36  ;;  %v266_v46 = vand.u32 4294901760, %v265_v37  ;;  %v18009_v52 = vand.u32 4294901760, %v702_v43  ;;  %v705_v56 = vsel %vm175_vm1, %v680_v44, 0 }
  0x14   :  { %89 = vperm.xlu0 %17665, %v74_v19   ;;  %92 = vperm.xlu1 %17666, %v75_v30   ;;  %v778_v55 = vand.u32 4294901760, %v17998_v48  ;;  %v838_v57 = vsub.f32 %v708_v27, %v17969_v31  ;;  %v788_v59 = vand.u32 4294901760, %v18002_v49  ;;  %v798_v60 = vand.u32 4294901760, %v18005_v50 }
  0x15   :  { %14497 = vmatprep.mubr.f32.mxu0 %v256_v45  ;;  %14500 = vmatprep.subr.mxu0 %v277_v47  ;;  %v18028_v61 = vsub.f32 %v699_v42, %v18007_v51  ;;  %v18031_v62 = vsub.f32 %v702_v43, %v18009_v52  ;;  %v18037_v0 = vand.u32 4294901760, %v705_v56 }
  0x16   :  { %14498 = vmatmul.mubr.f32.vlgmr.msra.gmra.mrb[0].mxu0 %v266_v46  ;;  %v779_v63 = vsub.f32 %v17998_v48, %v778_v55  ;;  %v18039_v1 = vand.u32 4294901760, %v838_v57  ;;  %v789_v2 = vsub.f32 %v18002_v49, %v788_v59  ;;  %v799_v3 = vsub.f32 %v18005_v50, %v798_v60 }
  0x17   :  { %14501 = vmatpush3.msra.mxu0 %v277_v47  ;;  %14502 = vmatprep.mubr.f32.mxu0 %v17915_v11  ;;  %v808_v4 = vand.u32 4294901760, %v18028_v61  ;;  %v818_v5 = vand.u32 4294901760, %v18031_v62  ;;  %v18056_v8 = vsub.f32 %v705_v56, %v18037_v0 }
  0x18   :  { %14505 = vmatprep.subr.mxu0 %v17936_v18  ;;  %119 = vperm.xlu0 %17665, %v112_v54   ;;  %v780_v7 = vand.u32 4294901760, %v779_v63  ;;  %v840_v13 = vsub.f32 %v838_v57, %v18039_v1  ;;  %v790_v19 = vand.u32 4294901760, %v789_v2  ;;  %v800_v20 = vand.u32 4294901760, %v799_v3 }
  0x19   :  { %122 = vperm.xlu1 %17666, %v113_v58   ;;  %v809_v21 = vsub.f32 %v18028_v61, %v808_v4  ;;  %v819_v22 = vsub.f32 %v18031_v62, %v818_v5  ;;  %v828_v27 = vand.u32 4294901760, %v18056_v8 }
  0x1a   :  { %14527 = vmatprep.mubr.f32.mxu1 %v780_v7  ;;  %v841_v28 = vand.u32 4294901760, %v840_v13 }
  0x1b   :  { %14528 = vmatmul.mubr.f32.vlgmr.msra.gmra.mrb[0].mxu1 %v790_v19  ;;  %v810_v30 = vand.u32 4294901760, %v809_v21  ;;  %v829_v32 = vsub.f32 %v18056_v8, %v828_v27  ;;  %v820_v34 = vand.u32 4294901760, %v819_v22 }
  0x1c   :  { %125 = vperm.xlu0 %17665, %v114_v6   ;;  %14530 = vmatprep.mubr.f32.mxu1 %v800_v20 }
  0x1d   :  { %128 = vperm.xlu1 %17666, %v115_v14   ;;  %14536 = vmatprep.subr.mxu1 %v841_v28  ;;  %v830_v35 = vand.u32 4294901760, %v829_v32 }
  0x1e   :  { %14503 = vmatmul.mubr.f32.vlgmr.msra.gmra.mrb[0].mxu0 %v17917_v12  ;;  %14537 = vmatpush3.msra.mxu1 %v841_v28 }
  0x1f   :  { %14506 = vmatpush3.msra.mxu0 %v17936_v18  ;;  %14507 = vmatprep.mubr.f32.mxu0 %v17930_v16 }
  0x20   :  { %14510 = vmatprep.subr.mxu0 %v17913_v10  ;;  %131 = vperm.xlu0 %17665, %v116_v29  }
  0x21   :  { %134 = vperm.xlu1 %17666, %v117_v33   ;;  %14531 = vmatmul.mubr.f32.gmra.mrb[2].mxu1 %v810_v30 }
  0x22   :  { %14533 = vmatprep.mubr.f32.mxu1 %v820_v34  ;;  %14547 = vmatprep.subr.mxu1 %v838_v57 }
  0x25   :  { %14534 = vmatmul.mubr.f32.gmra.mrb[4].mxu1 %v830_v35 }
  0x26   :  { %14508 = vmatmul.mubr.f32.vlgmr.msra.gmra.mrb[0].mxu0 %v17933_v17  ;;  %14538 = vmatprep.mubr.f32.mxu1 %v17985_v39 }
  0x27   :  { %14511 = vmatpush3.msra.mxu0 %v17913_v10  ;;  %14512 = vmatprep.mubr.f32.mxu0 %v254_v24 }
  0x28   :  { %14515 = vmatprep.subr.mxu0 %v17957_v26 }
  0x29   :  { %14539 = vmatmul.mubr.f32.vlgmr.msra.gmra.mrb[0].mxu1 %v17988_v40 }
  0x2a   :  { %14541 = vmatprep.mubr.f32.mxu1 %v17990_v41  ;;  %14548 = vmatpush3.msra.mxu1 %v838_v57 }
  0x2b   :  { %14558 = vmatprep.subr.mxu1 %v17969_v31 }
  0x2d   :  { %14542 = vmatmul.mubr.f32.gmra.mrb[2].mxu1 %v18007_v51 }
  0x2e   :  { %14513 = vmatmul.mubr.f32.vlgmr.msra.gmra.mrb[0].mxu0 %v264_v25  ;;  %14544 = vmatprep.mubr.f32.mxu1 %v18009_v52 }
  0x2f   :  { %14516 = vmatpush3.msra.mxu0 %v17957_v26  ;;  %14517 = vmatprep.mubr.f32.mxu0 %v17915_v11  ;;  %v2112_v26 = vld [vmem:[%s19811_s11] sm:$0x1] }
  0x30   :  { %14520 = vmatprep.subr.mxu0 %v17913_v10  ;;  %17657 = vpush %v2112_v26 }
  0x31   :  { %14545 = vmatmul.mubr.f32.gmra.mrb[4].mxu1 %v18037_v0 }
  0x32   :  { %14549 = vmatprep.mubr.f32.mxu1 %v17998_v48 }
  0x35   :  { %14550 = vmatmul.mubr.f32.vlgmr.msra.gmra.mrb[0].mxu1 %v18002_v49 }
  0x36   :  { %14518 = vmatmul.mubr.f32.vlgmr.msra.gmra.mrb[0].mxu0 %v17917_v12  ;;  %14552 = vmatprep.mubr.f32.mxu1 %v18005_v50  ;;  %v13340_v50 = vld [vmem:[%s19812_s6] ss:$0 sm:$0xff] }
  0x37   :  { %14521 = vmatpush3.msra.mxu0 %v17913_v10  ;;  %14522 = vmatprep.mubr.f32.mxu0 %v17915_v11  ;;  %v18135_v10 = vand.u32 127, %v65_v9 }
  0x38   :  { %14559 = vmatpush3.msra.mxu1 %v17969_v31 }
  0x39   :  { %14553 = vmatmul.mubr.f32.gmra.mrb[2].mxu1 %v18028_v61  ;;  %14569 = vmatprep.subr.mxu1 %v18039_v1 }
  0x3a   :  { %14555 = vmatprep.mubr.f32.mxu1 %v18031_v62 }
  0x3d   :  { %14556 = vmatmul.mubr.f32.gmra.mrb[4].mxu1 %v18056_v8 }
  0x3e   :  { %14523 = vmatmul.mubr.f32.vlgmr.msra.gmra.mrb[0].mxu0 %v17917_v12  ;;  %14560 = vmatprep.mubr.f32.mxu1 %v778_v55  ;;  %v19828_v12 = vmov 0.0  }
  0x41   :  { %14561 = vmatmul.mubr.f32.vlgmr.msra.gmra.mrb[0].mxu1 %v788_v59 }
  0x42   :  { %14563 = vmatprep.mubr.f32.mxu1 %v798_v60  ;;  %14570 = vmatpush3.msra.mxu1 %v18039_v1 }
  0x43   :  { %14580 = vmatprep.subr.mxu1 %v17969_v31 }
  0x45   :  { %14564 = vmatmul.mubr.f32.gmra.mrb[2].mxu1 %v808_v4 }
  0x46   :  { %14566 = vmatprep.mubr.f32.mxu1 %v818_v5 }
  0x49   :  { %14567 = vmatmul.mubr.f32.gmra.mrb[4].mxu1 %v828_v27 }
  0x4a   :  { %14571 = vmatprep.mubr.f32.mxu1 %v17985_v39 }
  0x4d   :  { %14572 = vmatmul.mubr.f32.vlgmr.msra.gmra.mrb[0].mxu1 %v17988_v40 }
  0x4e   :  { %14574 = vmatprep.mubr.f32.mxu1 %v17990_v41  ;;  %14581 = vmatpush3.msra.mxu1 %v17969_v31 }
  0x51   :  { %14575 = vmatmul.mubr.f32.gmra.mrb[2].mxu1 %v18007_v51 }
  0x52   :  { %14577 = vmatprep.mubr.f32.mxu1 %v18009_v52 }
  0x55   :  { %14578 = vmatmul.mubr.f32.gmra.mrb[4].mxu1 %v18037_v0 }
  0x56   :  { %14582 = vmatprep.mubr.f32.mxu1 %v17985_v39 }
  0x59   :  { %14583 = vmatmul.mubr.f32.vlgmr.msra.gmra.mrb[0].mxu1 %v17988_v40 }
  0x5a   :  { %14585 = vmatprep.mubr.f32.mxu1 %v17990_v41 }
  0x5d   :  { %14586 = vmatmul.mubr.f32.gmra.mrb[2].mxu1 %v18007_v51 }
  0x5e   :  { %14588 = vmatprep.mubr.f32.mxu1 %v18009_v52 }
  0x61   :  { %14589 = vmatmul.mubr.f32.gmra.mrb[4].mxu1 %v18037_v0  ;;  %s17658_s8 = spop %17657 }
  0x8b   :  { %v78_v11 = vpop.permute.xlu0 %77  ;;  %v84_v31 = vpop.permute.xlu1 %83 }
  0x8c   :  { %vm94_vm3 = vcmp.eq.s32.totalorder %v78_v11, %v18135_v10  ;;  %vm96_vm6 = vcmp.eq.s32.totalorder %v84_v31, %v18135_v10 }
  0x8d   :  { %v18139_v16 = vsel %vm94_vm3, 1.0, %v19828_v12  ;;  %v18162_v39 = vsel %vm96_vm6, 1.0, %v19828_v12  ;;  %vm4529_vm3 = vcmask 523264  }
  0x8e   :  { %19928 = vst [vmem:[#allocation2_spill] sm:$0xff] %v18139_v16  ;;  %v1409_v17 = vsel %vm1407_vm4, %v18139_v16, 0  ;;  %19933 = vst [vmem:[#allocation7_spill] sm:$0xff] %v18162_v39  ;;  %v1415_v44 = vsel %vm1407_vm4, %v18162_v39, 0 }
  0x8f   :  { %v18143_v18 = vsub.f32 %v1409_v17, %v1409_v17  ;;  %v81_v36 = vpop.permute.xlu0 %80  ;;  %v87_v37 = vpop.permute.xlu1 %86  ;;  %v18179_v47 = vsub.f32 %v1415_v44, %v1415_v44 }
  0x90   :  { %vm95_vm5 = vcmp.eq.s32.totalorder %v81_v36, %v18135_v10  ;;  %vm97_vm7 = vcmp.eq.s32.totalorder %v87_v37, %v18135_v10 }
  0x91   :  { %19929 = vst [vmem:[#allocation3_spill] sm:$0xff] %v18143_v18  ;;  %v18146_v24 = vand.u32 4294901760, %v18143_v18  ;;  %v18159_v38 = vsel %vm95_vm5, 1.0, %v19828_v12  ;;  %v18169_v42 = vsel %vm97_vm7, 1.0, %v19828_v12  ;;  %19937 = vst [vmem:[#allocation11_spill] sm:$0xff] %v18179_v47  ;;  %v18203_v60 = vand.u32 4294901760, %v18179_v47 }
  0x92   :  { %19932 = vst [vmem:[#allocation6_spill] sm:$0xff] %v18159_v38  ;;  %v1412_v41 = vsel %vm1407_vm4, %v18159_v38, 0  ;;  %19934 = vst [vmem:[#allocation8_spill] sm:$0xff] %v18169_v42  ;;  %v1418_v48 = vsel %vm1407_vm4, %v18169_v42, 0 }
  0x93   :  { %19930 = vst [vmem:[#allocation4_spill] sm:$0xff] %v18146_v24  ;;  %v1496_v9 = vsub.f32 %v18143_v18, %v18146_v24  ;;  %v90_v40 = vpop.permute.xlu0 %89  ;;  %v93_v43 = vpop.permute.xlu1 %92  ;;  %v18177_v46 = vsub.f32 %v1412_v41, %v1412_v41  ;;  %v18200_v58 = vsub.f32 %v1418_v48, %v1418_v48  ;;  %19941 = vst [vmem:[#allocation15_spill] sm:$0xff] %v18203_v60 }
  0x94   :  { %vm98_vm8 = vcmp.eq.s32.totalorder %v90_v40, %v18135_v10  ;;  %vm99_vm9 = vcmp.eq.s32.totalorder %v93_v43, %v18135_v10  ;;  %v1516_v7 = vsub.f32 %v18179_v47, %v18203_v60  ;;  %v18304_v43 = vsel %vm159_vm10, 1.0, %v19828_v12 }
  0x95   :  { %v18150_v25 = vand.u32 4294901760, %v1496_v9  ;;  %v18174_v45 = vsel %vm98_vm8, 1.0, %v19828_v12  ;;  %19936 = vst [vmem:[#allocation10_spill] sm:$0xff] %v18177_v46  ;;  %v18184_v49 = vsel %vm99_vm9, 1.0, %v19828_v12  ;;  %v18197_v56 = vand.u32 4294901760, %v18177_v46  ;;  %19940 = vst [vmem:[#allocation14_spill] sm:$0xff] %v18200_v58  ;;  %14696 = vmatprep.mubr.msk.f32.mxu1 %vm2159_vm11, %v18304_v43 }
  0x96   :  { %19935 = vst [vmem:[#allocation9_spill] sm:$0xff] %v18174_v45  ;;  %19938 = vst [vmem:[#allocation12_spill] sm:$0xff] %v18184_v49  ;;  %v1421_v52 = vsel %vm1407_vm4, %v18174_v45, 0  ;;  %v1424_v62 = vsel %vm1407_vm4, %v18184_v49, 0  ;;  %v18214_v4 = vand.u32 4294901760, %v18200_v58  ;;  %v18232_v29 = vand.u32 4294901760, %v1516_v7 }
  0x97   :  { %19931 = vst [vmem:[#allocation5_spill] sm:$0xff] %v18150_v25  ;;  %14595 = vmatprep.mubr.f32.mxu0 %v18150_v25  ;;  %19939 = vst [vmem:[#allocation13_spill] sm:$0xff] %v18197_v56  ;;  %v18205_v61 = vsub.f32 %v1421_v52, %v1421_v52  ;;  %v1506_v1 = vsub.f32 %v18177_v46, %v18197_v56  ;;  %v18216_v5 = vsub.f32 %v1424_v62, %v1424_v62 }
  0x98   :  { %19943 = vst [vmem:[#allocation17_spill] sm:$0xff] %v18214_v4  ;;  %v1526_v21 = vsub.f32 %v18200_v58, %v18214_v4  ;;  %19948 = vst [vmem:[#allocation22_spill] sm:$0xff] %v18232_v29  ;;  %v2161_v44 = vsel %vm2159_vm11, %v18304_v43, 0 }
  0x99   :  { %19942 = vst [vmem:[#allocation16_spill] sm:$0xff] %v18205_v61  ;;  %19944 = vst [vmem:[#allocation18_spill] sm:$0xff] %v18216_v5  ;;  %v18221_v8 = vand.u32 4294901760, %v18205_v61  ;;  %v18225_v19 = vand.u32 4294901760, %v1506_v1  ;;  %v18230_v27 = vand.u32 4294901760, %v18216_v5  ;;  %v18310_v48 = vsub.f32 %v2161_v44, %v2161_v44 }
  0x9a   :  { %v18238_v34 = vand.u32 4294901760, %v1526_v21 }
  0x9b   :  { %19945 = vst [vmem:[#allocation19_spill] sm:$0xff] %v18221_v8  ;;  %19946 = vst [vmem:[#allocation20_spill] sm:$0xff] %v18225_v19  ;;  %v1536_v32 = vsub.f32 %v18205_v61, %v18221_v8  ;;  %v1546_v11 = vsub.f32 %v18216_v5, %v18230_v27 }
  0x9c   :  { %19947 = vst [vmem:[#allocation21_spill] sm:$0xff] %v18230_v27  ;;  %19949 = vst [vmem:[#allocation23_spill] sm:$0xff] %v18238_v34 }
  0x9d   :  { %v18242_v17 = vand.u32 4294901760, %v1536_v32  ;;  %v18246_v9 = vand.u32 4294901760, %v1546_v11 }
  0x9f   :  { %19950 = vst [vmem:[#allocation24_spill] sm:$0xff] %v18242_v17  ;;  %19951 = vst [vmem:[#allocation25_spill] sm:$0xff] %v18246_v9 }
 0x111   :  { %v18189_v51 = vpop.f32.mrb[0].mxu0 }
 0x112   :  { %v17261_v54 = vadd.f32 %v18189_v51, %v13340_v50  ;;  %v18194_v55 = vpop.f32.mrb[1].mxu0 }
 0x113   :  { %v17262_v57 = vadd.f32 %v13340_v50, %v18194_v55  ;;  %v18313_v50 = vand.u32 4294901760, %v18310_v48 }
 0x114   :  { %v1430_v59 = vand.u32 4294901760, %v17261_v54 }
 0x115   :  { %v1427_v63 = vand.u32 4294901760, %v17262_v57  ;;  %v2240_v52 = vsub.f32 %v18310_v48, %v18313_v50 }
 0x116   :  { %v1562_v0 = vsub.f32 %v17261_v54, %v1430_v59 }
 0x117   :  { %v18211_v2 = vpack.c.bf16 %v1430_v59, %v1427_v63  ;;  %v1555_v3 = vsub.f32 %v17262_v57, %v1427_v63  ;;  %v18317_v54 = vand.u32 4294901760, %v2240_v52 }
 0x118   :  { %v1563_v6 = vand.u32 4294901760, %v1562_v0 }
 0x119   :  { %v1556_v13 = vand.u32 4294901760, %v1555_v3  ;;  %16206 = vmatprep.subr.bf16.mxu0 %v18211_v2  ;;  %v16213_v14 = vpack.c.bf16 %v1562_v0, %v1555_v3  ;;  %19952 = vst [vmem:[#allocation26_spill] sm:$0xff] %v18317_v54 }
 0x11a   :  { %16208 = vmatpush3.bf16.msra.mxu0 %v18211_v2  ;;  %v1564_v20 = vsub.f32 %v1562_v0, %v1563_v6 }
 0x11b   :  { %v1557_v22 = vsub.f32 %v1555_v3, %v1556_v13  ;;  %v16221_v28 = vpack.c.bf16 %v1563_v6, %v1556_v13 }
 0x11c   :  { %v1565_v30 = vand.u32 4294901760, %v1564_v20 }
 0x11d   :  { %14596 = vmatmul.mubr.f32.vlgmr.msra.gmra.mrb[2].mxu0 %v18225_v19  ;;  %v1558_v33 = vand.u32 4294901760, %v1557_v22 }
 0x11e   :  { %14598 = vmatprep.mubr.f32.mxu0 %v18232_v29 }
 0x11f   :  { %v16209_v35 = vpack.c.bf16 %v1565_v30, %v1558_v33 }
 0x121   :  { %14599 = vmatmul.mubr.f32.gmra.mrb[4].mxu0 %v18238_v34  ;;  %16210 = vmatprep.subr.bf16.mxu0 %v16209_v35 }
 0x122   :  { %14601 = vmatprep.mubr.f32.mxu0 %v18242_v17  ;;  %16212 = vmatpush3.bf16.msra.mxu0 %v16209_v35 }
 0x123   :  { %16214 = vmatprep.subr.bf16.mxu0 %v16213_v14 }
 0x125   :  { %14602 = vmatmul.mubr.f32.gmra.mrb[6].mxu0 %v18246_v9 }
 0x126   :  { %14608 = vmatprep.mubr.msk.f32.mxu0 %vm1407_vm4, %v18139_v16 }
 0x129   :  { %14609 = vmatmul.mubr.msk.f32.vlgmr.msra.gmra.mrb[2].mxu0 %vm1407_vm4, %v18159_v38 }
 0x12a   :  { %16216 = vmatpush3.bf16.msra.mxu0 %v16213_v14  ;;  %14611 = vmatprep.mubr.msk.f32.mxu0 %vm1407_vm4, %v18162_v39 }
 0x12b   :  { %16218 = vmatprep.subr.bf16.mxu0 %v18211_v2 }
 0x12c   :  { %v14584_v26 = vpop.f32.mrb[0].mxu1 }
 0x12d   :  { %14612 = vmatmul.mubr.msk.f32.gmra.mrb[4].mxu0 %vm1407_vm4, %v18169_v42  ;;  %v1337_v31 = vpop.f32.mrb[1].mxu1  ;;  %v17263_v57 = vadd.f32 %v14584_v26, %v13341_v15 }
 0x12e   :  { %14614 = vmatprep.mubr.msk.f32.mxu0 %vm1407_vm4, %v18174_v45  ;;  %v17264_v59 = vadd.f32 %v13341_v15, %v1337_v31 }
 0x12f   :  { %v13343_v62 = vmul.f32 -1.442695, %v17263_v57 }
 0x130   :  { %v14587_v36 = vpop.f32.mrb[2].mxu1  ;;  %v13342_v0 = vmul.f32 -1.442695, %v17264_v59 }
 0x131   :  { %14615 = vmatmul.mubr.msk.f32.gmra.mrb[6].mxu0 %vm1407_vm4, %v18184_v49  ;;  %v1349_v37 = vpop.f32.mrb[3].mxu1  ;;  %v17265_v63 = vadd.f32 %v14587_v36, %v13341_v15  ;;  %17667 = vpow2.f32 %v13343_v62 }
 0x132   :  { %14621 = vmatprep.mubr.f32.mxu0 %v18143_v18  ;;  %v17266_v1 = vadd.f32 %v13341_v15, %v1349_v37  ;;  %17669 = vpow2.f32 %v13342_v0 }
 0x134   :  { %v14590_v40 = vpop.f32.mrb[4].mxu1  ;;  %v13344_v6 = vmul.f32 -1.442695, %v17266_v1 }
 0x135   :  { %14622 = vmatmul.mubr.f32.vlgmr.msra.gmra.mrb[2].mxu0 %v18177_v46  ;;  %v1361_v41 = vpop.f32.mrb[5].mxu1  ;;  %v17267_v3 = vadd.f32 %v14590_v40, %v13341_v15 }
 0x136   :  { %16220 = vmatpush3.bf16.msra.mxu0 %v18211_v2  ;;  %14624 = vmatprep.mubr.f32.mxu0 %v18179_v47  ;;  %v17268_v7 = vadd.f32 %v13341_v15, %v1361_v41 }
 0x137   :  { %16222 = vmatprep.subr.bf16.mxu0 %v16221_v28  ;;  %v13347_v13 = vmul.f32 -1.442695, %v17267_v3 }
 0x138   :  { %v13346_v14 = vmul.f32 -1.442695, %v17268_v7 }
 0x139   :  { %14625 = vmatmul.mubr.f32.gmra.mrb[4].mxu0 %v18200_v58 }
 0x13a   :  { %14627 = vmatprep.mubr.f32.mxu0 %v18205_v61 }
 0x13b   :  { %v17668_v20 = vpop.eup %17667 }
 0x13c   :  { %v17670_v21 = vpop.eup %17669  ;;  %v1390_v22 = vadd.f32 1.0, %v17668_v20 }
 0x13d   :  { %14628 = vmatmul.mubr.f32.gmra.mrb[6].mxu0 %v18216_v5  ;;  %v1389_v30 = vadd.f32 1.0, %v17670_v21 }
 0x13e   :  { %14634 = vmatprep.mubr.f32.mxu0 %v18146_v24 }
 0x141   :  { %14635 = vmatmul.mubr.f32.vlgmr.msra.gmra.mrb[2].mxu0 %v18197_v56 }
 0x142   :  { %16224 = vmatpush3.bf16.msra.mxu0 %v16221_v28  ;;  %14637 = vmatprep.mubr.f32.mxu0 %v18203_v60 }
 0x143   :  { %16226 = vmatprep.subr.bf16.mxu0 %v18211_v2 }
 0x145   :  { %14638 = vmatmul.mubr.f32.gmra.mrb[4].mxu0 %v18214_v4 }
 0x146   :  { %14640 = vmatprep.mubr.f32.mxu0 %v18221_v8 }
 0x149   :  { %14641 = vmatmul.mubr.f32.gmra.mrb[6].mxu0 %v18230_v27 }
 0x14a   :  { %14647 = vmatprep.mubr.msk.f32.mxu0 %vm1407_vm4, %v18139_v16 }
 0x14d   :  { %14648 = vmatmul.mubr.msk.f32.vlgmr.msra.gmra.mrb[2].mxu0 %vm1407_vm4, %v18159_v38 }
 0x14e   :  { %16228 = vmatpush3.bf16.msra.mxu0 %v18211_v2  ;;  %14650 = vmatprep.mubr.msk.f32.mxu0 %vm1407_vm4, %v18162_v39  ;;  %v13345_v2 = vmul.f32 -1.442695, %v17265_v63 }
 0x150   :  { %17671 = vpow2.f32 %v13345_v2 }
 0x151   :  { %14651 = vmatmul.mubr.msk.f32.gmra.mrb[4].mxu0 %vm1407_vm4, %v18169_v42  ;;  %17673 = vpow2.f32 %v13344_v6 }
 0x152   :  { %14653 = vmatprep.mubr.msk.f32.mxu0 %vm1407_vm4, %v18174_v45  ;;  %17675 = vpow2.f32 %v13347_v13 }
 0x153   :  { %17677 = vpow2.f32 %v13346_v14 }
 0x154   :  { %17679 = vrcp.f32 %v1390_v22 }
 0x155   :  { %14654 = vmatmul.mubr.msk.f32.gmra.mrb[6].mxu0 %vm1407_vm4, %v18184_v49  ;;  %17681 = vrcp.f32 %v1389_v30 }
 0x156   :  { %14660 = vmatprep.mubr.msk.f32.mxu0 %vm1407_vm4, %v18139_v16 }
 0x159   :  { %14661 = vmatmul.mubr.msk.f32.vlgmr.msra.gmra.mrb[2].mxu0 %vm1407_vm4, %v18159_v38 }
 0x15a   :  { %14663 = vmatprep.mubr.msk.f32.mxu0 %vm1407_vm4, %v18162_v39  ;;  %v17672_v28 = vpop.eup %17671 }
 0x15b   :  { %v17674_v32 = vpop.eup %17673  ;;  %v1392_v33 = vadd.f32 1.0, %v17672_v28 }
 0x15c   :  { %v17676_v35 = vpop.eup %17675  ;;  %v1391_v11 = vadd.f32 1.0, %v17674_v32 }
 0x15d   :  { %14664 = vmatmul.mubr.msk.f32.gmra.mrb[4].mxu0 %vm1407_vm4, %v18169_v42  ;;  %v17678_v26 = vpop.eup %17677  ;;  %17683 = vrcp.f32 %v1392_v33  ;;  %v1394_v31 = vadd.f32 1.0, %v17676_v35  ;;  %v2115_v35 = vstv %s17658_s8 }
 0x15e   :  { %14666 = vmatprep.mubr.msk.f32.mxu0 %vm1407_vm4, %v18174_v45  ;;  %17685 = vrcp.f32 %v1391_v11  ;;  %v1393_v36 = vadd.f32 1.0, %v17678_v26  ;;  %v18323_v37 = vpop.eup %17679 }
 0x15f   :  { %17687 = vrcp.f32 %v1394_v31  ;;  %19953 = vst [vmem:[#allocation27_spill] sm:$0xff] %v18323_v37  ;;  %v18325_v41 = vpop.eup %17681 }
 0x160   :  { %17689 = vrcp.f32 %v1393_v36  ;;  %19954 = vst [vmem:[#allocation28_spill] sm:$0xff] %v18325_v41 }
 0x161   :  { %14667 = vmatmul.mubr.msk.f32.gmra.mrb[6].mxu0 %vm1407_vm4, %v18184_v49 }
 0x162   :  { %14681 = vmatprep.mubr.f32.mxu0 %v18317_v54 }
 0x167   :  { %v18329_v57 = vpop.eup %17683 }
 0x168   :  { %19955 = vst [vmem:[#allocation29_spill] sm:$0xff] %v18329_v57  ;;  %v18331_v62 = vpop.eup %17685 }
 0x169   :  { %19956 = vst [vmem:[#allocation30_spill] sm:$0xff] %v18331_v62  ;;  %v18335_v7 = vpop.eup %17687 }
 0x16a   :  { %19957 = vst [vmem:[#allocation31_spill] sm:$0xff] %v18335_v7  ;;  %v18337_v20 = vpop.eup %17689 }
 0x16b   :  { %19958 = vst [vmem:[#allocation32_spill] sm:$0xff] %v18337_v20 }
 0x22c   :  { %v14662_v40 = vpop.f32.mrb[2].mxu0 }
 0x22d   :  { %v17269_v44 = vadd.f32 %v18323_v37, %v14662_v40  ;;  %v2066_v52 = vpop.f32.mrb[3].mxu0 }
 0x22e   :  { %v17270_v15 = vadd.f32 %v18325_v41, %v2066_v52 }
 0x22f   :  { %v2101_v63 = vmax.f32 %v17269_v44, 0.0 }
 0x230   :  { %v14665_v59 = vpop.f32.mrb[4].mxu0  ;;  %v2100_v0 = vmax.f32 %v17270_v15, 0.0 }
 0x231   :  { %v17271_v1 = vadd.f32 %v18329_v57, %v14665_v59  ;;  %v2078_v2 = vpop.f32.mrb[5].mxu0  ;;  %v18339_v21 = vadd.f32 1e-07, %v2101_v63 }
 0x232   :  { %v17272_v3 = vadd.f32 %v18331_v62, %v2078_v2  ;;  %v18341_v22 = vadd.f32 1e-07, %v2100_v0 }
 0x233   :  { %v2103_v6 = vmax.f32 %v17271_v1, 0.0  ;;  %v2118_v40 = vmul.f32 %v2115_v35, %v18339_v21 }
 0x234   :  { %v2102_v13 = vmax.f32 %v17272_v3, 0.0  ;;  %v14668_v14 = vpop.f32.mrb[6].mxu0  ;;  %v2117_v44 = vmul.f32 %v2115_v35, %v18341_v22 }
 0x235   :  { %v17273_v28 = vadd.f32 %v18335_v7, %v14668_v14  ;;  %v2090_v30 = vpop.f32.mrb[7].mxu0  ;;  %v18344_v32 = vadd.f32 1e-07, %v2103_v6  ;;  %v2125_v1 = vsel %vm2123_vm12, %v2118_v40, -inf }
 0x236   :  { %v18346_v33 = vadd.f32 1e-07, %v2102_v13  ;;  %v17274_v11 = vadd.f32 %v18337_v20, %v2090_v30  ;;  %v2124_v3 = vsel %vm2123_vm12, %v2117_v44, -inf }
 0x237   :  { %v2105_v26 = vmax.f32 %v17273_v28, 0.0  ;;  %v2120_v15 = vmul.f32 %v2115_v35, %v18344_v32 }
 0x238   :  { %v2104_v31 = vmax.f32 %v17274_v11, 0.0  ;;  %v2119_v52 = vmul.f32 %v2115_v35, %v18346_v33 }
 0x239   :  { %v18349_v36 = vadd.f32 1e-07, %v2105_v26  ;;  %v2127_v13 = vsel %vm2123_vm12, %v2120_v15, -inf }
 0x23a   :  { %v18355_v59 = vadd.f32 1e-07, %v2104_v31  ;;  %v2126_v6 = vsel %vm2123_vm12, %v2119_v52, -inf }
 0x23b   :  { %v2122_v63 = vmul.f32 %v2115_v35, %v18349_v36  ;;  %v2133_v26 = vmax.f32 %v2126_v6, %v2127_v13 }
 0x23c   :  { %v2121_v0 = vmul.f32 %v2115_v35, %v18355_v59 }
 0x23d   :  { %v2130_v2 = vsel %vm2123_vm12, %v2122_v63, -inf }
 0x23e   :  { %v2131_v14 = vmax.f32 %v2125_v1, %v2130_v2  ;;  %v2128_v28 = vsel %vm2123_vm12, %v2121_v0, -inf }
 0x23f   :  { %v2129_v30 = vmax.f32 %v2124_v3, %v2128_v28 }
 0x241   :  { %v2132_v11 = vmax.f32 %v2129_v30, %v2131_v14 }
 0x243   :  { %v2134_v31 = vmax.f32 %v2132_v11, %v2133_v26 }
 0x245   :  { %v2135_v12 = vrot.slane %v2134_v31, 4 }
 0x247   :  { %v2136_v20 = vmax.f32 %v2134_v31, %v2135_v12  ;;  %v120_v12 = vpop.permute.xlu0 %119 }
 0x248   :  { %vm136_vm13 = vcmp.eq.s32.totalorder %v120_v12, %v18135_v10 }
 0x249   :  { %v2137_v35 = vrot.slane %v2136_v20, 2 }
 0x24b   :  { %v2138_v7 = vmax.f32 %v2136_v20, %v2137_v35  ;;  %v19959_v20 = vmov 0.0  }
 0x24d   :  { %v2139_v62 = vrot.slane %v2138_v7, 1 }
 0x24f   :  { %v2140_v57 = vmax.f32 %v2138_v7, %v2139_v62  ;;  %v18369_v62 = vsel %vm160_vm2, 1.0, %v19959_v20 }
 0x251   :  { %v2141_v41 = vsub.f32 %v2117_v44, %v2140_v57  ;;  %v2142_v37 = vsub.f32 %v2118_v40, %v2140_v57  ;;  %v2143_v27 = vsub.f32 %v2119_v52, %v2140_v57  ;;  %v2144_v8 = vsub.f32 %v2120_v15, %v2140_v57 }
 0x252   :  { %v2145_v4 = vsub.f32 %v2121_v0, %v2140_v57  ;;  %v2146_v60 = vsub.f32 %v2122_v63, %v2140_v57 }
 0x253   :  { %v2147_v56 = vmul.f32 1.442695, %v2141_v41  ;;  %v2149_v1 = vmul.f32 1.442695, %v2142_v37  ;;  %v2151_v2 = vmul.f32 1.442695, %v2143_v27 }
 0x254   :  { %v2153_v24 = vmul.f32 1.442695, %v2144_v8  ;;  %v2155_v3 = vmul.f32 1.442695, %v2145_v4  ;;  %v2157_v6 = vmul.f32 1.442695, %v2146_v60 }
 0x255   :  { %17691 = vpow2.f32 %v2147_v56  ;;  %v18373_v27 = vsel %vm136_vm13, 1.0, %v19959_v20  ;;  %v2164_v56 = vsel %vm2159_vm11, %v18369_v62, 0 }
 0x256   :  { %17693 = vpow2.f32 %v2149_v1  ;;  %v18382_v8 = vsub.f32 %v2164_v56, %v2164_v56  ;;  %v2721_v23 = vsel %vm1407_vm4, %v18373_v27, 0 }
 0x257   :  { %17695 = vpow2.f32 %v2151_v2  ;;  %v18403_v63 = vsub.f32 %v2721_v23, %v2721_v23 }
 0x258   :  { %17697 = vpow2.f32 %v2153_v24  ;;  %v18413_v30 = vand.u32 4294901760, %v18382_v8 }
 0x259   :  { %17699 = vpow2.f32 %v2155_v3  ;;  %v18435_v56 = vand.u32 4294901760, %v18403_v63 }
 0x25a   :  { %17701 = vpow2.f32 %v2157_v6 }
 0x25b   :  { %19960 = vst [vmem:[#allocation33_spill] sm:$0xff] %v18435_v56  ;;  %v2808_v45 = vsub.f32 %v18403_v63, %v18435_v56 }
 0x25f   :  { %v18377_v60 = vpop.eup %17691 }
 0x260   :  { %v18379_v24 = vpop.eup %17693  ;;  %v2167_v4 = vand.u32 4294901760, %v18377_v60 }
 0x261   :  { %v18386_v53 = vpop.eup %17695  ;;  %v2170_v37 = vand.u32 4294901760, %v18379_v24 }
 0x262   :  { %v18389_v41 = vpop.eup %17697  ;;  %v2173_v57 = vand.u32 4294901760, %v18386_v53  ;;  %v18393_v7 = vsub.f32 %v18377_v60, %v2167_v4 }
 0x263   :  { %v18395_v40 = vpop.eup %17699  ;;  %v18397_v44 = vpack.c.bf16 %v2170_v37, %v2167_v4  ;;  %v2176_v52 = vand.u32 4294901760, %v18389_v41  ;;  %v18401_v15 = vsub.f32 %v18379_v24, %v2170_v37 }
 0x264   :  { %v18405_v0 = vpop.eup %17701  ;;  %v2179_v13 = vand.u32 4294901760, %v18395_v40  ;;  %v19854_v14 = vand.u32 4294901760, %v18393_v7  ;;  %v18410_v28 = vsub.f32 %v18386_v53, %v2173_v57 }
 0x265   :  { %16230 = vmatprep.subr.bf16.mxu0 %v18397_v44  ;;  %v18416_v11 = vpack.c.bf16 %v2176_v52, %v2173_v57  ;;  %v2182_v26 = vand.u32 4294901760, %v18405_v0  ;;  %v2267_v31 = vand.u32 4294901760, %v18401_v15  ;;  %v18421_v35 = vsub.f32 %v18389_v41, %v2176_v52 }
 0x266   :  { %16232 = vmatpush3.bf16.msra.mxu0 %v18397_v44  ;;  %v2261_v1 = vsub.f32 %v18393_v7, %v19854_v14  ;;  %v2274_v2 = vand.u32 4294901760, %v18410_v28  ;;  %v18429_v3 = vsub.f32 %v18395_v40, %v2179_v13  ;;  %v2250_v57 = vsub.f32 %v18382_v8, %v18413_v30 }
 0x267   :  { %16234 = vmatprep.subr.bf16.mxu0 %v18416_v11  ;;  %v2268_v6 = vsub.f32 %v18401_v15, %v2267_v31  ;;  %v2281_v12 = vand.u32 4294901760, %v18421_v35  ;;  %v2294_v4 = vsub.f32 %v18405_v0, %v2182_v26  ;;  %v18442_v14 = vpack.c.bf16 %v2182_v26, %v2179_v13 }
 0x268   :  { %v2262_v23 = vand.u32 4294901760, %v2261_v1  ;;  %v2275_v37 = vsub.f32 %v18410_v28, %v2274_v2  ;;  %v2288_v52 = vand.u32 4294901760, %v18429_v3  ;;  %v18450_v26 = vand.u32 4294901760, %v2250_v57 }
 0x269   :  { %v2269_v5 = vand.u32 4294901760, %v2268_v6  ;;  %v2282_v61 = vsub.f32 %v18421_v35, %v2281_v12  ;;  %v2295_v58 = vand.u32 4294901760, %v2294_v4 }
 0x26a   :  { %16236 = vmatpush3.bf16.msra.mxu0 %v18416_v11  ;;  %v2276_v47 = vand.u32 4294901760, %v2275_v37  ;;  %v2289_v46 = vsub.f32 %v18429_v3, %v2288_v52  ;;  %v18453_v37 = vand.u32 4294901760, %v2808_v45  ;;  %v19962_v45 = vand.u32 4294901760, %v18393_v7 }
 0x26b   :  { %16238 = vmatprep.subr.bf16.mxu0 %v18442_v14  ;;  %v16241_v1 = vpack.c.bf16 %v2269_v5, %v2262_v23  ;;  %v2283_v18 = vand.u32 4294901760, %v2282_v61  ;;  %v2296_v49 = vsub.f32 %v2294_v4, %v2295_v58  ;;  %v16285_v61 = vpack.c.bf16 %v2295_v58, %v2288_v52 }
 0x26c   :  { %v2290_v6 = vand.u32 4294901760, %v2289_v46  ;;  %19961 = vst [vmem:[#allocation34_spill] sm:$0xff] %v18453_v37  ;;  %v16257_v46 = vpack.c.bf16 %v18421_v35, %v18410_v28 }
 0x26d   :  { %16242 = vmatprep.subr.bf16.mxu1 %v16241_v1  ;;  %v16245_v13 = vpack.c.bf16 %v2283_v18, %v2276_v47  ;;  %v2297_v42 = vand.u32 4294901760, %v2296_v49  ;;  %v16253_v18 = vpack.c.bf16 %v18401_v15, %v18393_v7  ;;  %v16277_v47 = vpack.c.bf16 %v2267_v31, %v19962_v45  ;;  %v123_v15 = vpop.permute.xlu1 %122 }
 0x26e   :  { %16240 = vmatpush3.bf16.msra.mxu0 %v18442_v14  ;;  %16244 = vmatpush3.bf16.msra.mxu1 %v16241_v1  ;;  %v16281_v49 = vpack.c.bf16 %v2281_v12, %v2274_v2  ;;  %vm137_vm14 = vcmp.eq.s32.totalorder %v123_v15, %v18135_v10 }
 0x26f   :  { %16246 = vmatprep.subr.bf16.mxu1 %v16245_v13  ;;  %v16249_v5 = vpack.c.bf16 %v2297_v42, %v2290_v6  ;;  %v16261_v42 = vpack.c.bf16 %v2294_v4, %v18429_v3 }
 0x271   :  { %14682 = vmatmul.mubr.f32.vlgmr.msra.gmra.mrb[8].mxu0 %v18450_v26  ;;  %v129_v28 = vpop.permute.xlu1 %128 }
 0x272   :  { %16248 = vmatpush3.bf16.msra.mxu1 %v16245_v13  ;;  %14763 = vmatprep.mubr.f32.mxu0 %v18453_v37  ;;  %vm139_vm0 = vcmp.eq.s32.totalorder %v129_v28, %v18135_v10 }
 0x273   :  { %16250 = vmatprep.subr.bf16.mxu1 %v16249_v5  ;;  %v18504_v3 = vsel %vm139_vm0, 1.0, %v19959_v20 }
 0x274   :  { %v2730_v52 = vsel %vm1407_vm4, %v18504_v3, 0 }
 0x275   :  { %v135_v35 = vpop.permute.xlu1 %134 }
 0x276   :  { %16252 = vmatpush3.bf16.msra.mxu1 %v16249_v5  ;;  %vm141_vm2 = vcmp.eq.s32.totalorder %v135_v35, %v18135_v10 }
 0x277   :  { %16254 = vmatprep.subr.bf16.mxu1 %v16253_v18  ;;  %v18519_v1 = vsel %vm141_vm2, 1.0, %v19959_v20 }
 0x279   :  { %14697 = vmatmul.mubr.msk.f32.vlgmr.msra.gmra.mrb[6].mxu1 %vm2159_vm11, %v18369_v62 }
 0x27a   :  { %16256 = vmatpush3.bf16.msra.mxu1 %v16253_v18  ;;  %14711 = vmatprep.mubr.f32.mxu1 %v18310_v48 }
 0x27b   :  { %16258 = vmatprep.subr.bf16.mxu1 %v16257_v46 }
 0x27e   :  { %16260 = vmatpush3.bf16.msra.mxu1 %v16257_v46 }
 0x27f   :  { %16262 = vmatprep.subr.bf16.mxu1 %v16261_v42 }
 0x282   :  { %16264 = vmatpush3.bf16.msra.mxu1 %v16261_v42  ;;  %v18526_v42 = vsub.f32 %v2730_v52, %v2730_v52 }
 0x283   :  { %16266 = vmatprep.subr.bf16.mxu1 %v18397_v44 }
 0x284   :  { %19964 = vst [vmem:[#allocation36_spill] sm:$0xff] %v18526_v42 }
 0x285   :  { %14712 = vmatmul.mubr.f32.vlgmr.msra.gmra.mrb[6].mxu1 %v18382_v8 }
 0x286   :  { %16268 = vmatpush3.bf16.msra.mxu1 %v18397_v44  ;;  %14726 = vmatprep.mubr.f32.mxu1 %v18313_v50 }
 0x287   :  { %16270 = vmatprep.subr.bf16.mxu1 %v18416_v11 }
 0x28a   :  { %16272 = vmatpush3.bf16.msra.mxu1 %v18416_v11 }
 0x28b   :  { %16274 = vmatprep.subr.bf16.mxu1 %v18442_v14 }
 0x28e   :  { %16276 = vmatpush3.bf16.msra.mxu1 %v18442_v14 }
 0x28f   :  { %16278 = vmatprep.subr.bf16.mxu1 %v16277_v47 }
 0x291   :  { %14727 = vmatmul.mubr.f32.vlgmr.msra.gmra.mrb[6].mxu1 %v18413_v30 }
 0x292   :  { %16280 = vmatpush3.bf16.msra.mxu1 %v16277_v47  ;;  %14741 = vmatprep.mubr.msk.f32.mxu1 %vm2159_vm11, %v18304_v43 }
 0x293   :  { %16282 = vmatprep.subr.bf16.mxu1 %v16281_v49 }
 0x296   :  { %16284 = vmatpush3.bf16.msra.mxu1 %v16281_v49 }
 0x297   :  { %16286 = vmatprep.subr.bf16.mxu1 %v16285_v61 }
 0x29a   :  { %16288 = vmatpush3.bf16.msra.mxu1 %v16285_v61 }
 0x29b   :  { %16290 = vmatprep.subr.bf16.mxu1 %v18397_v44 }
 0x29d   :  { %14742 = vmatmul.mubr.msk.f32.vlgmr.msra.gmra.mrb[6].mxu1 %vm2159_vm11, %v18369_v62 }
 0x29e   :  { %16292 = vmatpush3.bf16.msra.mxu1 %v18397_v44  ;;  %14756 = vmatprep.mubr.msk.f32.mxu1 %vm2159_vm11, %v18304_v43  ;;  %v126_v44 = vpop.permute.xlu0 %125 }
 0x29f   :  { %16294 = vmatprep.subr.bf16.mxu1 %v18416_v11  ;;  %vm138_vm15 = vcmp.eq.s32.totalorder %v126_v44, %v18135_v10 }
 0x2a2   :  { %16296 = vmatpush3.bf16.msra.mxu1 %v18416_v11  ;;  %v18494_v11 = vsel %vm137_vm14, 1.0, %v19959_v20  ;;  %v132_v31 = vpop.permute.xlu0 %131 }
 0x2a3   :  { %16298 = vmatprep.subr.bf16.mxu1 %v18442_v14  ;;  %vm140_vm1 = vcmp.eq.s32.totalorder %v132_v31, %v18135_v10  ;;  %v2724_v2 = vsel %vm1407_vm4, %v18494_v11, 0 }
 0x2a4   :  { %v18509_v4 = vsel %vm140_vm1, 1.0, %v19959_v20  ;;  %v18512_v23 = vsub.f32 %v2724_v2, %v2724_v2 }
 0x2a5   :  { %v2733_v6 = vsel %vm1407_vm4, %v18509_v4, 0 }
 0x2a6   :  { %16300 = vmatpush3.bf16.msra.mxu1 %v18442_v14  ;;  %v18497_v14 = vsel %vm138_vm15, 1.0, %v19959_v20  ;;  %v18524_v46 = vand.u32 4294901760, %v18512_v23  ;;  %v18531_v49 = vsub.f32 %v2733_v6, %v2733_v6  ;;  %v2736_v20 = vsel %vm1407_vm4, %v18519_v1, 0 }
 0x2a7   :  { %v2727_v12 = vsel %vm1407_vm4, %v18497_v14, 0  ;;  %v18540_v31 = vsub.f32 %v2736_v20, %v2736_v20 }
 0x2a8   :  { %v18514_v57 = vsub.f32 %v2727_v12, %v2727_v12  ;;  %19963 = vst [vmem:[#allocation35_spill] sm:$0xff] %v18524_v46  ;;  %19966 = vst [vmem:[#allocation38_spill] sm:$0xff] %v18531_v49  ;;  %v18545_v12 = vand.u32 4294901760, %v18531_v49 }
 0x2a9   :  { %14757 = vmatmul.mubr.msk.f32.vlgmr.msra.gmra.mrb[6].mxu1 %vm2159_vm11, %v18369_v62  ;;  %19968 = vst [vmem:[#allocation40_spill] sm:$0xff] %v18540_v31 }
 0x2aa   :  { %14849 = vmatprep.mubr.f32.mxu1 %v18317_v54  ;;  %v18529_v47 = vand.u32 4294901760, %v18514_v57  ;;  %19969 = vst [vmem:[#allocation41_spill] sm:$0xff] %v18545_v12  ;;  %v2848_v39 = vsub.f32 %v18531_v49, %v18545_v12 }
 0x2ac   :  { %19965 = vst [vmem:[#allocation37_spill] sm:$0xff] %v18529_v47  ;;  %v2828_v2 = vsub.f32 %v18514_v57, %v18529_v47  ;;  %v18564_v16 = vand.u32 4294901760, %v2848_v39 }
 0x344   :  { %v14683_v58 = vpop.f32.mrb[8].mxu0 }
 0x345   :  { %v2243_v7 = vpop.f32.mrb[9].mxu0 }
 0x37c   :  { %v14758_v13 = vpop.f32.mrb[6].mxu1 }
 0x37d   :  { %v17275_v5 = vadd.f32 %v14758_v13, %v14683_v58  ;;  %v2710_v18 = vpop.f32.mrb[7].mxu1  ;;  %v2818_v58 = vsub.f32 %v18512_v23, %v18524_v46 }
 0x37e   :  { %v17276_v10 = vadd.f32 %v2710_v18, %v2243_v7  ;;  %v18538_v7 = vand.u32 4294901760, %v18526_v42 }
 0x37f   :  { %v2742_v45 = vand.u32 4294901760, %v17275_v5  ;;  %v18547_v6 = vand.u32 4294901760, %v2818_v58 }
 0x380   :  { %v2739_v61 = vand.u32 4294901760, %v17276_v10  ;;  %19967 = vst [vmem:[#allocation39_spill] sm:$0xff] %v18538_v7  ;;  %v2838_v18 = vsub.f32 %v18526_v42, %v18538_v7 }
 0x381   :  { %v2874_v15 = vsub.f32 %v17275_v5, %v2742_v45 }
 0x382   :  { %v16301_v44 = vpack.c.bf16 %v2742_v45, %v2739_v61  ;;  %v2867_v28 = vsub.f32 %v17276_v10, %v2739_v61  ;;  %v18552_v45 = vand.u32 4294901760, %v18540_v31  ;;  %v18554_v61 = vand.u32 4294901760, %v2828_v2 }
 0x383   :  { %v2875_v35 = vand.u32 4294901760, %v2874_v15 }
 0x384   :  { %v2868_v52 = vand.u32 4294901760, %v2867_v28  ;;  %16302 = vmatprep.subr.bf16.mxu0 %v16301_v44  ;;  %v16309_v13 = vpack.c.bf16 %v2874_v15, %v2867_v28  ;;  %19970 = vst [vmem:[#allocation42_spill] sm:$0xff] %v18552_v45 }
 0x385   :  { %16304 = vmatpush3.bf16.msra.mxu0 %v16301_v44  ;;  %v2876_v5 = vsub.f32 %v2874_v15, %v2875_v35  ;;  %v18560_v15 = vand.u32 4294901760, %v2838_v18 }
 0x386   :  { %v2869_v10 = vsub.f32 %v2867_v28, %v2868_v52  ;;  %v16317_v20 = vpack.c.bf16 %v2875_v35, %v2868_v52  ;;  %v2858_v28 = vsub.f32 %v18540_v31, %v18552_v45 }
 0x387   :  { %v2877_v54 = vand.u32 4294901760, %v2876_v5 }
 0x388   :  { %14764 = vmatmul.mubr.f32.vlgmr.msra.gmra.mrb[10].mxu0 %v18547_v6  ;;  %v2870_v38 = vand.u32 4294901760, %v2869_v10  ;;  %v18568_v35 = vand.u32 4294901760, %v2858_v28 }
 0x389   :  { %14766 = vmatprep.mubr.f32.mxu0 %v18554_v61 }
 0x38a   :  { %v16305_v58 = vpack.c.bf16 %v2877_v54, %v2870_v38 }
 0x38c   :  { %14767 = vmatmul.mubr.f32.gmra.mrb[12].mxu0 %v18560_v15  ;;  %16306 = vmatprep.subr.bf16.mxu0 %v16305_v58 }
 0x38d   :  { %14769 = vmatprep.mubr.f32.mxu0 %v18564_v16  ;;  %16308 = vmatpush3.bf16.msra.mxu0 %v16305_v58 }
 0x38e   :  { %16310 = vmatprep.subr.bf16.mxu0 %v16309_v13 }
 0x390   :  { %14770 = vmatmul.mubr.f32.gmra.mrb[14].mxu0 %v18568_v35 }
 0x391   :  { %14776 = vmatprep.mubr.msk.f32.mxu0 %vm1407_vm4, %v18373_v27 }
 0x394   :  { %14777 = vmatmul.mubr.msk.f32.vlgmr.msra.gmra.mrb[10].mxu0 %vm1407_vm4, %v18494_v11 }
 0x395   :  { %16312 = vmatpush3.bf16.msra.mxu0 %v16309_v13  ;;  %14779 = vmatprep.mubr.msk.f32.mxu0 %vm1407_vm4, %v18497_v14 }
 0x396   :  { %16314 = vmatprep.subr.bf16.mxu0 %v16301_v44 }
 0x398   :  { %14780 = vmatmul.mubr.msk.f32.gmra.mrb[12].mxu0 %vm1407_vm4, %v18504_v3 }
 0x399   :  { %14782 = vmatprep.mubr.msk.f32.mxu0 %vm1407_vm4, %v18509_v4 }
 0x39c   :  { %14783 = vmatmul.mubr.msk.f32.gmra.mrb[14].mxu0 %vm1407_vm4, %v18519_v1 }
 0x39d   :  { %14789 = vmatprep.mubr.f32.mxu0 %v18403_v63 }
 0x3a0   :  { %14790 = vmatmul.mubr.f32.vlgmr.msra.gmra.mrb[10].mxu0 %v18512_v23 }
 0x3a1   :  { %16316 = vmatpush3.bf16.msra.mxu0 %v16301_v44  ;;  %14792 = vmatprep.mubr.f32.mxu0 %v18514_v57 }
 0x3a2   :  { %16318 = vmatprep.subr.bf16.mxu0 %v16317_v20 }
 0x3a4   :  { %14793 = vmatmul.mubr.f32.gmra.mrb[12].mxu0 %v18526_v42 }
 0x3a5   :  { %14795 = vmatprep.mubr.f32.mxu0 %v18531_v49 }
 0x3a8   :  { %14796 = vmatmul.mubr.f32.gmra.mrb[14].mxu0 %v18540_v31 }
 0x3a9   :  { %14802 = vmatprep.mubr.f32.mxu0 %v18435_v56 }
 0x3ac   :  { %14803 = vmatmul.mubr.f32.vlgmr.msra.gmra.mrb[10].mxu0 %v18524_v46 }
 0x3ad   :  { %16320 = vmatpush3.bf16.msra.mxu0 %v16317_v20  ;;  %14805 = vmatprep.mubr.f32.mxu0 %v18529_v47 }
 0x3ae   :  { %16322 = vmatprep.subr.bf16.mxu0 %v16301_v44 }
 0x3b0   :  { %14806 = vmatmul.mubr.f32.gmra.mrb[12].mxu0 %v18538_v7 }
 0x3b1   :  { %14808 = vmatprep.mubr.f32.mxu0 %v18545_v12 }
 0x3b4   :  { %14809 = vmatmul.mubr.f32.gmra.mrb[14].mxu0 %v18552_v45 }
 0x3b5   :  { %14815 = vmatprep.mubr.msk.f32.mxu0 %vm1407_vm4, %v18373_v27 }
 0x3b8   :  { %14816 = vmatmul.mubr.msk.f32.vlgmr.msra.gmra.mrb[10].mxu0 %vm1407_vm4, %v18494_v11 }
 0x3b9   :  { %16324 = vmatpush3.bf16.msra.mxu0 %v16301_v44  ;;  %14818 = vmatprep.mubr.msk.f32.mxu0 %vm1407_vm4, %v18497_v14 }
 0x3bc   :  { %14819 = vmatmul.mubr.msk.f32.gmra.mrb[12].mxu0 %vm1407_vm4, %v18504_v3 }
 0x3bd   :  { %14821 = vmatprep.mubr.msk.f32.mxu0 %vm1407_vm4, %v18509_v4 }
 0x3c0   :  { %14822 = vmatmul.mubr.msk.f32.gmra.mrb[14].mxu0 %vm1407_vm4, %v18519_v1 }
 0x3c1   :  { %14828 = vmatprep.mubr.msk.f32.mxu0 %vm1407_vm4, %v18373_v27 }
 0x3c4   :  { %14829 = vmatmul.mubr.msk.f32.vlgmr.msra.gmra.mrb[10].mxu0 %vm1407_vm4, %v18494_v11 }
 0x3c5   :  { %14831 = vmatprep.mubr.msk.f32.mxu0 %vm1407_vm4, %v18497_v14 }
 0x3c8   :  { %14832 = vmatmul.mubr.msk.f32.gmra.mrb[12].mxu0 %vm1407_vm4, %v18504_v3 }
 0x3c9   :  { %14834 = vmatprep.mubr.msk.f32.mxu0 %vm1407_vm4, %v18509_v4 }
 0x3cc   :  { %14835 = vmatmul.mubr.msk.f32.gmra.mrb[14].mxu0 %vm1407_vm4, %v18519_v1 }
 0x497   :  { %v14830_v38 = vpop.f32.mrb[10].mxu0 }
 0x498   :  { %17703 = vrcp.f32 %v14830_v38  ;;  %v3378_v39 = vpop.f32.mrb[11].mxu0 }
 0x499   :  { %17705 = vrcp.f32 %v3378_v39 }
 0x49b   :  { %v14833_v54 = vpop.f32.mrb[12].mxu0 }
 0x49c   :  { %17707 = vrcp.f32 %v14833_v54  ;;  %v3390_v44 = vpop.f32.mrb[13].mxu0 }
 0x49d   :  { %17709 = vrcp.f32 %v3390_v44 }
 0x49f   :  { %v14836_v2 = vpop.f32.mrb[14].mxu0 }
 0x4a0   :  { %17711 = vrcp.f32 %v14836_v2  ;;  %v3402_v52 = vpop.f32.mrb[15].mxu0 }
 0x4a1   :  { %17713 = vrcp.f32 %v3402_v52 }
 0x4a2   :  { %v17704_v13 = vpop.eup %17703 }
 0x4a3   :  { %v17706_v5 = vpop.eup %17705  ;;  %v3415_v18 = vmul.f32 %v17704_v13, %v18379_v24 }
 0x4a4   :  { %v3413_v10 = vmul.f32 %v17706_v5, %v18377_v60 }
 0x4a5   :  { %v3425_v20 = vmul.f32 %v3415_v18, %v18339_v21 }
 0x4a6   :  { %v17708_v58 = vpop.eup %17707  ;;  %v3424_v28 = vmul.f32 %v3413_v10, %v18341_v22 }
 0x4a7   :  { %v17710_v38 = vpop.eup %17709  ;;  %v3434_v39 = vand.u32 4294901760, %v3425_v20  ;;  %v3419_v54 = vmul.f32 %v17708_v58, %v18389_v41 }
 0x4a8   :  { %v3431_v44 = vand.u32 4294901760, %v3424_v28  ;;  %v3417_v2 = vmul.f32 %v17710_v38, %v18386_v53 }
 0x4a9   :  { %v3427_v52 = vmul.f32 %v3419_v54, %v18344_v32  ;;  %v3530_v45 = vsub.f32 %v3425_v20, %v3434_v39 }
 0x4aa   :  { %v17712_v12 = vpop.eup %17711  ;;  %v3426_v24 = vmul.f32 %v3417_v2, %v18346_v33  ;;  %v18627_v13 = vpack.c.bf16 %v3434_v39, %v3431_v44  ;;  %v3523_v60 = vsub.f32 %v3424_v28, %v3431_v44 }
 0x4ab   :  { %v17714_v21 = vpop.eup %17713  ;;  %v3440_v5 = vand.u32 4294901760, %v3427_v52  ;;  %v3423_v22 = vmul.f32 %v17712_v12, %v18405_v0  ;;  %v3531_v18 = vand.u32 4294901760, %v3530_v45 }
 0x4ac   :  { %v3437_v10 = vand.u32 4294901760, %v3426_v24  ;;  %v3421_v41 = vmul.f32 %v17714_v21, %v18395_v40  ;;  %16326 = vmatprep.subr.bf16.mxu1 %v18627_v13  ;;  %v3524_v53 = vand.u32 4294901760, %v3523_v60  ;;  %v16349_v58 = vpack.c.bf16 %v3530_v45, %v3523_v60 }
 0x4ad   :  { %v3429_v32 = vmul.f32 %v3423_v22, %v18349_v36  ;;  %16328 = vmatpush3.bf16.msra.mxu1 %v18627_v13  ;;  %v3532_v33 = vsub.f32 %v3530_v45, %v3531_v18  ;;  %v3544_v20 = vsub.f32 %v3427_v52, %v3440_v5 }
 0x4ae   :  { %v3428_v28 = vmul.f32 %v3421_v41, %v18355_v59  ;;  %v18635_v38 = vpack.c.bf16 %v3440_v5, %v3437_v10  ;;  %v3525_v39 = vsub.f32 %v3523_v60, %v3524_v53  ;;  %v3537_v0 = vsub.f32 %v3426_v24, %v3437_v10 }
 0x4af   :  { %v3446_v12 = vand.u32 4294901760, %v3429_v32  ;;  %v3533_v54 = vand.u32 4294901760, %v3532_v33  ;;  %v3545_v44 = vand.u32 4294901760, %v3544_v20  ;;  %v16373_v40 = vpack.c.bf16 %v3531_v18, %v3524_v53 }
 0x4b0   :  { %v3443_v2 = vand.u32 4294901760, %v3428_v28  ;;  %16330 = vmatprep.subr.bf16.mxu1 %v18635_v38  ;;  %v3526_v21 = vand.u32 4294901760, %v3525_v39  ;;  %v3538_v7 = vand.u32 4294901760, %v3537_v0  ;;  %v16353_v36 = vpack.c.bf16 %v3544_v20, %v3537_v0 }
 0x4b1   :  { %16332 = vmatpush3.bf16.msra.mxu1 %v18635_v38  ;;  %v3546_v45 = vsub.f32 %v3544_v20, %v3545_v44  ;;  %v3558_v52 = vsub.f32 %v3429_v32, %v3446_v12 }
 0x4b2   :  { %v16333_v22 = vpack.c.bf16 %v3446_v12, %v3443_v2  ;;  %v16337_v59 = vpack.c.bf16 %v3533_v54, %v3526_v21  ;;  %v3539_v5 = vsub.f32 %v3537_v0, %v3538_v7  ;;  %v3551_v41 = vsub.f32 %v3428_v28, %v3443_v2  ;;  %v3986_v28 = vld [vmem:[%s19814_s12 + $0x10] sm:$0xff] }
 0x4b3   :  { %v3547_v60 = vand.u32 4294901760, %v3546_v45  ;;  %v3559_v24 = vand.u32 4294901760, %v3558_v52  ;;  %v16377_v10 = vpack.c.bf16 %v3545_v44, %v3538_v7  ;;  %v4006_v0 = vand.u32 4294901760, %v3986_v28 }
 0x4b4   :  { %16334 = vmatprep.subr.bf16.mxu1 %v16333_v22  ;;  %v3540_v33 = vand.u32 4294901760, %v3539_v5  ;;  %v3552_v18 = vand.u32 4294901760, %v3551_v41  ;;  %v16357_v53 = vpack.c.bf16 %v3558_v52, %v3551_v41 }
 0x4b5   :  { %16336 = vmatpush3.bf16.msra.mxu1 %v16333_v22  ;;  %v3560_v47 = vsub.f32 %v3558_v52, %v3559_v24 }
 0x4b6   :  { %16338 = vmatprep.subr.bf16.mxu1 %v16337_v59  ;;  %v16341_v39 = vpack.c.bf16 %v3547_v60, %v3540_v33  ;;  %v3553_v46 = vsub.f32 %v3551_v41, %v3552_v18  ;;  %v16381_v56 = vpack.c.bf16 %v3559_v24, %v3552_v18 }
 0x4b7   :  { %v3561_v31 = vand.u32 4294901760, %v3560_v47 }
 0x4b8   :  { %14850 = vmatmul.mubr.f32.vlgmr.msra.gmra.mrb[8].mxu1 %v18450_v26  ;;  %v3554_v32 = vand.u32 4294901760, %v3553_v46  ;;  %v3985_v46 = vld [vmem:[%s19814_s12 + $0x8] sm:$0xff] }
 0x4b9   :  { %16340 = vmatpush3.bf16.msra.mxu1 %v16337_v59  ;;  %14864 = vmatprep.mubr.msk.f32.mxu1 %vm2159_vm11, %v18304_v43 }
 0x4ba   :  { %16342 = vmatprep.subr.bf16.mxu1 %v16341_v39  ;;  %v16345_v7 = vpack.c.bf16 %v3561_v31, %v3554_v32  ;;  %v4003_v31 = vand.u32 4294901760, %v3985_v46 }
 0x4bc   :  { %v4097_v20 = vsub.f32 %v3985_v46, %v4003_v31 }
 0x4bd   :  { %16344 = vmatpush3.bf16.msra.mxu1 %v16341_v39 }
 0x4be   :  { %16346 = vmatprep.subr.bf16.mxu1 %v16345_v7  ;;  %v4098_v44 = vand.u32 4294901760, %v4097_v20 }
 0x4c0   :  { %v4099_v21 = vsub.f32 %v4097_v20, %v4098_v44 }
 0x4c1   :  { %16348 = vmatpush3.bf16.msra.mxu1 %v16345_v7 }
 0x4c2   :  { %16350 = vmatprep.subr.bf16.mxu1 %v16349_v58 }
 0x4c4   :  { %14865 = vmatmul.mubr.msk.f32.vlgmr.msra.gmra.mrb[8].mxu1 %vm2159_vm11, %v18369_v62 }
 0x4c5   :  { %16352 = vmatpush3.bf16.msra.mxu1 %v16349_v58  ;;  %14879 = vmatprep.mubr.f32.mxu1 %v18310_v48 }
 0x4c6   :  { %16354 = vmatprep.subr.bf16.mxu1 %v16353_v36 }
 0x4c9   :  { %16356 = vmatpush3.bf16.msra.mxu1 %v16353_v36  ;;  %v4104_v36 = vsub.f32 %v3986_v28, %v4006_v0 }
 0x4ca   :  { %16358 = vmatprep.subr.bf16.mxu1 %v16357_v53 }
 0x4cb   :  { %v4105_v59 = vand.u32 4294901760, %v4104_v36 }
 0x4cd   :  { %16360 = vmatpush3.bf16.msra.mxu1 %v16357_v53  ;;  %v4106_v60 = vsub.f32 %v4104_v36, %v4105_v59 }
 0x4ce   :  { %16362 = vmatprep.subr.bf16.mxu1 %v18627_v13 }
 0x4d0   :  { %14880 = vmatmul.mubr.f32.vlgmr.msra.gmra.mrb[8].mxu1 %v18382_v8 }
 0x4d1   :  { %16364 = vmatpush3.bf16.msra.mxu1 %v18627_v13  ;;  %14894 = vmatprep.mubr.f32.mxu1 %v18313_v50 }
 0x4d2   :  { %16366 = vmatprep.subr.bf16.mxu1 %v18635_v38 }
 0x4d5   :  { %16368 = vmatpush3.bf16.msra.mxu1 %v18635_v38 }
 0x4d6   :  { %16370 = vmatprep.subr.bf16.mxu1 %v16333_v22 }
 0x4d9   :  { %16372 = vmatpush3.bf16.msra.mxu1 %v16333_v22 }
 0x4da   :  { %16374 = vmatprep.subr.bf16.mxu1 %v16373_v40 }
 0x4dc   :  { %14895 = vmatmul.mubr.f32.vlgmr.msra.gmra.mrb[8].mxu1 %v18413_v30 }
 0x4dd   :  { %16376 = vmatpush3.bf16.msra.mxu1 %v16373_v40  ;;  %14909 = vmatprep.mubr.msk.f32.mxu1 %vm2159_vm11, %v18304_v43 }
 0x4de   :  { %16378 = vmatprep.subr.bf16.mxu1 %v16377_v10 }
 0x4e1   :  { %16380 = vmatpush3.bf16.msra.mxu1 %v16377_v10  ;;  %v4107_v10 = vand.u32 4294901760, %v4106_v60 }
 0x4e2   :  { %16382 = vmatprep.subr.bf16.mxu1 %v16381_v56 }
 0x4e5   :  { %16384 = vmatpush3.bf16.msra.mxu1 %v16381_v56  ;;  %v3984_v56 = vld [vmem:[%s19814_s12] sm:$0xff] }
 0x4e6   :  { %16386 = vmatprep.subr.bf16.mxu1 %v18627_v13  ;;  %v4000_v47 = vand.u32 4294901760, %v3984_v56 }
 0x4e8   :  { %14910 = vmatmul.mubr.msk.f32.vlgmr.msra.gmra.mrb[8].mxu1 %vm2159_vm11, %v18369_v62  ;;  %v4090_v58 = vsub.f32 %v3984_v56, %v4000_v47  ;;  %v17787_v56 = vld [vmem:[%s19812_s6] ss:$0 sm:$0xff] }
 0x4e9   :  { %16388 = vmatpush3.bf16.msra.mxu1 %v18627_v13  ;;  %14924 = vmatprep.mubr.msk.f32.mxu1 %vm2159_vm11, %v18304_v43  ;;  %v18670_v13 = vpack.c.bf16 %v4003_v31, %v4000_v47  ;;  %v259_v46 = vadd.f32 nan, %v17787_v56 }
 0x4ea   :  { %16390 = vmatprep.subr.bf16.mxu1 %v18635_v38  ;;  %v4091_v54 = vand.u32 4294901760, %v4090_v58  ;;  %v16413_v53 = vpack.c.bf16 %v4097_v20, %v4090_v58 }
 0x4eb   :  { %16398 = vmatprep.subr.bf16.mxu0 %v18670_v13  ;;  %v345_v47 = vadd.f32 nan, %v259_v46  ;;  %v4577_v46 = vld [vmem:[%s19816_s16] sm:$0xff] }
 0x4ec   :  { %16400 = vmatpush3.bf16.msra.mxu0 %v18670_v13  ;;  %v4092_v2 = vsub.f32 %v4090_v58, %v4091_v54  ;;  %v16429_v32 = vpack.c.bf16 %v4098_v44, %v4091_v54 }
 0x4ed   :  { %16392 = vmatpush3.bf16.msra.mxu1 %v18635_v38  ;;  %v3987_v38 = vld [vmem:[%s19814_s12 + $0x18] sm:$0xff]  ;;  %v425_v31 = vadd.f32 nan, %v345_v47  ;;  %v4578_v47 = vld [vmem:[%s19816_s16 + $0x8] sm:$0xff] }
 0x4ee   :  { %16394 = vmatprep.subr.bf16.mxu1 %v16333_v22  ;;  %v4009_v12 = vand.u32 4294901760, %v3987_v38  ;;  %v4093_v52 = vand.u32 4294901760, %v4092_v2 }
 0x4ef   :  { %v506_v28 = vadd.f32 nan, %v425_v31  ;;  %v4597_v31 = vand.u32 4294901760, %v4577_v46 }
 0x4f0   :  { %v18680_v40 = vpack.c.bf16 %v4009_v12, %v4006_v0  ;;  %v4111_v45 = vsub.f32 %v3987_v38, %v4009_v12 }
 0x4f1   :  { %16396 = vmatpush3.bf16.msra.mxu1 %v16333_v22  ;;  %v4100_v22 = vand.u32 4294901760, %v4099_v21  ;;  %v588_v38 = vadd.f32 nan, %v506_v28  ;;  %v4600_v28 = vand.u32 4294901760, %v4578_v47 }
 0x4f2   :  { %16402 = vmatprep.subr.bf16.mxu0 %v18680_v40  ;;  %v4112_v5 = vand.u32 4294901760, %v4111_v45  ;;  %v16417_v39 = vpack.c.bf16 %v4111_v45, %v4104_v36 }
 0x4f3   :  { %16404 = vmatpush3.bf16.msra.mxu0 %v18680_v40  ;;  %v16405_v41 = vpack.c.bf16 %v4100_v22, %v4093_v52  ;;  %v672_v0 = vadd.f32 %v18189_v51, %v588_v38  ;;  %v666_v12 = vadd.f32 %v18194_v55, %v588_v38  ;;  %v13396_v55 = vld [vmem:[%s19815_s13] ss:$0 sm:$0xff]  ;;  %v18722_v38 = vsub.f32 %v4577_v46, %v4597_v31 }
 0x4f4   :  { %14925 = vmatmul.mubr.msk.f32.vlgmr.msra.gmra.mrb[8].mxu1 %vm2159_vm11, %v18369_v62  ;;  %v4113_v24 = vsub.f32 %v4111_v45, %v4112_v5  ;;  %v16433_v7 = vpack.c.bf16 %v4112_v5, %v4105_v59 }
 0x4f5   :  { %16406 = vmatprep.subr.bf16.mxu0 %v16405_v41 }
 0x4f6   :  { %v4114_v33 = vand.u32 4294901760, %v4113_v24 }
 0x4f8   :  { %v16409_v18 = vpack.c.bf16 %v4114_v33, %v4107_v10 }
 0x5c7   :  { %v14926_v2 = vpop.f32.mrb[8].mxu1 }
 0x5c8   :  { %v17277_v21 = vadd.f32 %v14926_v2, %v672_v0  ;;  %v3974_v52 = vpop.f32.mrb[9].mxu1  ;;  %v18724_v0 = vsub.f32 %v4578_v47, %v4600_v28  ;;  %v4579_v2 = vld [vmem:[%s19816_s16 + $0x10] sm:$0xff] }
 0x5c9   :  { %v17278_v58 = vadd.f32 %v3974_v52, %v666_v12  ;;  %v18726_v12 = vpack.c.bf16 %v4600_v28, %v4597_v31  ;;  %v4581_v52 = vld [vmem:[%s19816_s16 + $0x20] sm:$0xff] }
 0x5ca   :  { %v3997_v20 = vsel %vm2123_vm12, %v17277_v21, 0  ;;  %v4580_v21 = vld [vmem:[%s19816_s16 + $0x18] sm:$0xff] }
 0x5cb   :  { %v4078_v54 = vand.u32 4294901760, %v3997_v20  ;;  %v3994_v44 = vsel %vm2123_vm12, %v17278_v58, 0  ;;  %v19896_v58 = vand.u32 4294901760, %v18722_v38 }
 0x5cc   :  { %v4068_v36 = vand.u32 4294901760, %v3994_v44 }
 0x5cd   :  { %v4079_v45 = vsub.f32 %v3997_v20, %v4078_v54  ;;  %v19895_v20 = vand.u32 4294901760, %v18724_v0 }
 0x5ce   :  { %v4069_v22 = vsub.f32 %v3994_v44, %v4068_v36  ;;  %v4606_v44 = vand.u32 4294901760, %v4580_v21 }
 0x5cf   :  { %v4080_v59 = vand.u32 4294901760, %v4079_v45 }
 0x5d0   :  { %v4070_v5 = vand.u32 4294901760, %v4069_v22 }
 0x5d1   :  { %v4081_v60 = vsub.f32 %v4079_v45, %v4080_v59 }
 0x5d2   :  { %v4071_v24 = vsub.f32 %v4069_v22, %v4070_v5 }
 0x5d3   :  { %v4082_v51 = vand.u32 4294901760, %v4081_v60 }
 0x5d4   :  { %v4072_v10 = vand.u32 4294901760, %v4071_v24  ;;  %v4693_v24 = vsub.f32 %v18722_v38, %v19896_v58 }
 0x5d6   :  { %14935 = vmatprep.mubr.f32.mxu0 %v4072_v10  ;;  %v4700_v10 = vsub.f32 %v18724_v0, %v19895_v20 }
 0x5d7   :  { %14936 = vmatmul.mubr.f32.vlgmr.msra.gmra.mrb[16].mxu0 %v4082_v51 }
 0x5d8   :  { %16408 = vmatpush3.bf16.msra.mxu0 %v16405_v41  ;;  %14946 = vmatprep.mubr.f32.mxu0 %v4068_v36 }
 0x5d9   :  { %16410 = vmatprep.subr.bf16.mxu0 %v16409_v18 }
 0x5dc   :  { %16412 = vmatpush3.bf16.msra.mxu0 %v16409_v18 }
 0x5dd   :  { %16414 = vmatprep.subr.bf16.mxu0 %v16413_v53 }
 0x5df   :  { %14947 = vmatmul.mubr.f32.vlgmr.msra.gmra.mrb[16].mxu0 %v4078_v54 }
 0x5e0   :  { %16416 = vmatpush3.bf16.msra.mxu0 %v16413_v53  ;;  %14957 = vmatprep.mubr.f32.mxu0 %v4069_v22  ;;  %v4609_v22 = vand.u32 4294901760, %v4581_v52 }
 0x5e1   :  { %16418 = vmatprep.subr.bf16.mxu0 %v16417_v39 }
 0x5e4   :  { %16420 = vmatpush3.bf16.msra.mxu0 %v16417_v39 }
 0x5e5   :  { %16422 = vmatprep.subr.bf16.mxu0 %v18670_v13 }
 0x5e7   :  { %14958 = vmatmul.mubr.f32.vlgmr.msra.gmra.mrb[16].mxu0 %v4079_v45  ;;  %v4583_v45 = vld [vmem:[%s19816_s16 + $0x30] sm:$0xff] }
 0x5e8   :  { %16424 = vmatpush3.bf16.msra.mxu0 %v18670_v13  ;;  %14968 = vmatprep.mubr.f32.mxu0 %v4070_v5  ;;  %v4584_v5 = vld [vmem:[%s19816_s16 + $0x38] sm:$0xff]  ;;  %v4615_v60 = vand.u32 4294901760, %v4583_v45 }
 0x5e9   :  { %16426 = vmatprep.subr.bf16.mxu0 %v18680_v40 }
 0x5ea   :  { %v4733_v28 = vsub.f32 %v4583_v45, %v4615_v60 }
 0x5ec   :  { %16428 = vmatpush3.bf16.msra.mxu0 %v18680_v40 }
 0x5ed   :  { %16430 = vmatprep.subr.bf16.mxu0 %v16429_v32 }
 0x5ef   :  { %14969 = vmatmul.mubr.f32.vlgmr.msra.gmra.mrb[16].mxu0 %v4080_v59 }
 0x5f0   :  { %16432 = vmatpush3.bf16.msra.mxu0 %v16429_v32  ;;  %14979 = vmatprep.mubr.f32.mxu0 %v4068_v36 }
 0x5f1   :  { %16434 = vmatprep.subr.bf16.mxu0 %v16433_v7 }
 0x5f4   :  { %16436 = vmatpush3.bf16.msra.mxu0 %v16433_v7 }
 0x5f5   :  { %16438 = vmatprep.subr.bf16.mxu0 %v18670_v13 }
 0x5f7   :  { %14980 = vmatmul.mubr.f32.vlgmr.msra.gmra.mrb[16].mxu0 %v4078_v54 }
 0x5f8   :  { %16440 = vmatpush3.bf16.msra.mxu0 %v18670_v13  ;;  %14990 = vmatprep.mubr.f32.mxu0 %v4068_v36  ;;  %v4582_v36 = vld [vmem:[%s19816_s16 + $0x28] sm:$0xff] }
 0x5f9   :  { %16442 = vmatprep.subr.bf16.mxu0 %v18680_v40  ;;  %v4612_v59 = vand.u32 4294901760, %v4582_v36 }
 0x5fc   :  { %16444 = vmatpush3.bf16.msra.mxu0 %v18680_v40 }
 0x5fd   :  { %16446 = vmatprep.subr.bf16.mxu0 %v18726_v12 }
 0x5ff   :  { %14991 = vmatmul.mubr.f32.vlgmr.msra.gmra.mrb[16].mxu0 %v4078_v54  ;;  %v4603_v54 = vand.u32 4294901760, %v4579_v2 }
 0x600   :  { %16448 = vmatpush3.bf16.msra.mxu0 %v18726_v12 }
 0x601   :  { %v18755_v51 = vpack.c.bf16 %v4606_v44, %v4603_v54 }
 0x603   :  { %16450 = vmatprep.subr.bf16.mxu0 %v18755_v51 }
 0x604   :  { %16452 = vmatpush3.bf16.msra.mxu0 %v18755_v51 }
 0x6d2   :  { %v14992_v41 = vpop.f32.mrb[16].mxu0 }
 0x6d3   :  { %v18702_v33 = vadd.f32 %v14992_v41, %v13396_v55  ;;  %v4517_v18 = vpop.f32.mrb[17].mxu0  ;;  %v4712_v41 = vsub.f32 %v4580_v21, %v4606_v44 }
 0x6d4   :  { %v18704_v53 = vadd.f32 %v13396_v55, %v4517_v18  ;;  %v4705_v55 = vsub.f32 %v4579_v2, %v4603_v54  ;;  %v18758_v18 = vpack.c.bf16 %v4612_v59, %v4609_v22 }
 0x6d5   :  { %v4533_v13 = vsel %vm4529_vm3, %v18702_v33, 0.0  ;;  %v4540_v7 = vmul.f32 %v18702_v33, %v18702_v33  ;;  %v4713_v46 = vand.u32 4294901760, %v4712_v41 }
 0x6d6   :  { %4534 = vadd.xlane.f32.xlu1 %v4533_v13  ;;  %v4530_v39 = vsel %vm4529_vm3, %v18704_v53, 0.0  ;;  %v4539_v40 = vmul.f32 %v18704_v53, %v18704_v53  ;;  %v4719_v13 = vsub.f32 %v4581_v52, %v4609_v22  ;;  %16454 = vmatprep.subr.bf16.mxu0 %v18758_v18 }
 0x6d7   :  { %4531 = vadd.xlane.f32.xlu0 %v4530_v39  ;;  %v4544_v56 = vsel %vm4529_vm3, %v4540_v7, 0.0  ;;  %v4726_v39 = vsub.f32 %v4582_v36, %v4612_v59  ;;  %v4706_v7 = vand.u32 4294901760, %v4705_v55  ;;  %v4714_v21 = vsub.f32 %v4712_v41, %v4713_v46  ;;  %16456 = vmatpush3.bf16.msra.mxu0 %v18758_v18 }
 0x6d8   :  { %v4541_v32 = vsel %vm4529_vm3, %v4539_v40, 0.0  ;;  %v4694_v40 = vand.u32 4294901760, %v4693_v24  ;;  %v4720_v47 = vand.u32 4294901760, %v4719_v13  ;;  %v4734_v36 = vand.u32 4294901760, %v4733_v28 }
 0x6d9   :  { %v4727_v31 = vand.u32 4294901760, %v4726_v39  ;;  %v4707_v58 = vsub.f32 %v4705_v55, %v4706_v7  ;;  %v4715_v24 = vand.u32 4294901760, %v4714_v21  ;;  %v16481_v21 = vpack.c.bf16 %v4712_v41, %v4705_v55 }
 0x6da   :  { %v4721_v52 = vsub.f32 %v4719_v13, %v4720_v47 }
 0x6db   :  { %4542 = vadd.xlane.f32.xlu0 %v4541_v32  ;;  %v4701_v32 = vand.u32 4294901760, %v4700_v10  ;;  %v4728_v44 = vsub.f32 %v4726_v39, %v4727_v31  ;;  %v4708_v22 = vand.u32 4294901760, %v4707_v58 }
 0x6dc   :  { %v4722_v10 = vand.u32 4294901760, %v4721_v52  ;;  %v16485_v52 = vpack.c.bf16 %v4726_v39, %v4719_v13 }
 0x6dd   :  { %v16461_v20 = vpack.c.bf16 %v4701_v32, %v4694_v40  ;;  %v4729_v45 = vand.u32 4294901760, %v4728_v44  ;;  %v4735_v40 = vsub.f32 %v4733_v28, %v4734_v36 }
 0x6df   :  { %4545 = vadd.xlane.f32.xlu0 %v4544_v56  ;;  %v4618_v56 = vand.u32 4294901760, %v4584_v5  ;;  %16462 = vmatprep.subr.bf16.mxu1 %v16461_v20 }
 0x6e0   :  { %16464 = vmatpush3.bf16.msra.mxu1 %v16461_v20  ;;  %v16477_v20 = vpack.c.bf16 %v18724_v0, %v18722_v38 }
 0x6e1   :  { %v18761_v2 = vpack.c.bf16 %v4618_v56, %v4615_v60  ;;  %v4740_v54 = vsub.f32 %v4584_v5, %v4618_v56  ;;  %v16465_v5 = vpack.c.bf16 %v4715_v24, %v4708_v22  ;;  %v16469_v60 = vpack.c.bf16 %v4729_v45, %v4722_v10 }
 0x6e2   :  { %v4736_v56 = vand.u32 4294901760, %v4735_v40  ;;  %v19971_v22 = vand.u32 4294901760, %v18722_v38  ;;  %v19972_v24 = vand.u32 4294901760, %v18724_v0  ;;  %v18776_v45 = vpack.c.bf16 %v4713_v46, %v4706_v7 }
 0x6e3   :  { %v4741_v59 = vand.u32 4294901760, %v4740_v54  ;;  %16458 = vmatprep.subr.bf16.mxu0 %v18761_v2  ;;  %16466 = vmatprep.subr.bf16.mxu1 %v16465_v5  ;;  %v16489_v44 = vpack.c.bf16 %v4740_v54, %v4733_v28  ;;  %v18778_v40 = vpack.c.bf16 %v4727_v31, %v4720_v47 }
 0x6e4   :  { %16468 = vmatpush3.bf16.msra.mxu1 %v16465_v5  ;;  %16460 = vmatpush3.bf16.msra.mxu0 %v18761_v2  ;;  %v18774_v10 = vpack.c.bf16 %v19972_v24, %v19971_v22  ;;  %v13398_v24 = vld [vmem:[%s19818_s15] ss:$0 sm:$0xff] }
 0x6e5   :  { %v4742_v32 = vsub.f32 %v4740_v54, %v4741_v59  ;;  %16470 = vmatprep.subr.bf16.mxu1 %v16469_v60 }
 0x6e7   :  { %v4743_v49 = vand.u32 4294901760, %v4742_v32 }
 0x6e8   :  { %16472 = vmatpush3.bf16.msra.mxu1 %v16469_v60 }
 0x6e9   :  { %v16473_v58 = vpack.c.bf16 %v4743_v49, %v4736_v56  ;;  %v18780_v49 = vpack.c.bf16 %v4741_v59, %v4734_v36  ;;  %v13397_v36 = vld [vmem:[%s19817_s14] ss:$0 sm:$0xff] }
 0x6eb   :  { %16474 = vmatprep.subr.bf16.mxu1 %v16473_v58 }
 0x6ec   :  { %16476 = vmatpush3.bf16.msra.mxu1 %v16473_v58 }
 0x6ed   :  { %16478 = vmatprep.subr.bf16.mxu1 %v16477_v20 }
 0x763   :  { %v4535_v60 = vpop.xlane.xlu1 %4534 }
 0x764   :  { %v4532_v32 = vpop.xlane.xlu0 %4531  ;;  %v4538_v55 = vmul.f32 0.015625, %v4535_v60 }
 0x765   :  { %v4537_v5 = vmul.f32 0.015625, %v4532_v32 }
 0x766   :  { %v4550_v38 = vmul.f32 %v4538_v55, %v4538_v55  ;;  %v4556_v32 = vsub.f32 %v18702_v33, %v4538_v55 }
 0x767   :  { %v4549_v41 = vmul.f32 %v4537_v5, %v4537_v5  ;;  %v4555_v47 = vsub.f32 %v18704_v53, %v4537_v5 }
 0x768   :  { %v4543_v56 = vpop.xlane.xlu0 %4542 }
 0x769   :  { %v4547_v13 = vmul.f32 0.015625, %v4543_v56 }
 0x76b   :  { %v4551_v39 = vsub.f32 %v4547_v13, %v4549_v41 }
 0x76c   :  { %v4546_v28 = vpop.xlane.xlu0 %4545 }
 0x76d   :  { %v4553_v54 = vmax.f32 %v4551_v39, 0.0  ;;  %v4548_v0 = vmul.f32 0.015625, %v4546_v28 }
 0x76f   :  { %v4557_v58 = vadd.f32 1e-05, %v4553_v54  ;;  %v4552_v22 = vsub.f32 %v4548_v0, %v4550_v38 }
 0x771   :  { %17715 = vrsqrt.f32 %v4557_v58  ;;  %v4554_v7 = vmax.f32 %v4552_v22, 0.0 }
 0x773   :  { %v4558_v46 = vadd.f32 1e-05, %v4554_v7 }
 0x775   :  { %17717 = vrsqrt.f32 %v4558_v46 }
 0x77b   :  { %v17716_v31 = vpop.eup %17715 }
 0x77c   :  { %v4561_v59 = vmul.f32 %v17716_v31, %v4555_v47 }
 0x77e   :  { %v4567_v60 = vmul.f32 %v13397_v36, %v4561_v59 }
 0x77f   :  { %v17718_v56 = vpop.eup %17717 }
 0x780   :  { %v4573_v41 = vadd.f32 %v13398_v24, %v4567_v60  ;;  %v4562_v13 = vmul.f32 %v17718_v56, %v4556_v32  ;;  %v5911_v60 = vld [vmem:[%s19811_s11 + $0x1] sm:$0x1] }
 0x781   :  { %17659 = vpush %v5911_v60 }
 0x782   :  { %v4575_v39 = vmax.f32 %v4573_v41, 0.0  ;;  %v4568_v28 = vmul.f32 %v13397_v36, %v4562_v13 }
 0x784   :  { %v4591_v53 = vsel %vm4529_vm3, %v4575_v39, 0  ;;  %v4574_v5 = vadd.f32 %v13398_v24, %v4568_v28 }
 0x785   :  { %v4669_v38 = vand.u32 4294901760, %v4591_v53 }
 0x786   :  { %v4576_v54 = vmax.f32 %v4574_v5, 0.0 }
 0x787   :  { %15028 = vmatprep.mubr.f32.mxu1 %v4669_v38  ;;  %v4670_v0 = vsub.f32 %v4591_v53, %v4669_v38 }
 0x788   :  { %v4594_v58 = vsel %vm4529_vm3, %v4576_v54, 0 }
 0x789   :  { %v4679_v22 = vand.u32 4294901760, %v4594_v58  ;;  %v4671_v7 = vand.u32 4294901760, %v4670_v0 }
 0x78b   :  { %v4680_v46 = vsub.f32 %v4594_v58, %v4679_v22  ;;  %15029 = vmatmul.mubr.f32.vlgmr.msra.gmra.mrb[10].mxu1 %v4679_v22  ;;  %v4672_v33 = vsub.f32 %v4670_v0, %v4671_v7 }
 0x78c   :  { %16480 = vmatpush3.bf16.msra.mxu1 %v16477_v20  ;;  %15047 = vmatprep.mubr.f32.mxu1 %v4670_v0 }
 0x78d   :  { %16482 = vmatprep.subr.bf16.mxu1 %v16481_v21  ;;  %v4673_v55 = vand.u32 4294901760, %v4672_v33  ;;  %v4681_v47 = vand.u32 4294901760, %v4680_v46 }
 0x78f   :  { %15009 = vmatprep.mubr.f32.mxu0 %v4673_v55  ;;  %v4682_v31 = vsub.f32 %v4680_v46, %v4681_v47 }
 0x790   :  { %16484 = vmatpush3.bf16.msra.mxu1 %v16481_v21 }
 0x791   :  { %16486 = vmatprep.subr.bf16.mxu1 %v16485_v52  ;;  %v4683_v36 = vand.u32 4294901760, %v4682_v31 }
 0x793   :  { %15010 = vmatmul.mubr.f32.vlgmr.msra.gmra.mrb[18].mxu0 %v4683_v36 }
 0x794   :  { %16488 = vmatpush3.bf16.msra.mxu1 %v16485_v52  ;;  %15111 = vmatprep.mubr.f32.mxu0 %v18150_v25 }
 0x795   :  { %16490 = vmatprep.subr.bf16.mxu1 %v16489_v44 }
 0x798   :  { %16492 = vmatpush3.bf16.msra.mxu1 %v16489_v44 }
 0x799   :  { %16494 = vmatprep.subr.bf16.mxu1 %v18726_v12 }
 0x79b   :  { %15048 = vmatmul.mubr.f32.vlgmr.msra.gmra.mrb[10].mxu1 %v4680_v46 }
 0x79c   :  { %16496 = vmatpush3.bf16.msra.mxu1 %v18726_v12  ;;  %15066 = vmatprep.mubr.f32.mxu1 %v4671_v7 }
 0x79d   :  { %16498 = vmatprep.subr.bf16.mxu1 %v18755_v51 }
 0x7a0   :  { %16500 = vmatpush3.bf16.msra.mxu1 %v18755_v51 }
 0x7a1   :  { %16502 = vmatprep.subr.bf16.mxu1 %v18758_v18 }
 0x7a4   :  { %16504 = vmatpush3.bf16.msra.mxu1 %v18758_v18 }
 0x7a5   :  { %16506 = vmatprep.subr.bf16.mxu1 %v18761_v2 }
 0x7a8   :  { %16508 = vmatpush3.bf16.msra.mxu1 %v18761_v2 }
 0x7a9   :  { %16510 = vmatprep.subr.bf16.mxu1 %v18774_v10 }
 0x7ab   :  { %15067 = vmatmul.mubr.f32.vlgmr.msra.gmra.mrb[10].mxu1 %v4681_v47 }
 0x7ac   :  { %16512 = vmatpush3.bf16.msra.mxu1 %v18774_v10  ;;  %15085 = vmatprep.mubr.f32.mxu1 %v4669_v38 }
 0x7ad   :  { %16514 = vmatprep.subr.bf16.mxu1 %v18776_v45 }
 0x7b0   :  { %16516 = vmatpush3.bf16.msra.mxu1 %v18776_v45 }
 0x7b1   :  { %16518 = vmatprep.subr.bf16.mxu1 %v18778_v40 }
 0x7b2   :  { %s17660_s5 = spop %17659 }
 0x7b4   :  { %16520 = vmatpush3.bf16.msra.mxu1 %v18778_v40 }
 0x7b5   :  { %16522 = vmatprep.subr.bf16.mxu1 %v18780_v49 }
 0x7b8   :  { %16524 = vmatpush3.bf16.msra.mxu1 %v18780_v49 }
 0x7b9   :  { %16526 = vmatprep.subr.bf16.mxu1 %v18726_v12 }
 0x7bb   :  { %15086 = vmatmul.mubr.f32.vlgmr.msra.gmra.mrb[10].mxu1 %v4679_v22 }
 0x7bc   :  { %16528 = vmatpush3.bf16.msra.mxu1 %v18726_v12  ;;  %15104 = vmatprep.mubr.f32.mxu1 %v4669_v38  ;;  %v13399_v12 = vld [vmem:[%s19819_s17] ss:$0 sm:$0xff] }
 0x7bd   :  { %16530 = vmatprep.subr.bf16.mxu1 %v18755_v51 }
 0x7c0   :  { %16532 = vmatpush3.bf16.msra.mxu1 %v18755_v51 }
 0x7c1   :  { %16534 = vmatprep.subr.bf16.mxu1 %v18758_v18 }
 0x7c4   :  { %16536 = vmatpush3.bf16.msra.mxu1 %v18758_v18 }
 0x7c5   :  { %16538 = vmatprep.subr.bf16.mxu1 %v18761_v2 }
 0x7c8   :  { %16540 = vmatpush3.bf16.msra.mxu1 %v18761_v2 }
 0x7cb   :  { %15105 = vmatmul.mubr.f32.vlgmr.msra.gmra.mrb[10].mxu1 %v4679_v22 }
 0x7cc   :  { %15279 = vmatprep.mubr.f32.mxu1 %v18453_v37 }
 0x866   :  { %v15011_v20 = vpop.f32.mrb[18].mxu0 }
 0x867   :  { %v4675_v21 = vpop.f32.mrb[19].mxu0  ;;  %v4686_v52 = vadd.f32 %v15011_v20, %v13399_v12  ;;  %v13400_v20 = vld [vmem:[%s19820_s9 + $0x1] ss:$0 sm:$0xff] }
 0x868   :  { %v4676_v44 = vadd.f32 %v13399_v12, %v4675_v21 }
 0x89e   :  { %v15106_v51 = vpop.f32.mrb[10].mxu1 }
 0x89f   :  { %v18821_v10 = vadd.f32 %v15106_v51, %v4686_v52  ;;  %v5166_v45 = vpop.f32.mrb[11].mxu1  ;;  %v13401_v52 = vld [vmem:[%s19821_s10 + $0x1] ss:$0 sm:$0xff] }
 0x8a0   :  { %v18823_v18 = vadd.f32 %v5166_v45, %v4676_v44 }
 0x8a1   :  { %19973 = vst [vmem:[#allocation43_spill] sm:$0xff] %v18821_v10  ;;  %v5181_v2 = vsel %vm2123_vm12, %v18821_v10, 0.0  ;;  %v5188_v40 = vmul.f32 %v18821_v10, %v18821_v10 }
 0x8a2   :  { %19974 = vst [vmem:[#allocation44_spill] sm:$0xff] %v18823_v18  ;;  %5182 = vadd.xlane.f32.xlu0 %v5181_v2  ;;  %v5178_v49 = vsel %vm2123_vm12, %v18823_v18, 0.0  ;;  %v5187_v59 = vmul.f32 %v18823_v18, %v18823_v18 }
 0x8a3   :  { %5179 = vadd.xlane.f32.xlu1 %v5178_v49  ;;  %v5192_v24 = vsel %vm2123_vm12, %v5188_v40, 0.0 }
 0x8a4   :  { %v5189_v32 = vsel %vm2123_vm12, %v5187_v59, 0.0 }
 0x8a6   :  { %5193 = vadd.xlane.f32.xlu0 %v5192_v24 }
 0x8a7   :  { %5190 = vadd.xlane.f32.xlu1 %v5189_v32 }
 0x92f   :  { %v5183_v56 = vpop.xlane.xlu0 %5182 }
 0x930   :  { %v5186_v41 = vmul.f32 0.03125, %v5183_v56  ;;  %v5180_v13 = vpop.xlane.xlu1 %5179 }
 0x931   :  { %v5185_v39 = vmul.f32 0.03125, %v5180_v13 }
 0x932   :  { %v5198_v53 = vmul.f32 %v5186_v41, %v5186_v41  ;;  %v5204_v47 = vsub.f32 %v18821_v10, %v5186_v41 }
 0x933   :  { %v5194_v28 = vpop.xlane.xlu0 %5193  ;;  %v5197_v54 = vmul.f32 %v5185_v39, %v5185_v39  ;;  %v5203_v36 = vsub.f32 %v18823_v18, %v5185_v39 }
 0x934   :  { %v5196_v5 = vmul.f32 0.03125, %v5194_v28  ;;  %v5191_v38 = vpop.xlane.xlu1 %5190 }
 0x935   :  { %v5195_v0 = vmul.f32 0.03125, %v5191_v38 }
 0x936   :  { %v5200_v58 = vsub.f32 %v5196_v5, %v5198_v53 }
 0x937   :  { %v5199_v22 = vsub.f32 %v5195_v0, %v5197_v54 }
 0x938   :  { %v5202_v7 = vmax.f32 %v5200_v58, 0.0  ;;  %v19976_v58 = vld [vmem:[#allocation2_spill] sm:$0xff] }
 0x939   :  { %v5201_v46 = vmax.f32 %v5199_v22, 0.0  ;;  %v19977_v22 = vld [vmem:[#allocation6_spill] sm:$0xff] }
 0x93a   :  { %v5206_v33 = vadd.f32 1e-05, %v5202_v7  ;;  %v19978_v7 = vld [vmem:[#allocation7_spill] sm:$0xff] }
 0x93b   :  { %v5205_v55 = vadd.f32 1e-05, %v5201_v46  ;;  %v19979_v46 = vld [vmem:[#allocation8_spill] sm:$0xff] }
 0x93c   :  { %17719 = vrsqrt.f32 %v5206_v33  ;;  %v19980_v33 = vld [vmem:[#allocation9_spill] sm:$0xff] }
 0x93d   :  { %17721 = vrsqrt.f32 %v5205_v55  ;;  %v19981_v55 = vld [vmem:[#allocation12_spill] sm:$0xff] }
 0x946   :  { %v17720_v31 = vpop.eup %17719 }
 0x947   :  { %v17722_v21 = vpop.eup %17721  ;;  %v5210_v12 = vmul.f32 %v17720_v31, %v5204_v47  ;;  %v19982_v47 = vld [vmem:[#allocation3_spill] sm:$0xff]  ;;  %v19983_v31 = vld [vmem:[#allocation10_spill] sm:$0xff] }
 0x948   :  { %v5209_v44 = vmul.f32 %v17722_v21, %v5203_v36  ;;  %v19985_v21 = vld [vmem:[#allocation14_spill] sm:$0xff] }
 0x949   :  { %v5216_v51 = vmul.f32 %v13400_v20, %v5210_v12  ;;  %v19986_v12 = vld [vmem:[#allocation16_spill] sm:$0xff] }
 0x94a   :  { %v5215_v45 = vmul.f32 %v13400_v20, %v5209_v44  ;;  %v19984_v20 = vld [vmem:[#allocation11_spill] sm:$0xff]  ;;  %v19988_v44 = vld [vmem:[#allocation4_spill] sm:$0xff] }
 0x94b   :  { %v5222_v2 = vadd.f32 %v13401_v52, %v5216_v51  ;;  %v19989_v51 = vld [vmem:[#allocation13_spill] sm:$0xff] }
 0x94c   :  { %v5221_v40 = vadd.f32 %v13401_v52, %v5215_v45  ;;  %v19987_v52 = vld [vmem:[#allocation18_spill] sm:$0xff]  ;;  %v19990_v45 = vld [vmem:[#allocation15_spill] sm:$0xff] }
 0x94d   :  { %v18846_v49 = vmax.f32 %v5222_v2, 0.0  ;;  %v19991_v2 = vld [vmem:[#allocation17_spill] sm:$0xff] }
 0x94e   :  { %v18848_v59 = vmax.f32 %v5221_v40, 0.0  ;;  %v19992_v40 = vld [vmem:[#allocation19_spill] sm:$0xff] }
 0x94f   :  { %v5229_v24 = vand.u32 4294901760, %v18846_v49 }
 0x950   :  { %19975 = vst [vmem:[#allocation45_spill] sm:$0xff] %v18848_v59  ;;  %v5226_v32 = vand.u32 4294901760, %v18848_v59 }
 0x951   :  { %v5361_v60 = vsub.f32 %v18846_v49, %v5229_v24 }
 0x952   :  { %v16541_v56 = vpack.c.bf16 %v5229_v24, %v5226_v32  ;;  %v5354_v41 = vsub.f32 %v18848_v59, %v5226_v32  ;;  %v19993_v24 = vld [vmem:[#allocation21_spill] sm:$0xff]  ;;  %v19994_v32 = vld [vmem:[#allocation26_spill] sm:$0xff] }
 0x953   :  { %v5362_v13 = vand.u32 4294901760, %v5361_v60 }
 0x954   :  { %16542 = vmatprep.subr.bf16.mxu0 %v16541_v56  ;;  %v5355_v39 = vand.u32 4294901760, %v5354_v41  ;;  %v16549_v0 = vpack.c.bf16 %v5361_v60, %v5354_v41 }
 0x955   :  { %16544 = vmatpush3.bf16.msra.mxu0 %v16541_v56  ;;  %v5363_v28 = vsub.f32 %v5361_v60, %v5362_v13 }
 0x956   :  { %v5356_v53 = vsub.f32 %v5354_v41, %v5355_v39  ;;  %v16557_v36 = vpack.c.bf16 %v5362_v13, %v5355_v39  ;;  %v19996_v39 = vld [vmem:[#allocation28_spill] sm:$0xff] }
 0x957   :  { %v5364_v5 = vand.u32 4294901760, %v5363_v28 }
 0x958   :  { %15112 = vmatmul.mubr.f32.vlgmr.msra.gmra.mrb[20].mxu0 %v18225_v19  ;;  %v5357_v38 = vand.u32 4294901760, %v5356_v53 }
 0x959   :  { %15114 = vmatprep.mubr.f32.mxu0 %v18232_v29 }
 0x95a   :  { %v16545_v54 = vpack.c.bf16 %v5364_v5, %v5357_v38 }
 0x95c   :  { %15115 = vmatmul.mubr.f32.gmra.mrb[22].mxu0 %v18238_v34  ;;  %16546 = vmatprep.subr.bf16.mxu0 %v16545_v54 }
 0x95d   :  { %15117 = vmatprep.mubr.f32.mxu0 %v18242_v17  ;;  %16548 = vmatpush3.bf16.msra.mxu0 %v16545_v54  ;;  %v19997_v54 = vld [vmem:[#allocation29_spill] sm:$0xff] }
 0x95e   :  { %16550 = vmatprep.subr.bf16.mxu0 %v16549_v0 }
 0x960   :  { %15118 = vmatmul.mubr.f32.gmra.mrb[24].mxu0 %v18246_v9 }
 0x961   :  { %15124 = vmatprep.mubr.msk.f32.mxu0 %vm1407_vm4, %v19976_v58 }
 0x964   :  { %15125 = vmatmul.mubr.msk.f32.vlgmr.msra.gmra.mrb[20].mxu0 %vm1407_vm4, %v19977_v22 }
 0x965   :  { %16552 = vmatpush3.bf16.msra.mxu0 %v16549_v0  ;;  %15127 = vmatprep.mubr.msk.f32.mxu0 %vm1407_vm4, %v19978_v7 }
 0x966   :  { %16554 = vmatprep.subr.bf16.mxu0 %v16541_v56 }
 0x968   :  { %15128 = vmatmul.mubr.msk.f32.gmra.mrb[22].mxu0 %vm1407_vm4, %v19979_v46 }
 0x969   :  { %15130 = vmatprep.mubr.msk.f32.mxu0 %vm1407_vm4, %v19980_v33 }
 0x96c   :  { %15131 = vmatmul.mubr.msk.f32.gmra.mrb[24].mxu0 %vm1407_vm4, %v19981_v55 }
 0x96d   :  { %15137 = vmatprep.mubr.f32.mxu0 %v19982_v47 }
 0x970   :  { %15138 = vmatmul.mubr.f32.vlgmr.msra.gmra.mrb[20].mxu0 %v19983_v31 }
 0x971   :  { %16556 = vmatpush3.bf16.msra.mxu0 %v16541_v56  ;;  %15140 = vmatprep.mubr.f32.mxu0 %v19984_v20 }
 0x972   :  { %16558 = vmatprep.subr.bf16.mxu0 %v16557_v36 }
 0x974   :  { %15141 = vmatmul.mubr.f32.gmra.mrb[22].mxu0 %v19985_v21 }
 0x975   :  { %15143 = vmatprep.mubr.f32.mxu0 %v19986_v12 }
 0x978   :  { %15144 = vmatmul.mubr.f32.gmra.mrb[24].mxu0 %v19987_v52 }
 0x979   :  { %15150 = vmatprep.mubr.f32.mxu0 %v19988_v44 }
 0x97c   :  { %15151 = vmatmul.mubr.f32.vlgmr.msra.gmra.mrb[20].mxu0 %v19989_v51 }
 0x97d   :  { %16560 = vmatpush3.bf16.msra.mxu0 %v16557_v36  ;;  %15153 = vmatprep.mubr.f32.mxu0 %v19990_v45 }
 0x97e   :  { %16562 = vmatprep.subr.bf16.mxu0 %v16541_v56 }
 0x980   :  { %15154 = vmatmul.mubr.f32.gmra.mrb[22].mxu0 %v19991_v2 }
 0x981   :  { %15156 = vmatprep.mubr.f32.mxu0 %v19992_v40 }
 0x984   :  { %15157 = vmatmul.mubr.f32.gmra.mrb[24].mxu0 %v19993_v24  ;;  %v19998_v24 = vld [vmem:[#allocation30_spill] sm:$0xff] }
 0x985   :  { %15163 = vmatprep.mubr.msk.f32.mxu0 %vm1407_vm4, %v19976_v58 }
 0x988   :  { %15164 = vmatmul.mubr.msk.f32.vlgmr.msra.gmra.mrb[20].mxu0 %vm1407_vm4, %v19977_v22 }
 0x989   :  { %16564 = vmatpush3.bf16.msra.mxu0 %v16541_v56  ;;  %15166 = vmatprep.mubr.msk.f32.mxu0 %vm1407_vm4, %v19978_v7  ;;  %v19995_v56 = vld [vmem:[#allocation27_spill] sm:$0xff] }
 0x98c   :  { %15167 = vmatmul.mubr.msk.f32.gmra.mrb[22].mxu0 %vm1407_vm4, %v19979_v46 }
 0x98d   :  { %15169 = vmatprep.mubr.msk.f32.mxu0 %vm1407_vm4, %v19980_v33 }
 0x990   :  { %15170 = vmatmul.mubr.msk.f32.gmra.mrb[24].mxu0 %vm1407_vm4, %v19981_v55 }
 0x991   :  { %15176 = vmatprep.mubr.msk.f32.mxu0 %vm1407_vm4, %v19976_v58 }
 0x994   :  { %15177 = vmatmul.mubr.msk.f32.vlgmr.msra.gmra.mrb[20].mxu0 %vm1407_vm4, %v19977_v22 }
 0x995   :  { %15179 = vmatprep.mubr.msk.f32.mxu0 %vm1407_vm4, %v19978_v7 }
 0x998   :  { %15180 = vmatmul.mubr.msk.f32.gmra.mrb[22].mxu0 %vm1407_vm4, %v19979_v46 }
 0x999   :  { %15182 = vmatprep.mubr.msk.f32.mxu0 %vm1407_vm4, %v19980_v33 }
 0x99c   :  { %15183 = vmatmul.mubr.msk.f32.gmra.mrb[24].mxu0 %vm1407_vm4, %v19981_v55 }
 0x99d   :  { %15197 = vmatprep.mubr.f32.mxu0 %v19994_v32 }
 0xa67   :  { %v15178_v60 = vpop.f32.mrb[20].mxu0 }
 0xa68   :  { %v17285_v41 = vadd.f32 %v19995_v56, %v15178_v60  ;;  %v5865_v13 = vpop.f32.mrb[21].mxu0  ;;  %v19999_v60 = vld [vmem:[#allocation31_spill] sm:$0xff] }
 0xa69   :  { %v17286_v28 = vadd.f32 %v19996_v39, %v5865_v13 }
 0xa6a   :  { %v5900_v5 = vmax.f32 %v17285_v41, 0.0 }
 0xa6b   :  { %v15181_v53 = vpop.f32.mrb[22].mxu0  ;;  %v5899_v38 = vmax.f32 %v17286_v28, 0.0  ;;  %v5914_v28 = vstv %s17660_s5 }
 0xa6c   :  { %v17287_v0 = vadd.f32 %v19997_v54, %v15181_v53  ;;  %v5877_v36 = vpop.f32.mrb[23].mxu0  ;;  %v18912_v44 = vadd.f32 1e-07, %v5900_v5  ;;  %v20000_v53 = vld [vmem:[#allocation32_spill] sm:$0xff] }
 0xa6d   :  { %v17288_v40 = vadd.f32 %v19998_v24, %v5877_v36  ;;  %v18914_v52 = vadd.f32 1e-07, %v5899_v38 }
 0xa6e   :  { %v5902_v2 = vmax.f32 %v17287_v0, 0.0 }
 0xa6f   :  { %v5901_v45 = vmax.f32 %v17288_v40, 0.0  ;;  %v15184_v51 = vpop.f32.mrb[24].mxu0  ;;  %v5917_v40 = vmul.f32 %v5914_v28, %v18912_v44  ;;  %v5916_v5 = vmul.f32 %v5914_v28, %v18914_v52 }
 0xa70   :  { %v17289_v56 = vadd.f32 %v19999_v60, %v15184_v51  ;;  %v5889_v12 = vpop.f32.mrb[25].mxu0  ;;  %v18917_v13 = vadd.f32 1e-07, %v5902_v2 }
 0xa71   :  { %v18919_v41 = vadd.f32 1e-07, %v5901_v45  ;;  %v17290_v54 = vadd.f32 %v20000_v53, %v5889_v12  ;;  %v5923_v12 = vsel %vm2123_vm12, %v5917_v40, -inf }
 0xa72   :  { %v5904_v39 = vmax.f32 %v17289_v56, 0.0  ;;  %v5919_v51 = vmul.f32 %v5914_v28, %v18917_v13 }
 0xa73   :  { %v5903_v36 = vmax.f32 %v17290_v54, 0.0  ;;  %v5918_v38 = vmul.f32 %v5914_v28, %v18919_v41 }
 0xa74   :  { %v18922_v0 = vadd.f32 1e-07, %v5904_v39  ;;  %v5922_v39 = vsel %vm2123_vm12, %v5916_v5, -inf  ;;  %v5925_v53 = vsel %vm2123_vm12, %v5919_v51, -inf }
 0xa75   :  { %v18928_v60 = vadd.f32 1e-07, %v5903_v36  ;;  %v5924_v54 = vsel %vm2123_vm12, %v5918_v38, -inf }
 0xa76   :  { %v5921_v45 = vmul.f32 %v5914_v28, %v18922_v0  ;;  %v5931_v31 = vmax.f32 %v5924_v54, %v5925_v53 }
 0xa77   :  { %v5920_v2 = vmul.f32 %v5914_v28, %v18928_v60 }
 0xa78   :  { %v5928_v56 = vsel %vm2123_vm12, %v5921_v45, -inf }
 0xa79   :  { %v5929_v24 = vmax.f32 %v5923_v12, %v5928_v56  ;;  %v5926_v21 = vsel %vm2123_vm12, %v5920_v2, -inf }
 0xa7a   :  { %v5927_v20 = vmax.f32 %v5922_v39, %v5926_v21 }
 0xa7c   :  { %v5930_v36 = vmax.f32 %v5927_v20, %v5929_v24 }
 0xa7e   :  { %v5932_v47 = vmax.f32 %v5930_v36, %v5931_v31 }
 0xa80   :  { %v5933_v55 = vrot.slane %v5932_v47, 4 }
 0xa82   :  { %v5934_v33 = vmax.f32 %v5932_v47, %v5933_v55 }
 0xa84   :  { %v5935_v28 = vrot.slane %v5934_v33, 2 }
 0xa86   :  { %v5936_v46 = vmax.f32 %v5934_v33, %v5935_v28 }
 0xa88   :  { %v5937_v7 = vrot.slane %v5936_v46, 1 }
 0xa8a   :  { %v5938_v22 = vmax.f32 %v5936_v46, %v5937_v7 }
 0xa8c   :  { %v5939_v58 = vsub.f32 %v5916_v5, %v5938_v22  ;;  %v5940_v9 = vsub.f32 %v5917_v40, %v5938_v22  ;;  %v5941_v17 = vsub.f32 %v5918_v38, %v5938_v22  ;;  %v5942_v34 = vsub.f32 %v5919_v51, %v5938_v22 }
 0xa8d   :  { %v5943_v29 = vsub.f32 %v5920_v2, %v5938_v22  ;;  %v5944_v19 = vsub.f32 %v5921_v45, %v5938_v22 }
 0xa8e   :  { %v5945_v18 = vmul.f32 1.442695, %v5939_v58  ;;  %v5947_v12 = vmul.f32 1.442695, %v5940_v9  ;;  %v5949_v56 = vmul.f32 1.442695, %v5941_v17 }
 0xa8f   :  { %v5951_v10 = vmul.f32 1.442695, %v5942_v34  ;;  %v5953_v20 = vmul.f32 1.442695, %v5943_v29  ;;  %v5955_v31 = vmul.f32 1.442695, %v5944_v19 }
 0xa90   :  { %17723 = vpow2.f32 %v5945_v18 }
 0xa91   :  { %17725 = vpow2.f32 %v5947_v12 }
 0xa92   :  { %17727 = vpow2.f32 %v5949_v56 }
 0xa93   :  { %17729 = vpow2.f32 %v5951_v10 }
 0xa94   :  { %17731 = vpow2.f32 %v5953_v20 }
 0xa95   :  { %17733 = vpow2.f32 %v5955_v31 }
 0xa9a   :  { %v18938_v33 = vpop.eup %17723 }
 0xa9b   :  { %v18940_v7 = vpop.eup %17725  ;;  %v5958_v46 = vand.u32 4294901760, %v18938_v33 }
 0xa9c   :  { %v18943_v55 = vpop.eup %17727  ;;  %v5961_v9 = vand.u32 4294901760, %v18940_v7 }
 0xa9d   :  { %v18946_v17 = vpop.eup %17729  ;;  %v5964_v29 = vand.u32 4294901760, %v18943_v55  ;;  %v18950_v19 = vsub.f32 %v18938_v33, %v5958_v46 }
 0xa9e   :  { %v18952_v34 = vpop.eup %17731  ;;  %v18954_v10 = vpack.c.bf16 %v5961_v9, %v5958_v46  ;;  %v5967_v18 = vand.u32 4294901760, %v18946_v17  ;;  %v18958_v58 = vsub.f32 %v18940_v7, %v5961_v9 }
 0xa9f   :  { %v18960_v22 = vpop.eup %17733  ;;  %v5970_v47 = vand.u32 4294901760, %v18952_v34  ;;  %v6051_v21 = vand.u32 4294901760, %v18950_v19  ;;  %v18965_v24 = vsub.f32 %v18943_v55, %v5964_v29 }
 0xaa0   :  { %16566 = vmatprep.subr.bf16.mxu0 %v18954_v10  ;;  %v18968_v53 = vpack.c.bf16 %v5967_v18, %v5964_v29  ;;  %v5973_v40 = vand.u32 4294901760, %v18960_v22  ;;  %v6058_v5 = vand.u32 4294901760, %v18958_v58  ;;  %v6071_v38 = vsub.f32 %v18946_v17, %v5967_v18 }
 0xaa1   :  { %16568 = vmatpush3.bf16.msra.mxu0 %v18954_v10  ;;  %v6052_v51 = vsub.f32 %v18950_v19, %v6051_v21  ;;  %v6065_v45 = vand.u32 4294901760, %v18965_v24  ;;  %v6078_v2 = vsub.f32 %v18952_v34, %v5970_v47 }
 0xaa2   :  { %16570 = vmatprep.subr.bf16.mxu0 %v18968_v53  ;;  %v6059_v39 = vsub.f32 %v18958_v58, %v6058_v5  ;;  %v6072_v54 = vand.u32 4294901760, %v6071_v38  ;;  %v6085_v36 = vsub.f32 %v18960_v22, %v5973_v40  ;;  %v18980_v28 = vpack.c.bf16 %v5973_v40, %v5970_v47 }
 0xaa3   :  { %v6053_v12 = vand.u32 4294901760, %v6052_v51  ;;  %v6066_v56 = vsub.f32 %v18965_v24, %v6065_v45  ;;  %v6079_v46 = vand.u32 4294901760, %v6078_v2 }
 0xaa4   :  { %v6060_v20 = vand.u32 4294901760, %v6059_v39  ;;  %v6073_v31 = vsub.f32 %v6071_v38, %v6072_v54  ;;  %v6086_v9 = vand.u32 4294901760, %v6085_v36 }
 0xaa5   :  { %16572 = vmatpush3.bf16.msra.mxu0 %v18968_v53  ;;  %v6067_v29 = vand.u32 4294901760, %v6066_v56  ;;  %v6080_v25 = vsub.f32 %v6078_v2, %v6079_v46 }
 0xaa6   :  { %16574 = vmatprep.subr.bf16.mxu0 %v18980_v28  ;;  %v16577_v18 = vpack.c.bf16 %v6060_v20, %v6053_v12  ;;  %v6074_v37 = vand.u32 4294901760, %v6073_v31  ;;  %v6087_v59 = vsub.f32 %v6085_v36, %v6086_v9  ;;  %v16589_v12 = vpack.c.bf16 %v18958_v58, %v18950_v19 }
 0xaa7   :  { %v6081_v40 = vand.u32 4294901760, %v6080_v25  ;;  %v16597_v25 = vpack.c.bf16 %v6085_v36, %v6078_v2  ;;  %v16617_v19 = vpack.c.bf16 %v6072_v54, %v6065_v45  ;;  %v16621_v58 = vpack.c.bf16 %v6086_v9, %v6079_v46 }
 0xaa8   :  { %v16581_v47 = vpack.c.bf16 %v6074_v37, %v6067_v29  ;;  %v6088_v51 = vand.u32 4294901760, %v6087_v59  ;;  %v16593_v37 = vpack.c.bf16 %v6071_v38, %v18965_v24  ;;  %v16613_v59 = vpack.c.bf16 %v6058_v5, %v6051_v21  ;;  %v20001_v29 = vld [vmem:[#allocation38_spill] sm:$0xff] }
 0xaa9   :  { %16576 = vmatpush3.bf16.msra.mxu0 %v18980_v28 }
 0xaaa   :  { %16578 = vmatprep.subr.bf16.mxu0 %v16577_v18  ;;  %v16585_v39 = vpack.c.bf16 %v6088_v51, %v6081_v40  ;;  %v20004_v40 = vld [vmem:[#allocation35_spill] sm:$0xff]  ;;  %v20005_v51 = vld [vmem:[#allocation37_spill] sm:$0xff] }
 0xaac   :  { %15198 = vmatmul.mubr.f32.vlgmr.msra.gmra.mrb[26].mxu0 %v18450_v26 }
 0xaad   :  { %16580 = vmatpush3.bf16.msra.mxu0 %v16577_v18  ;;  %15212 = vmatprep.mubr.msk.f32.mxu0 %vm2159_vm11, %v18304_v43  ;;  %v20002_v18 = vld [vmem:[#allocation40_spill] sm:$0xff] }
 0xaae   :  { %16582 = vmatprep.subr.bf16.mxu0 %v16581_v47 }
 0xab1   :  { %16584 = vmatpush3.bf16.msra.mxu0 %v16581_v47  ;;  %v20003_v47 = vld [vmem:[#allocation33_spill] sm:$0xff] }
 0xab2   :  { %16586 = vmatprep.subr.bf16.mxu0 %v16585_v39 }
 0xab5   :  { %16588 = vmatpush3.bf16.msra.mxu0 %v16585_v39  ;;  %v20006_v39 = vld [vmem:[#allocation39_spill] sm:$0xff] }
 0xab6   :  { %16590 = vmatprep.subr.bf16.mxu0 %v16589_v12 }
 0xab8   :  { %15213 = vmatmul.mubr.msk.f32.vlgmr.msra.gmra.mrb[26].mxu0 %vm2159_vm11, %v18369_v62 }
 0xab9   :  { %16592 = vmatpush3.bf16.msra.mxu0 %v16589_v12  ;;  %15227 = vmatprep.mubr.f32.mxu0 %v18310_v48  ;;  %v20007_v12 = vld [vmem:[#allocation41_spill] sm:$0xff] }
 0xaba   :  { %16594 = vmatprep.subr.bf16.mxu0 %v16593_v37 }
 0xabd   :  { %16596 = vmatpush3.bf16.msra.mxu0 %v16593_v37  ;;  %v20008_v37 = vld [vmem:[#allocation42_spill] sm:$0xff] }
 0xabe   :  { %16598 = vmatprep.subr.bf16.mxu0 %v16597_v25 }
 0xac1   :  { %16600 = vmatpush3.bf16.msra.mxu0 %v16597_v25 }
 0xac2   :  { %16602 = vmatprep.subr.bf16.mxu0 %v18954_v10 }
 0xac4   :  { %15228 = vmatmul.mubr.f32.vlgmr.msra.gmra.mrb[26].mxu0 %v18382_v8 }
 0xac5   :  { %16604 = vmatpush3.bf16.msra.mxu0 %v18954_v10  ;;  %15242 = vmatprep.mubr.f32.mxu0 %v18313_v50 }
 0xac6   :  { %16606 = vmatprep.subr.bf16.mxu0 %v18968_v53 }
 0xac9   :  { %16608 = vmatpush3.bf16.msra.mxu0 %v18968_v53 }
 0xaca   :  { %16610 = vmatprep.subr.bf16.mxu0 %v18980_v28 }
 0xacd   :  { %16612 = vmatpush3.bf16.msra.mxu0 %v18980_v28 }
 0xace   :  { %16614 = vmatprep.subr.bf16.mxu0 %v16613_v59 }
 0xad0   :  { %15243 = vmatmul.mubr.f32.vlgmr.msra.gmra.mrb[26].mxu0 %v18413_v30 }
 0xad1   :  { %16616 = vmatpush3.bf16.msra.mxu0 %v16613_v59  ;;  %15257 = vmatprep.mubr.msk.f32.mxu0 %vm2159_vm11, %v18304_v43 }
 0xad2   :  { %16618 = vmatprep.subr.bf16.mxu0 %v16617_v19 }
 0xad5   :  { %16620 = vmatpush3.bf16.msra.mxu0 %v16617_v19 }
 0xad6   :  { %16622 = vmatprep.subr.bf16.mxu0 %v16621_v58 }
 0xad9   :  { %16624 = vmatpush3.bf16.msra.mxu0 %v16621_v58 }
 0xada   :  { %16626 = vmatprep.subr.bf16.mxu0 %v18954_v10 }
 0xadc   :  { %15258 = vmatmul.mubr.msk.f32.vlgmr.msra.gmra.mrb[26].mxu0 %vm2159_vm11, %v18369_v62 }
 0xadd   :  { %16628 = vmatpush3.bf16.msra.mxu0 %v18954_v10  ;;  %15272 = vmatprep.mubr.msk.f32.mxu0 %vm2159_vm11, %v18304_v43 }
 0xade   :  { %16630 = vmatprep.subr.bf16.mxu0 %v18968_v53 }
 0xae1   :  { %16632 = vmatpush3.bf16.msra.mxu0 %v18968_v53 }
 0xae2   :  { %16634 = vmatprep.subr.bf16.mxu0 %v18980_v28 }
 0xae5   :  { %16636 = vmatpush3.bf16.msra.mxu0 %v18980_v28 }
 0xae8   :  { %15273 = vmatmul.mubr.msk.f32.vlgmr.msra.gmra.mrb[26].mxu0 %vm2159_vm11, %v18369_v62 }
 0xae9   :  { %15365 = vmatprep.mubr.f32.mxu0 %v19994_v32 }
 0xbbb   :  { %v15274_v21 = vpop.f32.mrb[26].mxu0 }
 0xbbc   :  { %v6515_v24 = vand.u32 4294901760, %v15274_v21  ;;  %v6501_v5 = vpop.f32.mrb[27].mxu0 }
 0xbbd   :  { %v6512_v10 = vand.u32 4294901760, %v6501_v5 }
 0xbbe   :  { %v6647_v38 = vsub.f32 %v15274_v21, %v6515_v24 }
 0xbbf   :  { %v16637_v45 = vpack.c.bf16 %v6515_v24, %v6512_v10  ;;  %v6640_v2 = vsub.f32 %v6501_v5, %v6512_v10 }
 0xbc0   :  { %v6648_v54 = vand.u32 4294901760, %v6647_v38 }
 0xbc1   :  { %v6641_v36 = vand.u32 4294901760, %v6640_v2  ;;  %16638 = vmatprep.subr.bf16.mxu1 %v16637_v45  ;;  %v16645_v53 = vpack.c.bf16 %v6647_v38, %v6640_v2 }
 0xbc2   :  { %v6649_v56 = vsub.f32 %v6647_v38, %v6648_v54  ;;  %16640 = vmatpush3.bf16.msra.mxu1 %v16637_v45 }
 0xbc3   :  { %v6642_v20 = vsub.f32 %v6640_v2, %v6641_v36  ;;  %v16653_v28 = vpack.c.bf16 %v6648_v54, %v6641_v36 }
 0xbc4   :  { %v6650_v31 = vand.u32 4294901760, %v6649_v56 }
 0xbc5   :  { %15280 = vmatmul.mubr.f32.vlgmr.msra.gmra.mrb[12].mxu1 %v18547_v6  ;;  %v6643_v46 = vand.u32 4294901760, %v6642_v20 }
 0xbc6   :  { %15282 = vmatprep.mubr.f32.mxu1 %v18554_v61 }
 0xbc7   :  { %v16641_v9 = vpack.c.bf16 %v6650_v31, %v6643_v46 }
 0xbc9   :  { %15283 = vmatmul.mubr.f32.gmra.mrb[14].mxu1 %v18560_v15  ;;  %16642 = vmatprep.subr.bf16.mxu1 %v16641_v9 }
 0xbca   :  { %15285 = vmatprep.mubr.f32.mxu1 %v18564_v16  ;;  %16644 = vmatpush3.bf16.msra.mxu1 %v16641_v9 }
 0xbcb   :  { %16646 = vmatprep.subr.bf16.mxu1 %v16645_v53 }
 0xbcd   :  { %15286 = vmatmul.mubr.f32.gmra.mrb[16].mxu1 %v18568_v35 }
 0xbce   :  { %15292 = vmatprep.mubr.msk.f32.mxu1 %vm1407_vm4, %v18373_v27 }
 0xbd1   :  { %15293 = vmatmul.mubr.msk.f32.vlgmr.msra.gmra.mrb[12].mxu1 %vm1407_vm4, %v18494_v11 }
 0xbd2   :  { %16648 = vmatpush3.bf16.msra.mxu1 %v16645_v53  ;;  %15295 = vmatprep.mubr.msk.f32.mxu1 %vm1407_vm4, %v18497_v14 }
 0xbd3   :  { %16650 = vmatprep.subr.bf16.mxu1 %v16637_v45 }
 0xbd5   :  { %15296 = vmatmul.mubr.msk.f32.gmra.mrb[14].mxu1 %vm1407_vm4, %v18504_v3 }
 0xbd6   :  { %15298 = vmatprep.mubr.msk.f32.mxu1 %vm1407_vm4, %v18509_v4 }
 0xbd9   :  { %15299 = vmatmul.mubr.msk.f32.gmra.mrb[16].mxu1 %vm1407_vm4, %v18519_v1 }
 0xbda   :  { %15305 = vmatprep.mubr.f32.mxu1 %v18403_v63 }
 0xbdd   :  { %15306 = vmatmul.mubr.f32.vlgmr.msra.gmra.mrb[12].mxu1 %v18512_v23 }
 0xbde   :  { %16652 = vmatpush3.bf16.msra.mxu1 %v16637_v45  ;;  %15308 = vmatprep.mubr.f32.mxu1 %v18514_v57 }
 0xbdf   :  { %16654 = vmatprep.subr.bf16.mxu1 %v16653_v28 }
 0xbe1   :  { %15309 = vmatmul.mubr.f32.gmra.mrb[14].mxu1 %v18526_v42 }
 0xbe2   :  { %15311 = vmatprep.mubr.f32.mxu1 %v20001_v29 }
 0xbe5   :  { %15312 = vmatmul.mubr.f32.gmra.mrb[16].mxu1 %v20002_v18 }
 0xbe6   :  { %15318 = vmatprep.mubr.f32.mxu1 %v20003_v47 }
 0xbe9   :  { %15319 = vmatmul.mubr.f32.vlgmr.msra.gmra.mrb[12].mxu1 %v20004_v40 }
 0xbea   :  { %16656 = vmatpush3.bf16.msra.mxu1 %v16653_v28  ;;  %15321 = vmatprep.mubr.f32.mxu1 %v20005_v51 }
 0xbeb   :  { %16658 = vmatprep.subr.bf16.mxu1 %v16637_v45 }
 0xbed   :  { %15322 = vmatmul.mubr.f32.gmra.mrb[14].mxu1 %v20006_v39 }
 0xbee   :  { %15324 = vmatprep.mubr.f32.mxu1 %v20007_v12 }
 0xbf1   :  { %15325 = vmatmul.mubr.f32.gmra.mrb[16].mxu1 %v20008_v37 }
 0xbf2   :  { %15331 = vmatprep.mubr.msk.f32.mxu1 %vm1407_vm4, %v18373_v27 }
 0xbf5   :  { %15332 = vmatmul.mubr.msk.f32.vlgmr.msra.gmra.mrb[12].mxu1 %vm1407_vm4, %v18494_v11 }
 0xbf6   :  { %16660 = vmatpush3.bf16.msra.mxu1 %v16637_v45  ;;  %15334 = vmatprep.mubr.msk.f32.mxu1 %vm1407_vm4, %v18497_v14 }
 0xbf9   :  { %15335 = vmatmul.mubr.msk.f32.gmra.mrb[14].mxu1 %vm1407_vm4, %v18504_v3 }
 0xbfa   :  { %15337 = vmatprep.mubr.msk.f32.mxu1 %vm1407_vm4, %v18509_v4 }
 0xbfd   :  { %15338 = vmatmul.mubr.msk.f32.gmra.mrb[16].mxu1 %vm1407_vm4, %v18519_v1 }
 0xbfe   :  { %15344 = vmatprep.mubr.msk.f32.mxu1 %vm1407_vm4, %v18373_v27 }
 0xc01   :  { %15345 = vmatmul.mubr.msk.f32.vlgmr.msra.gmra.mrb[12].mxu1 %vm1407_vm4, %v18494_v11 }
 0xc02   :  { %15347 = vmatprep.mubr.msk.f32.mxu1 %vm1407_vm4, %v18497_v14 }
 0xc05   :  { %15348 = vmatmul.mubr.msk.f32.gmra.mrb[14].mxu1 %vm1407_vm4, %v18504_v3 }
 0xc06   :  { %15350 = vmatprep.mubr.msk.f32.mxu1 %vm1407_vm4, %v18509_v4 }
 0xc09   :  { %15351 = vmatmul.mubr.msk.f32.gmra.mrb[16].mxu1 %vm1407_vm4, %v18519_v1 }
 0xcd4   :  { %v15346_v25 = vpop.f32.mrb[12].mxu1 }
 0xcd5   :  { %17735 = vrcp.f32 %v15346_v25  ;;  %v7151_v59 = vpop.f32.mrb[13].mxu1 }
 0xcd6   :  { %17737 = vrcp.f32 %v7151_v59 }
 0xcd8   :  { %v15349_v19 = vpop.f32.mrb[14].mxu1 }
 0xcd9   :  { %17739 = vrcp.f32 %v15349_v19  ;;  %v7163_v58 = vpop.f32.mrb[15].mxu1 }
 0xcda   :  { %17741 = vrcp.f32 %v7163_v58 }
 0xcdc   :  { %v15352_v21 = vpop.f32.mrb[16].mxu1 }
 0xcdd   :  { %17743 = vrcp.f32 %v15352_v21  ;;  %v7175_v24 = vpop.f32.mrb[17].mxu1 }
 0xcde   :  { %17745 = vrcp.f32 %v7175_v24 }
 0xcdf   :  { %v17736_v5 = vpop.eup %17735 }
 0xce0   :  { %v17738_v10 = vpop.eup %17737  ;;  %v7188_v38 = vmul.f32 %v17736_v5, %v18940_v7 }
 0xce1   :  { %v7186_v45 = vmul.f32 %v17738_v10, %v18938_v33 }
 0xce2   :  { %v7198_v2 = vmul.f32 %v7188_v38, %v18912_v44 }
 0xce3   :  { %v17740_v54 = vpop.eup %17739  ;;  %v7197_v36 = vmul.f32 %v7186_v45, %v18914_v52 }
 0xce4   :  { %v17742_v53 = vpop.eup %17741  ;;  %v7207_v56 = vand.u32 4294901760, %v7198_v2  ;;  %v7192_v20 = vmul.f32 %v17740_v54, %v18946_v17 }
 0xce5   :  { %v7204_v28 = vand.u32 4294901760, %v7197_v36  ;;  %v7190_v31 = vmul.f32 %v17742_v53, %v18943_v55 }
 0xce6   :  { %v7200_v46 = vmul.f32 %v7192_v20, %v18917_v13  ;;  %v7303_v9 = vsub.f32 %v7198_v2, %v7207_v56 }
 0xce7   :  { %v17744_v25 = vpop.eup %17743  ;;  %v7199_v7 = vmul.f32 %v7190_v31, %v18919_v41  ;;  %v19080_v59 = vpack.c.bf16 %v7207_v56, %v7204_v28  ;;  %v7296_v33 = vsub.f32 %v7197_v36, %v7204_v28 }
 0xce8   :  { %v17746_v44 = vpop.eup %17745  ;;  %v7213_v19 = vand.u32 4294901760, %v7200_v46  ;;  %v7196_v52 = vmul.f32 %v17744_v25, %v18960_v22  ;;  %v7304_v58 = vand.u32 4294901760, %v7303_v9 }
 0xce9   :  { %v7210_v21 = vand.u32 4294901760, %v7199_v7  ;;  %v7194_v17 = vmul.f32 %v17746_v44, %v18952_v34  ;;  %16662 = vmatprep.subr.bf16.mxu0 %v19080_v59  ;;  %v7297_v55 = vand.u32 4294901760, %v7296_v33  ;;  %v16685_v24 = vpack.c.bf16 %v7303_v9, %v7296_v33 }
 0xcea   :  { %v7202_v13 = vmul.f32 %v7196_v52, %v18922_v0  ;;  %16664 = vmatpush3.bf16.msra.mxu0 %v19080_v59  ;;  %v7305_v41 = vsub.f32 %v7303_v9, %v7304_v58  ;;  %v7317_v5 = vsub.f32 %v7200_v46, %v7213_v19 }
 0xceb   :  { %v7201_v10 = vmul.f32 %v7194_v17, %v18928_v60  ;;  %v19088_v38 = vpack.c.bf16 %v7213_v19, %v7210_v21  ;;  %v7298_v45 = vsub.f32 %v7296_v33, %v7297_v55  ;;  %v7310_v22 = vsub.f32 %v7199_v7, %v7210_v21 }
 0xcec   :  { %v7219_v2 = vand.u32 4294901760, %v7202_v13  ;;  %v7306_v54 = vand.u32 4294901760, %v7305_v41  ;;  %v7318_v36 = vand.u32 4294901760, %v7317_v5  ;;  %v16709_v34 = vpack.c.bf16 %v7304_v58, %v7297_v55 }
 0xced   :  { %v7216_v53 = vand.u32 4294901760, %v7201_v10  ;;  %16666 = vmatprep.subr.bf16.mxu0 %v19088_v38  ;;  %v7299_v56 = vand.u32 4294901760, %v7298_v45  ;;  %v7311_v20 = vand.u32 4294901760, %v7310_v22  ;;  %v16689_v0 = vpack.c.bf16 %v7317_v5, %v7310_v22 }
 0xcee   :  { %16668 = vmatpush3.bf16.msra.mxu0 %v19088_v38  ;;  %v7319_v28 = vsub.f32 %v7317_v5, %v7318_v36  ;;  %v7331_v31 = vsub.f32 %v7202_v13, %v7219_v2 }
 0xcef   :  { %v16669_v46 = vpack.c.bf16 %v7219_v2, %v7216_v53  ;;  %v16673_v60 = vpack.c.bf16 %v7306_v54, %v7299_v56  ;;  %v7312_v9 = vsub.f32 %v7310_v22, %v7311_v20  ;;  %v7324_v25 = vsub.f32 %v7201_v10, %v7216_v53 }
 0xcf0   :  { %v7320_v33 = vand.u32 4294901760, %v7319_v28  ;;  %v7332_v7 = vand.u32 4294901760, %v7331_v31  ;;  %v16713_v44 = vpack.c.bf16 %v7318_v36, %v7311_v20 }
 0xcf1   :  { %16670 = vmatprep.subr.bf16.mxu0 %v16669_v46  ;;  %v7313_v19 = vand.u32 4294901760, %v7312_v9  ;;  %v7325_v52 = vand.u32 4294901760, %v7324_v25  ;;  %v16693_v58 = vpack.c.bf16 %v7331_v31, %v7324_v25 }
 0xcf2   :  { %16672 = vmatpush3.bf16.msra.mxu0 %v16669_v46  ;;  %v7333_v21 = vsub.f32 %v7331_v31, %v7332_v7 }
 0xcf3   :  { %16674 = vmatprep.subr.bf16.mxu0 %v16673_v60  ;;  %v16677_v17 = vpack.c.bf16 %v7320_v33, %v7313_v19  ;;  %v7326_v55 = vsub.f32 %v7324_v25, %v7325_v52  ;;  %v16717_v41 = vpack.c.bf16 %v7332_v7, %v7325_v52 }
 0xcf4   :  { %v7334_v45 = vand.u32 4294901760, %v7333_v21 }
 0xcf5   :  { %15366 = vmatmul.mubr.f32.vlgmr.msra.gmra.mrb[28].mxu0 %v18450_v26  ;;  %v7327_v13 = vand.u32 4294901760, %v7326_v55 }
 0xcf6   :  { %16676 = vmatpush3.bf16.msra.mxu0 %v16673_v60  ;;  %15380 = vmatprep.mubr.msk.f32.mxu0 %vm2159_vm11, %v18304_v43 }
 0xcf7   :  { %16678 = vmatprep.subr.bf16.mxu0 %v16677_v17  ;;  %v16681_v5 = vpack.c.bf16 %v7334_v45, %v7327_v13 }
 0xcfa   :  { %16680 = vmatpush3.bf16.msra.mxu0 %v16677_v17 }
 0xcfb   :  { %16682 = vmatprep.subr.bf16.mxu0 %v16681_v5 }
 0xcfe   :  { %16684 = vmatpush3.bf16.msra.mxu0 %v16681_v5 }
 0xcff   :  { %16686 = vmatprep.subr.bf16.mxu0 %v16685_v24 }
 0xd01   :  { %15381 = vmatmul.mubr.msk.f32.vlgmr.msra.gmra.mrb[28].mxu0 %vm2159_vm11, %v18369_v62 }
 0xd02   :  { %16688 = vmatpush3.bf16.msra.mxu0 %v16685_v24  ;;  %15395 = vmatprep.mubr.f32.mxu0 %v18310_v48  ;;  %v13450_v24 = vld [vmem:[%s19814_s12 + $0x20] sm:$0xff] }
 0xd03   :  { %16690 = vmatprep.subr.bf16.mxu0 %v16689_v0  ;;  %v7774_v10 = vand.u32 4294901760, %v13450_v24 }
 0xd05   :  { %v7864_v54 = vsub.f32 %v13450_v24, %v7774_v10 }
 0xd06   :  { %16692 = vmatpush3.bf16.msra.mxu0 %v16689_v0 }
 0xd07   :  { %16694 = vmatprep.subr.bf16.mxu0 %v16693_v58  ;;  %v7865_v20 = vand.u32 4294901760, %v7864_v54 }
 0xd09   :  { %v7866_v31 = vsub.f32 %v7864_v54, %v7865_v20 }
 0xd0a   :  { %16696 = vmatpush3.bf16.msra.mxu0 %v16693_v58 }
 0xd0b   :  { %16698 = vmatprep.subr.bf16.mxu0 %v19080_v59  ;;  %v7867_v25 = vand.u32 4294901760, %v7866_v31 }
 0xd0d   :  { %15396 = vmatmul.mubr.f32.vlgmr.msra.gmra.mrb[28].mxu0 %v18382_v8 }
 0xd0e   :  { %16700 = vmatpush3.bf16.msra.mxu0 %v19080_v59  ;;  %15410 = vmatprep.mubr.f32.mxu0 %v18313_v50 }
 0xd0f   :  { %16702 = vmatprep.subr.bf16.mxu0 %v19088_v38 }
 0xd12   :  { %16704 = vmatpush3.bf16.msra.mxu0 %v19088_v38 }
 0xd13   :  { %16706 = vmatprep.subr.bf16.mxu0 %v16669_v46 }
 0xd16   :  { %16708 = vmatpush3.bf16.msra.mxu0 %v16669_v46 }
 0xd17   :  { %16710 = vmatprep.subr.bf16.mxu0 %v16709_v34 }
 0xd19   :  { %15411 = vmatmul.mubr.f32.vlgmr.msra.gmra.mrb[28].mxu0 %v18413_v30 }
 0xd1a   :  { %16712 = vmatpush3.bf16.msra.mxu0 %v16709_v34  ;;  %15425 = vmatprep.mubr.msk.f32.mxu0 %vm2159_vm11, %v18304_v43  ;;  %v13453_v34 = vld [vmem:[%s19814_s12 + $0x38] sm:$0xff] }
 0xd1b   :  { %16714 = vmatprep.subr.bf16.mxu0 %v16713_v44  ;;  %v7783_v56 = vand.u32 4294901760, %v13453_v34 }
 0xd1d   :  { %v7885_v9 = vsub.f32 %v13453_v34, %v7783_v56 }
 0xd1e   :  { %16716 = vmatpush3.bf16.msra.mxu0 %v16713_v44 }
 0xd1f   :  { %16718 = vmatprep.subr.bf16.mxu0 %v16717_v41  ;;  %v7886_v44 = vand.u32 4294901760, %v7885_v9 }
 0xd21   :  { %v7887_v58 = vsub.f32 %v7885_v9, %v7886_v44 }
 0xd22   :  { %16720 = vmatpush3.bf16.msra.mxu0 %v16717_v41 }
 0xd23   :  { %16722 = vmatprep.subr.bf16.mxu0 %v19080_v59  ;;  %v7888_v17 = vand.u32 4294901760, %v7887_v58 }
 0xd25   :  { %15426 = vmatmul.mubr.msk.f32.vlgmr.msra.gmra.mrb[28].mxu0 %vm2159_vm11, %v18369_v62 }
 0xd26   :  { %16724 = vmatpush3.bf16.msra.mxu0 %v19080_v59  ;;  %15440 = vmatprep.mubr.msk.f32.mxu0 %vm2159_vm11, %v18304_v43  ;;  %v13451_v59 = vld [vmem:[%s19814_s12 + $0x28] sm:$0xff] }
 0xd27   :  { %16726 = vmatprep.subr.bf16.mxu0 %v19088_v38  ;;  %v7777_v22 = vand.u32 4294901760, %v13451_v59 }
 0xd29   :  { %v19123_v2 = vpack.c.bf16 %v7777_v22, %v7774_v10  ;;  %v7871_v36 = vsub.f32 %v13451_v59, %v7777_v22  ;;  %v20009_v22 = vld [vmem:[#allocation45_spill] sm:$0xff] }
 0xd2a   :  { %16728 = vmatpush3.bf16.msra.mxu0 %v19088_v38  ;;  %v13452_v38 = vld [vmem:[%s19814_s12 + $0x30] sm:$0xff] }
 0xd2b   :  { %16730 = vmatprep.subr.bf16.mxu0 %v16669_v46  ;;  %16734 = vmatprep.subr.bf16.mxu1 %v19123_v2  ;;  %v7780_v53 = vand.u32 4294901760, %v13452_v38  ;;  %v7872_v0 = vand.u32 4294901760, %v7871_v36  ;;  %v16749_v41 = vpack.c.bf16 %v7871_v36, %v7864_v54 }
 0xd2c   :  { %16736 = vmatpush3.bf16.msra.mxu1 %v19123_v2 }
 0xd2d   :  { %v19133_v28 = vpack.c.bf16 %v7783_v56, %v7780_v53  ;;  %v7878_v60 = vsub.f32 %v13452_v38, %v7780_v53  ;;  %v16765_v13 = vpack.c.bf16 %v7872_v0, %v7865_v20 }
 0xd2e   :  { %16732 = vmatpush3.bf16.msra.mxu0 %v16669_v46  ;;  %v7873_v46 = vsub.f32 %v7871_v36, %v7872_v0 }
 0xd2f   :  { %16738 = vmatprep.subr.bf16.mxu1 %v19133_v28  ;;  %v7879_v7 = vand.u32 4294901760, %v7878_v60  ;;  %v16753_v45 = vpack.c.bf16 %v7885_v9, %v7878_v60 }
 0xd30   :  { %v7874_v33 = vand.u32 4294901760, %v7873_v46  ;;  %16740 = vmatpush3.bf16.msra.mxu1 %v19133_v28 }
 0xd31   :  { %15441 = vmatmul.mubr.msk.f32.vlgmr.msra.gmra.mrb[28].mxu0 %vm2159_vm11, %v18369_v62  ;;  %v7880_v52 = vsub.f32 %v7878_v60, %v7879_v7  ;;  %v16769_v5 = vpack.c.bf16 %v7886_v44, %v7879_v7  ;;  %v13454_v60 = vld [vmem:[%s19815_s13 + $0x1] ss:$0 sm:$0xff] }
 0xd32   :  { %v16741_v19 = vpack.c.bf16 %v7874_v33, %v7867_v25 }
 0xd33   :  { %v7881_v21 = vand.u32 4294901760, %v7880_v52 }
 0xd34   :  { %16742 = vmatprep.subr.bf16.mxu1 %v16741_v19 }
 0xd35   :  { %v16745_v55 = vpack.c.bf16 %v7888_v17, %v7881_v21 }
 0xe04   :  { %v15442_v24 = vpop.f32.mrb[28].mxu0 }
 0xe05   :  { %v17291_v59 = vadd.f32 %v15442_v24, %v18846_v49  ;;  %v7747_v10 = vpop.f32.mrb[29].mxu0  ;;  %v20010_v49 = vld [vmem:[#allocation5_spill] sm:$0xff] }
 0xe06   :  { %v17292_v38 = vadd.f32 %v7747_v10, %v20009_v22  ;;  %v13461_v22 = vld [vmem:[%s19816_s16 + $0x60] sm:$0xff] }
 0xe07   :  { %v7771_v34 = vsel %vm2123_vm12, %v17291_v59, 0  ;;  %v13460_v59 = vld [vmem:[%s19816_s16 + $0x58] sm:$0xff] }
 0xe08   :  { %v7852_v53 = vand.u32 4294901760, %v7771_v34  ;;  %v7768_v56 = vsel %vm2123_vm12, %v17292_v38, 0  ;;  %v13462_v38 = vld [vmem:[%s19816_s16 + $0x68] sm:$0xff] }
 0xe09   :  { %v7842_v31 = vand.u32 4294901760, %v7768_v56 }
 0xe0a   :  { %v7853_v46 = vsub.f32 %v7771_v34, %v7852_v53  ;;  %v8379_v34 = vand.u32 4294901760, %v13460_v59 }
 0xe0b   :  { %v7843_v25 = vsub.f32 %v7768_v56, %v7842_v31  ;;  %v8382_v56 = vand.u32 4294901760, %v13461_v22 }
 0xe0c   :  { %v7854_v33 = vand.u32 4294901760, %v7853_v46 }
 0xe0d   :  { %v7844_v52 = vand.u32 4294901760, %v7843_v25 }
 0xe0e   :  { %v7855_v54 = vsub.f32 %v7853_v46, %v7854_v33 }
 0xe0f   :  { %v7845_v36 = vsub.f32 %v7843_v25, %v7844_v52 }
 0xe10   :  { %v7856_v0 = vand.u32 4294901760, %v7855_v54 }
 0xe11   :  { %v7846_v20 = vand.u32 4294901760, %v7845_v36 }
 0xe13   :  { %15451 = vmatprep.mubr.f32.mxu1 %v7846_v20 }
 0xe14   :  { %15452 = vmatmul.mubr.f32.vlgmr.msra.gmra.mrb[18].mxu1 %v7856_v0 }
 0xe15   :  { %16744 = vmatpush3.bf16.msra.mxu1 %v16741_v19  ;;  %15462 = vmatprep.mubr.f32.mxu1 %v7842_v31 }
 0xe16   :  { %16746 = vmatprep.subr.bf16.mxu1 %v16745_v55 }
 0xe19   :  { %16748 = vmatpush3.bf16.msra.mxu1 %v16745_v55 }
 0xe1a   :  { %16750 = vmatprep.subr.bf16.mxu1 %v16749_v41 }
 0xe1c   :  { %15463 = vmatmul.mubr.f32.vlgmr.msra.gmra.mrb[18].mxu1 %v7852_v53 }
 0xe1d   :  { %16752 = vmatpush3.bf16.msra.mxu1 %v16749_v41  ;;  %15473 = vmatprep.mubr.f32.mxu1 %v7843_v25  ;;  %v13457_v41 = vld [vmem:[%s19816_s16 + $0x40] sm:$0xff]  ;;  %v13463_v25 = vld [vmem:[%s19816_s16 + $0x70] sm:$0xff] }
 0xe1e   :  { %16754 = vmatprep.subr.bf16.mxu1 %v16753_v45  ;;  %v8388_v54 = vand.u32 4294901760, %v13463_v25 }
 0xe21   :  { %16756 = vmatpush3.bf16.msra.mxu1 %v16753_v45  ;;  %v13458_v45 = vld [vmem:[%s19816_s16 + $0x48] sm:$0xff] }
 0xe22   :  { %16758 = vmatprep.subr.bf16.mxu1 %v19123_v2  ;;  %v8373_v24 = vand.u32 4294901760, %v13458_v45 }
 0xe24   :  { %15474 = vmatmul.mubr.f32.vlgmr.msra.gmra.mrb[18].mxu1 %v7853_v46 }
 0xe25   :  { %16760 = vmatpush3.bf16.msra.mxu1 %v19123_v2  ;;  %15484 = vmatprep.mubr.f32.mxu1 %v7844_v52 }
 0xe26   :  { %16762 = vmatprep.subr.bf16.mxu1 %v19133_v28 }
 0xe29   :  { %16764 = vmatpush3.bf16.msra.mxu1 %v19133_v28 }
 0xe2a   :  { %16766 = vmatprep.subr.bf16.mxu1 %v16765_v13 }
 0xe2c   :  { %15485 = vmatmul.mubr.f32.vlgmr.msra.gmra.mrb[18].mxu1 %v7854_v33  ;;  %v13464_v33 = vld [vmem:[%s19816_s16 + $0x78] sm:$0xff] }
 0xe2d   :  { %16768 = vmatpush3.bf16.msra.mxu1 %v16765_v13  ;;  %15495 = vmatprep.mubr.f32.mxu1 %v7842_v31  ;;  %v13459_v13 = vld [vmem:[%s19816_s16 + $0x50] sm:$0xff]  ;;  %v8391_v36 = vand.u32 4294901760, %v13464_v33 }
 0xe2e   :  { %16770 = vmatprep.subr.bf16.mxu1 %v16769_v5  ;;  %v8376_v10 = vand.u32 4294901760, %v13459_v13 }
 0xe2f   :  { %v19202_v20 = vpack.c.bf16 %v8391_v36, %v8388_v54 }
 0xe30   :  { %v19187_v46 = vpack.c.bf16 %v8379_v34, %v8376_v10 }
 0xe31   :  { %16772 = vmatpush3.bf16.msra.mxu1 %v16769_v5  ;;  %v8370_v5 = vand.u32 4294901760, %v13457_v41 }
 0xe32   :  { %16774 = vmatprep.subr.bf16.mxu1 %v19123_v2 }
 0xe33   :  { %v8464_v0 = vsub.f32 %v13457_v41, %v8370_v5 }
 0xe34   :  { %15496 = vmatmul.mubr.f32.vlgmr.msra.gmra.mrb[18].mxu1 %v7852_v53 }
 0xe35   :  { %16776 = vmatpush3.bf16.msra.mxu1 %v19123_v2  ;;  %15506 = vmatprep.mubr.f32.mxu1 %v7842_v31  ;;  %v8385_v31 = vand.u32 4294901760, %v13462_v38 }
 0xe36   :  { %16778 = vmatprep.subr.bf16.mxu1 %v19133_v28 }
 0xe37   :  { %v19198_v52 = vpack.c.bf16 %v8385_v31, %v8382_v56 }
 0xe39   :  { %16780 = vmatpush3.bf16.msra.mxu1 %v19133_v28 }
 0xe3c   :  { %15507 = vmatmul.mubr.f32.vlgmr.msra.gmra.mrb[18].mxu1 %v7852_v53  ;;  %v19185_v53 = vpack.c.bf16 %v8373_v24, %v8370_v5  ;;  %v8492_v5 = vsub.f32 %v13461_v22, %v8382_v56 }
 0xe3d   :  { %15627 = vmatprep.mubr.f32.mxu1 %v20010_v49  ;;  %v8471_v49 = vsub.f32 %v13458_v45, %v8373_v24  ;;  %v8499_v24 = vsub.f32 %v13462_v38, %v8385_v31 }
 0xe3e   :  { %16782 = vmatprep.subr.bf16.mxu0 %v19185_v53  ;;  %v8493_v40 = vand.u32 4294901760, %v8492_v5 }
 0xe3f   :  { %16784 = vmatpush3.bf16.msra.mxu0 %v19185_v53  ;;  %v8500_v47 = vand.u32 4294901760, %v8499_v24 }
 0xe40   :  { %16786 = vmatprep.subr.bf16.mxu0 %v19187_v46 }
 0xe43   :  { %16788 = vmatpush3.bf16.msra.mxu0 %v19187_v46 }
 0xe44   :  { %16790 = vmatprep.subr.bf16.mxu0 %v19198_v52 }
 0xe47   :  { %16792 = vmatpush3.bf16.msra.mxu0 %v19198_v52 }
 0xe48   :  { %16794 = vmatprep.subr.bf16.mxu0 %v19202_v20 }
 0xe4b   :  { %16796 = vmatpush3.bf16.msra.mxu0 %v19202_v20 }
 0xf0f   :  { %v15508_v9 = vpop.f32.mrb[18].mxu1 }
 0xf10   :  { %v19153_v7 = vadd.f32 %v15508_v9, %v13454_v60  ;;  %v8291_v44 = vpop.f32.mrb[19].mxu1  ;;  %v8472_v9 = vand.u32 4294901760, %v8471_v49 }
 0xf11   :  { %v19155_v19 = vadd.f32 %v13454_v60, %v8291_v44  ;;  %v8465_v60 = vand.u32 4294901760, %v8464_v0 }
 0xf12   :  { %v8306_v2 = vsel %vm4529_vm3, %v19153_v7, 0.0  ;;  %v8312_v58 = vmul.f32 %v19153_v7, %v19153_v7 }
 0xf13   :  { %8307 = vadd.xlane.f32.xlu0 %v8306_v2  ;;  %v8303_v28 = vsel %vm4529_vm3, %v19155_v19, 0.0  ;;  %v8311_v21 = vmul.f32 %v19155_v19, %v19155_v19  ;;  %v8466_v44 = vsub.f32 %v8464_v0, %v8465_v60  ;;  %v8473_v2 = vsub.f32 %v8471_v49, %v8472_v9 }
 0xf14   :  { %8304 = vadd.xlane.f32.xlu1 %v8303_v28  ;;  %v8316_v17 = vsel %vm4529_vm3, %v8312_v58, 0.0  ;;  %v8478_v58 = vsub.f32 %v13459_v13, %v8376_v10  ;;  %v8485_v28 = vsub.f32 %v13460_v59, %v8379_v34  ;;  %v8494_v59 = vsub.f32 %v8492_v5, %v8493_v40 }
 0xf15   :  { %v8313_v55 = vsel %vm4529_vm3, %v8311_v21, 0.0  ;;  %v8467_v21 = vand.u32 4294901760, %v8466_v44  ;;  %v8506_v10 = vsub.f32 %v13463_v25, %v8388_v54  ;;  %v8513_v34 = vsub.f32 %v13464_v33, %v8391_v36 }
 0xf16   :  { %v8486_v37 = vand.u32 4294901760, %v8485_v28  ;;  %v8501_v44 = vsub.f32 %v8499_v24, %v8500_v47  ;;  %v19220_v25 = vpack.c.bf16 %v8472_v9, %v8465_v60  ;;  %v19224_v54 = vpack.c.bf16 %v8500_v47, %v8493_v40 }
 0xf17   :  { %8317 = vadd.xlane.f32.xlu0 %v8316_v17  ;;  %v8474_v17 = vand.u32 4294901760, %v8473_v2  ;;  %v8495_v2 = vand.u32 4294901760, %v8494_v59  ;;  %v8507_v18 = vand.u32 4294901760, %v8506_v10 }
 0xf18   :  { %8314 = vadd.xlane.f32.xlu1 %v8313_v55  ;;  %v8479_v55 = vand.u32 4294901760, %v8478_v58  ;;  %v8487_v45 = vsub.f32 %v8485_v28, %v8486_v37 }
 0xf19   :  { %v19207_v12 = vpack.c.bf16 %v8474_v17, %v8467_v21  ;;  %v8514_v21 = vand.u32 4294901760, %v8513_v34  ;;  %v8502_v17 = vand.u32 4294901760, %v8501_v44  ;;  %v8508_v29 = vsub.f32 %v8506_v10, %v8507_v18 }
 0xf1a   :  { %v8480_v41 = vsub.f32 %v8478_v58, %v8479_v55  ;;  %v8488_v51 = vand.u32 4294901760, %v8487_v45  ;;  %v19214_v45 = vpack.c.bf16 %v8485_v28, %v8478_v58  ;;  %v19222_v33 = vpack.c.bf16 %v8486_v37, %v8479_v55 }
 0xf1b   :  { %16798 = vmatprep.subr.bf16.mxu0 %v19207_v12  ;;  %v8515_v42 = vsub.f32 %v8513_v34, %v8514_v21  ;;  %v16805_v22 = vpack.c.bf16 %v8502_v17, %v8495_v2  ;;  %v8509_v38 = vand.u32 4294901760, %v8508_v29  ;;  %v19226_v36 = vpack.c.bf16 %v8514_v21, %v8507_v18  ;;  %v13455_v2 = vld [vmem:[%s19817_s14 + $0x1] ss:$0 sm:$0xff] }
 0xf1c   :  { %v8481_v39 = vand.u32 4294901760, %v8480_v41  ;;  %v19212_v41 = vpack.c.bf16 %v8471_v49, %v8464_v0 }
 0xf1d   :  { %v8516_v56 = vand.u32 4294901760, %v8515_v42 }
 0xf1e   :  { %v19210_v13 = vpack.c.bf16 %v8488_v51, %v8481_v39  ;;  %v19216_v51 = vpack.c.bf16 %v8499_v24, %v8492_v5  ;;  %v19218_v39 = vpack.c.bf16 %v8513_v34, %v8506_v10 }
 0xf1f   :  { %v16809_v31 = vpack.c.bf16 %v8516_v56, %v8509_v38  ;;  %v13456_v56 = vld [vmem:[%s19818_s15 + $0x1] ss:$0 sm:$0xff] }
 0xfa0   :  { %v8308_v59 = vpop.xlane.xlu0 %8307 }
 0xfa1   :  { %v8310_v29 = vmul.f32 0.015625, %v8308_v59  ;;  %v8305_v42 = vpop.xlane.xlu1 %8304 }
 0xfa2   :  { %v8309_v44 = vmul.f32 0.015625, %v8305_v42 }
 0xfa3   :  { %v8322_v49 = vmul.f32 %v8310_v29, %v8310_v29  ;;  %v8328_v18 = vsub.f32 %v19153_v7, %v8310_v29 }
 0xfa4   :  { %v8318_v0 = vpop.xlane.xlu0 %8317  ;;  %v8321_v5 = vmul.f32 %v8309_v44, %v8309_v44  ;;  %v8327_v40 = vsub.f32 %v19155_v19, %v8309_v44 }
 0xfa5   :  { %v8320_v58 = vmul.f32 0.015625, %v8318_v0  ;;  %v8315_v28 = vpop.xlane.xlu1 %8314 }
 0xfa6   :  { %v8319_v24 = vmul.f32 0.015625, %v8315_v28 }
 0xfa7   :  { %v8324_v10 = vsub.f32 %v8320_v58, %v8322_v49 }
 0xfa8   :  { %v8323_v34 = vsub.f32 %v8319_v24, %v8321_v5 }
 0xfa9   :  { %v8326_v60 = vmax.f32 %v8324_v10, 0.0 }
 0xfaa   :  { %v8325_v9 = vmax.f32 %v8323_v34, 0.0 }
 0xfab   :  { %v8330_v37 = vadd.f32 1e-05, %v8326_v60 }
 0xfac   :  { %v8329_v55 = vadd.f32 1e-05, %v8325_v9 }
 0xfad   :  { %17747 = vrsqrt.f32 %v8330_v37 }
 0xfae   :  { %17749 = vrsqrt.f32 %v8329_v55 }
 0xfb7   :  { %v17748_v47 = vpop.eup %17747 }
 0xfb8   :  { %v17750_v21 = vpop.eup %17749  ;;  %v8334_v17 = vmul.f32 %v17748_v47, %v8328_v18  ;;  %v9685_v18 = vld [vmem:[%s19811_s11 + $0x2] sm:$0x1] }
 0xfb9   :  { %v8333_v38 = vmul.f32 %v17750_v21, %v8327_v40  ;;  %17661 = vpush %v9685_v18 }
 0xfba   :  { %v8340_v59 = vmul.f32 %v13455_v2, %v8334_v17 }
 0xfbb   :  { %v8339_v42 = vmul.f32 %v13455_v2, %v8333_v38 }
 0xfbc   :  { %v8346_v0 = vadd.f32 %v13456_v56, %v8340_v59 }
 0xfbd   :  { %v8345_v49 = vadd.f32 %v13456_v56, %v8339_v42 }
 0xfbe   :  { %v8348_v58 = vmax.f32 %v8346_v0, 0.0 }
 0xfbf   :  { %v8347_v7 = vmax.f32 %v8345_v49, 0.0 }
 0xfc0   :  { %v8367_v29 = vsel %vm4529_vm3, %v8348_v58, 0 }
 0xfc1   :  { %v8364_v19 = vsel %vm4529_vm3, %v8347_v7, 0  ;;  %v8452_v44 = vand.u32 4294901760, %v8367_v29 }
 0xfc2   :  { %v8442_v28 = vand.u32 4294901760, %v8364_v19 }
 0xfc3   :  { %v8453_v5 = vsub.f32 %v8367_v29, %v8452_v44 }
 0xfc4   :  { %v8443_v24 = vsub.f32 %v8364_v19, %v8442_v28 }
 0xfc5   :  { %v8454_v10 = vand.u32 4294901760, %v8453_v5 }
 0xfc6   :  { %v8444_v34 = vand.u32 4294901760, %v8443_v24 }
 0xfc7   :  { %v8455_v60 = vsub.f32 %v8453_v5, %v8454_v10 }
 0xfc8   :  { %v8445_v9 = vsub.f32 %v8443_v24, %v8444_v34 }
 0xfc9   :  { %v8456_v55 = vand.u32 4294901760, %v8455_v60 }
 0xfca   :  { %v8446_v37 = vand.u32 4294901760, %v8445_v9  ;;  %v13467_v9 = vld [vmem:[%s19821_s10 + $0x2] ss:$0 sm:$0xff] }
 0xfcc   :  { %15525 = vmatprep.mubr.f32.mxu0 %v8446_v37 }
 0xfcd   :  { %15526 = vmatmul.mubr.f32.vlgmr.msra.gmra.mrb[30].mxu0 %v8456_v55 }
 0xfce   :  { %16800 = vmatpush3.bf16.msra.mxu0 %v19207_v12  ;;  %15544 = vmatprep.mubr.f32.mxu0 %v8442_v28  ;;  %v20011_v12 = vld [vmem:[#allocation34_spill] sm:$0xff] }
 0xfcf   :  { %16802 = vmatprep.subr.bf16.mxu0 %v19210_v13 }
 0xfd2   :  { %16804 = vmatpush3.bf16.msra.mxu0 %v19210_v13 }
 0xfd3   :  { %16806 = vmatprep.subr.bf16.mxu0 %v16805_v22 }
 0xfd6   :  { %16808 = vmatpush3.bf16.msra.mxu0 %v16805_v22 }
 0xfd7   :  { %16810 = vmatprep.subr.bf16.mxu0 %v16809_v31 }
 0xfda   :  { %16812 = vmatpush3.bf16.msra.mxu0 %v16809_v31 }
 0xfdb   :  { %16814 = vmatprep.subr.bf16.mxu0 %v19212_v41 }
 0xfdd   :  { %15545 = vmatmul.mubr.f32.vlgmr.msra.gmra.mrb[30].mxu0 %v8452_v44 }
 0xfde   :  { %16816 = vmatpush3.bf16.msra.mxu0 %v19212_v41  ;;  %15563 = vmatprep.mubr.f32.mxu0 %v8443_v24 }
 0xfdf   :  { %16818 = vmatprep.subr.bf16.mxu0 %v19214_v45 }
 0xfe2   :  { %16820 = vmatpush3.bf16.msra.mxu0 %v19214_v45 }
 0xfe3   :  { %16822 = vmatprep.subr.bf16.mxu0 %v19216_v51 }
 0xfe6   :  { %16824 = vmatpush3.bf16.msra.mxu0 %v19216_v51  ;;  %v20014_v51 = vld [vmem:[#allocation44_spill] sm:$0xff] }
 0xfe7   :  { %16826 = vmatprep.subr.bf16.mxu0 %v19218_v39 }
 0xfea   :  { %16828 = vmatpush3.bf16.msra.mxu0 %v19218_v39  ;;  %s17662_s5 = spop %17661 }
 0xfeb   :  { %16830 = vmatprep.subr.bf16.mxu0 %v19185_v53 }
 0xfed   :  { %15564 = vmatmul.mubr.f32.vlgmr.msra.gmra.mrb[30].mxu0 %v8453_v5 }
 0xfee   :  { %16832 = vmatpush3.bf16.msra.mxu0 %v19185_v53  ;;  %15582 = vmatprep.mubr.f32.mxu0 %v8444_v34 }
 0xfef   :  { %16834 = vmatprep.subr.bf16.mxu0 %v19187_v46 }
 0xff2   :  { %16836 = vmatpush3.bf16.msra.mxu0 %v19187_v46 }
 0xff3   :  { %16838 = vmatprep.subr.bf16.mxu0 %v19198_v52 }
 0xff6   :  { %16840 = vmatpush3.bf16.msra.mxu0 %v19198_v52 }
 0xff7   :  { %16842 = vmatprep.subr.bf16.mxu0 %v19202_v20 }
 0xffa   :  { %16844 = vmatpush3.bf16.msra.mxu0 %v19202_v20 }
 0xffb   :  { %16846 = vmatprep.subr.bf16.mxu0 %v19220_v25 }
 0xffd   :  { %15583 = vmatmul.mubr.f32.vlgmr.msra.gmra.mrb[30].mxu0 %v8454_v10  ;;  %v13466_v10 = vld [vmem:[%s19820_s9 + $0x2] ss:$0 sm:$0xff] }
 0xffe   :  { %16848 = vmatpush3.bf16.msra.mxu0 %v19220_v25  ;;  %15601 = vmatprep.mubr.f32.mxu0 %v8442_v28 }
 0xfff   :  { %16850 = vmatprep.subr.bf16.mxu0 %v19222_v33 }
0x1002   :  { %16852 = vmatpush3.bf16.msra.mxu0 %v19222_v33 }
0x1003   :  { %16854 = vmatprep.subr.bf16.mxu0 %v19224_v54 }
0x1006   :  { %16856 = vmatpush3.bf16.msra.mxu0 %v19224_v54 }
0x1007   :  { %16858 = vmatprep.subr.bf16.mxu0 %v19226_v36 }
0x100a   :  { %16860 = vmatpush3.bf16.msra.mxu0 %v19226_v36 }
0x100b   :  { %16862 = vmatprep.subr.bf16.mxu0 %v19185_v53 }
0x100d   :  { %15602 = vmatmul.mubr.f32.vlgmr.msra.gmra.mrb[30].mxu0 %v8452_v44 }
0x100e   :  { %16864 = vmatpush3.bf16.msra.mxu0 %v19185_v53  ;;  %15620 = vmatprep.mubr.f32.mxu0 %v8442_v28  ;;  %v13465_v53 = vld [vmem:[%s19819_s17 + $0x1] ss:$0 sm:$0xff] }
0x100f   :  { %16866 = vmatprep.subr.bf16.mxu0 %v19187_v46 }
0x1012   :  { %16868 = vmatpush3.bf16.msra.mxu0 %v19187_v46  ;;  %v20012_v46 = vld [vmem:[#allocation43_spill] sm:$0xff] }
0x1013   :  { %16870 = vmatprep.subr.bf16.mxu0 %v19198_v52 }
0x1016   :  { %16872 = vmatpush3.bf16.msra.mxu0 %v19198_v52 }
0x1017   :  { %16874 = vmatprep.subr.bf16.mxu0 %v19202_v20 }
0x101a   :  { %16876 = vmatpush3.bf16.msra.mxu0 %v19202_v20 }
0x101d   :  { %15621 = vmatmul.mubr.f32.vlgmr.msra.gmra.mrb[30].mxu0 %v8452_v44 }
0x101e   :  { %15795 = vmatprep.mubr.f32.mxu0 %v20011_v12 }
0x10f0   :  { %v15622_v13 = vpop.f32.mrb[30].mxu0 }
0x10f1   :  { %v17295_v22 = vadd.f32 %v15622_v13, %v13465_v53  ;;  %v8939_v31 = vpop.f32.mrb[31].mxu0 }
0x10f2   :  { %v17296_v41 = vadd.f32 %v13465_v53, %v8939_v31 }
0x10f3   :  { %v19278_v45 = vadd.f32 %v17295_v22, %v20012_v46 }
0x10f4   :  { %v19281_v52 = vadd.f32 %v17296_v41, %v20014_v51 }
0x10f5   :  { %20013 = vst [vmem:[#allocation26_spill] sm:$0xff] %v19278_v45  ;;  %v8956_v20 = vsel %vm2123_vm12, %v19278_v45, 0.0  ;;  %v8962_v39 = vmul.f32 %v19278_v45, %v19278_v45 }
0x10f6   :  { %20015 = vst [vmem:[#allocation45_spill] sm:$0xff] %v19281_v52  ;;  %8957 = vadd.xlane.f32.xlu0 %v8956_v20  ;;  %v8953_v25 = vsel %vm2123_vm12, %v19281_v52, 0.0  ;;  %v8961_v33 = vmul.f32 %v19281_v52, %v19281_v52 }
0x10f7   :  { %8954 = vadd.xlane.f32.xlu1 %v8953_v25  ;;  %v8966_v54 = vsel %vm2123_vm12, %v8962_v39, 0.0 }
0x10f8   :  { %v8963_v36 = vsel %vm2123_vm12, %v8961_v33, 0.0 }
0x10fa   :  { %8967 = vadd.xlane.f32.xlu0 %v8966_v54 }
0x10fb   :  { %8964 = vadd.xlane.f32.xlu1 %v8963_v36 }
0x1183   :  { %v8958_v47 = vpop.xlane.xlu0 %8957 }
0x1184   :  { %v8960_v40 = vmul.f32 0.03125, %v8958_v47  ;;  %v8955_v2 = vpop.xlane.xlu1 %8954  ;;  %v20016_v47 = vld [vmem:[#allocation20_spill] sm:$0xff] }
0x1185   :  { %v8959_v21 = vmul.f32 0.03125, %v8955_v2  ;;  %v20017_v2 = vld [vmem:[#allocation22_spill] sm:$0xff] }
0x1186   :  { %v8972_v38 = vmul.f32 %v8960_v40, %v8960_v40  ;;  %v8978_v28 = vsub.f32 %v19278_v45, %v8960_v40 }
0x1187   :  { %v8968_v17 = vpop.xlane.xlu0 %8967  ;;  %v8971_v42 = vmul.f32 %v8959_v21, %v8959_v21  ;;  %v8977_v24 = vsub.f32 %v19281_v52, %v8959_v21 }
0x1188   :  { %v8970_v56 = vmul.f32 0.03125, %v8968_v17  ;;  %v8965_v59 = vpop.xlane.xlu1 %8964  ;;  %v20018_v17 = vld [vmem:[#allocation23_spill] sm:$0xff] }
0x1189   :  { %v8969_v0 = vmul.f32 0.03125, %v8965_v59  ;;  %v20020_v59 = vld [vmem:[#allocation25_spill] sm:$0xff] }
0x118a   :  { %v8974_v49 = vsub.f32 %v8970_v56, %v8972_v38  ;;  %v20019_v56 = vld [vmem:[#allocation24_spill] sm:$0xff] }
0x118b   :  { %v8973_v58 = vsub.f32 %v8969_v0, %v8971_v42  ;;  %v20021_v42 = vld [vmem:[#allocation2_spill] sm:$0xff] }
0x118c   :  { %v8976_v7 = vmax.f32 %v8974_v49, 0.0  ;;  %v20022_v0 = vld [vmem:[#allocation6_spill] sm:$0xff]  ;;  %v20023_v49 = vld [vmem:[#allocation7_spill] sm:$0xff] }
0x118d   :  { %v8975_v29 = vmax.f32 %v8973_v58, 0.0  ;;  %v20024_v58 = vld [vmem:[#allocation8_spill] sm:$0xff] }
0x118e   :  { %v8980_v19 = vadd.f32 1e-05, %v8976_v7  ;;  %v20025_v7 = vld [vmem:[#allocation9_spill] sm:$0xff] }
0x118f   :  { %v8979_v44 = vadd.f32 1e-05, %v8975_v29  ;;  %v20026_v29 = vld [vmem:[#allocation12_spill] sm:$0xff] }
0x1190   :  { %17751 = vrsqrt.f32 %v8980_v19  ;;  %v20027_v19 = vld [vmem:[#allocation3_spill] sm:$0xff] }
0x1191   :  { %17753 = vrsqrt.f32 %v8979_v44  ;;  %v20028_v44 = vld [vmem:[#allocation10_spill] sm:$0xff] }
0x119a   :  { %v17752_v5 = vpop.eup %17751 }
0x119b   :  { %v17754_v34 = vpop.eup %17753  ;;  %v8984_v60 = vmul.f32 %v17752_v5, %v8978_v28  ;;  %v20029_v5 = vld [vmem:[#allocation11_spill] sm:$0xff] }
0x119c   :  { %v8983_v37 = vmul.f32 %v17754_v34, %v8977_v24  ;;  %v20030_v24 = vld [vmem:[#allocation14_spill] sm:$0xff] }
0x119d   :  { %v8990_v55 = vmul.f32 %v13466_v10, %v8984_v60  ;;  %v20032_v34 = vld [vmem:[#allocation18_spill] sm:$0xff]  ;;  %v20033_v60 = vld [vmem:[#allocation4_spill] sm:$0xff] }
0x119e   :  { %v8989_v12 = vmul.f32 %v13466_v10, %v8983_v37  ;;  %v20031_v10 = vld [vmem:[#allocation16_spill] sm:$0xff]  ;;  %v20035_v37 = vld [vmem:[#allocation15_spill] sm:$0xff] }
0x119f   :  { %v8996_v53 = vadd.f32 %v13467_v9, %v8990_v55  ;;  %v20036_v55 = vld [vmem:[#allocation17_spill] sm:$0xff] }
0x11a0   :  { %v8995_v13 = vadd.f32 %v13467_v9, %v8989_v12  ;;  %v20034_v9 = vld [vmem:[#allocation13_spill] sm:$0xff]  ;;  %v20037_v12 = vld [vmem:[#allocation19_spill] sm:$0xff] }
0x11a1   :  { %v19304_v22 = vmax.f32 %v8996_v53, 0.0  ;;  %v20038_v53 = vld [vmem:[#allocation21_spill] sm:$0xff] }
0x11a2   :  { %v19306_v31 = vmax.f32 %v8995_v13, 0.0 }
0x11a3   :  { %v9003_v41 = vand.u32 4294901760, %v19304_v22 }
0x11a4   :  { %v9000_v46 = vand.u32 4294901760, %v19306_v31 }
0x11a5   :  { %v9135_v51 = vsub.f32 %v19304_v22, %v9003_v41 }
0x11a6   :  { %v16877_v20 = vpack.c.bf16 %v9003_v41, %v9000_v46  ;;  %v9128_v39 = vsub.f32 %v19306_v31, %v9000_v46  ;;  %v20039_v41 = vld [vmem:[#allocation27_spill] sm:$0xff] }
0x11a7   :  { %v9136_v25 = vand.u32 4294901760, %v9135_v51 }
0x11a8   :  { %16878 = vmatprep.subr.bf16.mxu1 %v16877_v20  ;;  %v9129_v33 = vand.u32 4294901760, %v9128_v39  ;;  %v16885_v38 = vpack.c.bf16 %v9135_v51, %v9128_v39 }
0x11a9   :  { %16880 = vmatpush3.bf16.msra.mxu1 %v16877_v20  ;;  %v9137_v54 = vsub.f32 %v9135_v51, %v9136_v25 }
0x11aa   :  { %v9130_v36 = vsub.f32 %v9128_v39, %v9129_v33  ;;  %v16893_v28 = vpack.c.bf16 %v9136_v25, %v9129_v33 }
0x11ab   :  { %v9138_v18 = vand.u32 4294901760, %v9137_v54 }
0x11ac   :  { %15628 = vmatmul.mubr.f32.vlgmr.msra.gmra.mrb[20].mxu1 %v20016_v47  ;;  %v9131_v40 = vand.u32 4294901760, %v9130_v36  ;;  %v20041_v36 = vld [vmem:[#allocation29_spill] sm:$0xff] }
0x11ad   :  { %15630 = vmatprep.mubr.f32.mxu1 %v20017_v2 }
0x11ae   :  { %v16881_v21 = vpack.c.bf16 %v9138_v18, %v9131_v40  ;;  %v20042_v40 = vld [vmem:[#allocation30_spill] sm:$0xff] }
0x11b0   :  { %15631 = vmatmul.mubr.f32.gmra.mrb[22].mxu1 %v20018_v17  ;;  %16882 = vmatprep.subr.bf16.mxu1 %v16881_v21 }
0x11b1   :  { %15633 = vmatprep.mubr.f32.mxu1 %v20019_v56  ;;  %16884 = vmatpush3.bf16.msra.mxu1 %v16881_v21 }
0x11b2   :  { %16886 = vmatprep.subr.bf16.mxu1 %v16885_v38 }
0x11b4   :  { %15634 = vmatmul.mubr.f32.gmra.mrb[24].mxu1 %v20020_v59 }
0x11b5   :  { %15640 = vmatprep.mubr.msk.f32.mxu1 %vm1407_vm4, %v20021_v42 }
0x11b8   :  { %15641 = vmatmul.mubr.msk.f32.vlgmr.msra.gmra.mrb[20].mxu1 %vm1407_vm4, %v20022_v0 }
0x11b9   :  { %16888 = vmatpush3.bf16.msra.mxu1 %v16885_v38  ;;  %15643 = vmatprep.mubr.msk.f32.mxu1 %vm1407_vm4, %v20023_v49 }
0x11ba   :  { %16890 = vmatprep.subr.bf16.mxu1 %v16877_v20 }
0x11bc   :  { %15644 = vmatmul.mubr.msk.f32.gmra.mrb[22].mxu1 %vm1407_vm4, %v20024_v58 }
0x11bd   :  { %15646 = vmatprep.mubr.msk.f32.mxu1 %vm1407_vm4, %v20025_v7 }
0x11c0   :  { %15647 = vmatmul.mubr.msk.f32.gmra.mrb[24].mxu1 %vm1407_vm4, %v20026_v29 }
0x11c1   :  { %15653 = vmatprep.mubr.f32.mxu1 %v20027_v19  ;;  %v20044_v19 = vld [vmem:[#allocation32_spill] sm:$0xff] }
0x11c4   :  { %15654 = vmatmul.mubr.f32.vlgmr.msra.gmra.mrb[20].mxu1 %v20028_v44 }
0x11c5   :  { %16892 = vmatpush3.bf16.msra.mxu1 %v16877_v20  ;;  %15656 = vmatprep.mubr.f32.mxu1 %v20029_v5 }
0x11c6   :  { %16894 = vmatprep.subr.bf16.mxu1 %v16893_v28 }
0x11c8   :  { %15657 = vmatmul.mubr.f32.gmra.mrb[22].mxu1 %v20030_v24 }
0x11c9   :  { %15659 = vmatprep.mubr.f32.mxu1 %v20031_v10 }
0x11cc   :  { %15660 = vmatmul.mubr.f32.gmra.mrb[24].mxu1 %v20032_v34 }
0x11cd   :  { %15666 = vmatprep.mubr.f32.mxu1 %v20033_v60 }
0x11d0   :  { %15667 = vmatmul.mubr.f32.vlgmr.msra.gmra.mrb[20].mxu1 %v20034_v9 }
0x11d1   :  { %16896 = vmatpush3.bf16.msra.mxu1 %v16893_v28  ;;  %15669 = vmatprep.mubr.f32.mxu1 %v20035_v37 }
0x11d2   :  { %16898 = vmatprep.subr.bf16.mxu1 %v16877_v20 }
0x11d4   :  { %15670 = vmatmul.mubr.f32.gmra.mrb[22].mxu1 %v20036_v55 }
0x11d5   :  { %15672 = vmatprep.mubr.f32.mxu1 %v20037_v12 }
0x11d8   :  { %15673 = vmatmul.mubr.f32.gmra.mrb[24].mxu1 %v20038_v53 }
0x11d9   :  { %15679 = vmatprep.mubr.msk.f32.mxu1 %vm1407_vm4, %v20021_v42 }
0x11dc   :  { %15680 = vmatmul.mubr.msk.f32.vlgmr.msra.gmra.mrb[20].mxu1 %vm1407_vm4, %v20022_v0 }
0x11dd   :  { %16900 = vmatpush3.bf16.msra.mxu1 %v16877_v20  ;;  %15682 = vmatprep.mubr.msk.f32.mxu1 %vm1407_vm4, %v20023_v49  ;;  %v20040_v20 = vld [vmem:[#allocation28_spill] sm:$0xff] }
0x11e0   :  { %15683 = vmatmul.mubr.msk.f32.gmra.mrb[22].mxu1 %vm1407_vm4, %v20024_v58 }
0x11e1   :  { %15685 = vmatprep.mubr.msk.f32.mxu1 %vm1407_vm4, %v20025_v7 }
0x11e4   :  { %15686 = vmatmul.mubr.msk.f32.gmra.mrb[24].mxu1 %vm1407_vm4, %v20026_v29 }
0x11e5   :  { %15692 = vmatprep.mubr.msk.f32.mxu1 %vm1407_vm4, %v20021_v42  ;;  %v20043_v42 = vld [vmem:[#allocation31_spill] sm:$0xff] }
0x11e8   :  { %15693 = vmatmul.mubr.msk.f32.vlgmr.msra.gmra.mrb[20].mxu1 %vm1407_vm4, %v20022_v0 }
0x11e9   :  { %15695 = vmatprep.mubr.msk.f32.mxu1 %vm1407_vm4, %v20023_v49 }
0x11ec   :  { %15696 = vmatmul.mubr.msk.f32.gmra.mrb[22].mxu1 %vm1407_vm4, %v20024_v58 }
0x11ed   :  { %15698 = vmatprep.mubr.msk.f32.mxu1 %vm1407_vm4, %v20025_v7 }
0x11f0   :  { %15699 = vmatmul.mubr.msk.f32.gmra.mrb[24].mxu1 %vm1407_vm4, %v20026_v29  ;;  %v9688_v29 = vstv %s17662_s5 }
0x11f1   :  { %15713 = vmatprep.mubr.f32.mxu1 %v19994_v32 }
0x12bb   :  { %v15694_v13 = vpop.f32.mrb[20].mxu1 }
0x12bc   :  { %v17297_v46 = vadd.f32 %v20039_v41, %v15694_v13  ;;  %v9639_v51 = vpop.f32.mrb[21].mxu1 }
0x12bd   :  { %v17298_v39 = vadd.f32 %v20040_v20, %v9639_v51 }
0x12be   :  { %v9674_v33 = vmax.f32 %v17297_v46, 0.0 }
0x12bf   :  { %v15697_v25 = vpop.f32.mrb[22].mxu1  ;;  %v9673_v54 = vmax.f32 %v17298_v39, 0.0 }
0x12c0   :  { %v17299_v18 = vadd.f32 %v20041_v36, %v15697_v25  ;;  %v9651_v47 = vpop.f32.mrb[23].mxu1  ;;  %v19370_v56 = vadd.f32 1e-07, %v9674_v33 }
0x12c1   :  { %v17300_v2 = vadd.f32 %v20042_v40, %v9651_v47  ;;  %v19372_v59 = vadd.f32 1e-07, %v9673_v54 }
0x12c2   :  { %v9676_v21 = vmax.f32 %v17299_v18, 0.0  ;;  %v9691_v10 = vmul.f32 %v9688_v29, %v19370_v56 }
0x12c3   :  { %v9675_v17 = vmax.f32 %v17300_v2, 0.0  ;;  %v15700_v38 = vpop.f32.mrb[24].mxu1  ;;  %v9690_v24 = vmul.f32 %v9688_v29, %v19372_v59 }
0x12c4   :  { %v17301_v0 = vadd.f32 %v20043_v42, %v15700_v38  ;;  %v9663_v49 = vpop.f32.mrb[25].mxu1  ;;  %v19375_v58 = vadd.f32 1e-07, %v9676_v21  ;;  %v9697_v53 = vsel %vm2123_vm12, %v9691_v10, -inf }
0x12c5   :  { %v19377_v7 = vadd.f32 1e-07, %v9675_v17  ;;  %v17302_v44 = vadd.f32 %v20044_v19, %v9663_v49  ;;  %v9696_v41 = vsel %vm2123_vm12, %v9690_v24, -inf }
0x12c6   :  { %v9678_v28 = vmax.f32 %v17301_v0, 0.0  ;;  %v9693_v9 = vmul.f32 %v9688_v29, %v19375_v58 }
0x12c7   :  { %v9677_v5 = vmax.f32 %v17302_v44, 0.0  ;;  %v9692_v60 = vmul.f32 %v9688_v29, %v19377_v7 }
0x12c8   :  { %v19382_v34 = vadd.f32 1e-07, %v9678_v28  ;;  %v9699_v51 = vsel %vm2123_vm12, %v9693_v9, -inf }
0x12c9   :  { %v19386_v37 = vadd.f32 1e-07, %v9677_v5  ;;  %v9698_v46 = vsel %vm2123_vm12, %v9692_v60, -inf }
0x12ca   :  { %v9695_v55 = vmul.f32 %v9688_v29, %v19382_v34  ;;  %v9705_v33 = vmax.f32 %v9698_v46, %v9699_v51 }
0x12cb   :  { %v9694_v12 = vmul.f32 %v9688_v29, %v19386_v37 }
0x12cc   :  { %v9702_v13 = vsel %vm2123_vm12, %v9695_v55, -inf }
0x12cd   :  { %v9703_v20 = vmax.f32 %v9697_v53, %v9702_v13  ;;  %v9700_v39 = vsel %vm2123_vm12, %v9694_v12, -inf }
0x12ce   :  { %v9701_v25 = vmax.f32 %v9696_v41, %v9700_v39 }
0x12d0   :  { %v9704_v54 = vmax.f32 %v9701_v25, %v9703_v20 }
0x12d2   :  { %v9706_v36 = vmax.f32 %v9704_v54, %v9705_v33 }
0x12d4   :  { %v9707_v18 = vrot.slane %v9706_v36, 4 }
0x12d6   :  { %v9708_v47 = vmax.f32 %v9706_v36, %v9707_v18 }
0x12d8   :  { %v9709_v40 = vrot.slane %v9708_v47, 2 }
0x12da   :  { %v9710_v2 = vmax.f32 %v9708_v47, %v9709_v40 }
0x12dc   :  { %v9711_v21 = vrot.slane %v9710_v2, 1 }
0x12de   :  { %v9712_v17 = vmax.f32 %v9710_v2, %v9711_v21 }
0x12e0   :  { %v9713_v38 = vsub.f32 %v9690_v24, %v9712_v17  ;;  %v9714_v42 = vsub.f32 %v9691_v10, %v9712_v17  ;;  %v9715_v0 = vsub.f32 %v9692_v60, %v9712_v17  ;;  %v9716_v49 = vsub.f32 %v9693_v9, %v9712_v17 }
0x12e1   :  { %v9717_v29 = vsub.f32 %v9694_v12, %v9712_v17  ;;  %v9718_v19 = vsub.f32 %v9695_v55, %v9712_v17 }
0x12e2   :  { %v9719_v44 = vmul.f32 1.442695, %v9713_v38  ;;  %v9721_v28 = vmul.f32 1.442695, %v9714_v42  ;;  %v9723_v5 = vmul.f32 1.442695, %v9715_v0 }
0x12e3   :  { %v9725_v53 = vmul.f32 1.442695, %v9716_v49  ;;  %v9727_v13 = vmul.f32 1.442695, %v9717_v29  ;;  %v9729_v41 = vmul.f32 1.442695, %v9718_v19 }
0x12e4   :  { %17755 = vpow2.f32 %v9719_v44 }
0x12e5   :  { %17757 = vpow2.f32 %v9721_v28 }
0x12e6   :  { %17759 = vpow2.f32 %v9723_v5 }
0x12e7   :  { %17761 = vpow2.f32 %v9725_v53 }
0x12e8   :  { %17763 = vpow2.f32 %v9727_v13 }
0x12e9   :  { %17765 = vpow2.f32 %v9729_v41 }
0x12ee   :  { %v19396_v46 = vpop.eup %17755 }
0x12ef   :  { %v19398_v24 = vpop.eup %17757  ;;  %v9732_v10 = vand.u32 4294901760, %v19396_v46 }
0x12f0   :  { %v19401_v60 = vpop.eup %17759  ;;  %v9735_v9 = vand.u32 4294901760, %v19398_v24 }
0x12f1   :  { %v19404_v55 = vpop.eup %17761  ;;  %v9738_v12 = vand.u32 4294901760, %v19401_v60  ;;  %v19408_v51 = vsub.f32 %v19396_v46, %v9732_v10 }
0x12f2   :  { %v19410_v20 = vpop.eup %17763  ;;  %v19412_v39 = vpack.c.bf16 %v9735_v9, %v9732_v10  ;;  %v9741_v25 = vand.u32 4294901760, %v19404_v55  ;;  %v19416_v33 = vsub.f32 %v19398_v24, %v9735_v9 }
0x12f3   :  { %v19418_v54 = vpop.eup %17765  ;;  %v9744_v36 = vand.u32 4294901760, %v19410_v20  ;;  %v9825_v18 = vand.u32 4294901760, %v19408_v51  ;;  %v19423_v47 = vsub.f32 %v19401_v60, %v9738_v12 }
0x12f4   :  { %16902 = vmatprep.subr.bf16.mxu1 %v19412_v39  ;;  %v19426_v40 = vpack.c.bf16 %v9741_v25, %v9738_v12  ;;  %v9747_v2 = vand.u32 4294901760, %v19418_v54  ;;  %v9832_v21 = vand.u32 4294901760, %v19416_v33  ;;  %v9845_v17 = vsub.f32 %v19404_v55, %v9741_v25 }
0x12f5   :  { %16904 = vmatpush3.bf16.msra.mxu1 %v19412_v39  ;;  %v9826_v38 = vsub.f32 %v19408_v51, %v9825_v18  ;;  %v9839_v42 = vand.u32 4294901760, %v19423_v47  ;;  %v9852_v0 = vsub.f32 %v19410_v20, %v9744_v36 }
0x12f6   :  { %16906 = vmatprep.subr.bf16.mxu1 %v19426_v40  ;;  %v9833_v49 = vsub.f32 %v19416_v33, %v9832_v21  ;;  %v9846_v29 = vand.u32 4294901760, %v9845_v17  ;;  %v9859_v19 = vsub.f32 %v19418_v54, %v9747_v2  ;;  %v19438_v44 = vpack.c.bf16 %v9747_v2, %v9744_v36 }
0x12f7   :  { %v9827_v28 = vand.u32 4294901760, %v9826_v38  ;;  %v9840_v5 = vsub.f32 %v19423_v47, %v9839_v42  ;;  %v9853_v41 = vand.u32 4294901760, %v9852_v0 }
0x12f8   :  { %v9834_v53 = vand.u32 4294901760, %v9833_v49  ;;  %v9847_v13 = vsub.f32 %v9845_v17, %v9846_v29  ;;  %v9860_v10 = vand.u32 4294901760, %v9859_v19 }
0x12f9   :  { %16908 = vmatpush3.bf16.msra.mxu1 %v19426_v40  ;;  %v9841_v9 = vand.u32 4294901760, %v9840_v5  ;;  %v9854_v52 = vsub.f32 %v9852_v0, %v9853_v41  ;;  %v16929_v5 = vpack.c.bf16 %v9845_v17, %v19423_v47 }
0x12fa   :  { %16910 = vmatprep.subr.bf16.mxu1 %v19438_v44  ;;  %v16913_v12 = vpack.c.bf16 %v9834_v53, %v9827_v28  ;;  %v9848_v25 = vand.u32 4294901760, %v9847_v13  ;;  %v9861_v45 = vsub.f32 %v9859_v19, %v9860_v10  ;;  %v16925_v28 = vpack.c.bf16 %v19416_v33, %v19408_v51 }
0x12fb   :  { %v9855_v2 = vand.u32 4294901760, %v9854_v52  ;;  %v16949_v52 = vpack.c.bf16 %v9832_v21, %v9825_v18  ;;  %v16953_v51 = vpack.c.bf16 %v9846_v29, %v9839_v42  ;;  %v16957_v33 = vpack.c.bf16 %v9860_v10, %v9853_v41 }
0x12fc   :  { %v16917_v36 = vpack.c.bf16 %v9848_v25, %v9841_v9  ;;  %v9862_v38 = vand.u32 4294901760, %v9861_v45  ;;  %v16933_v45 = vpack.c.bf16 %v9859_v19, %v9852_v0  ;;  %v20050_v9 = vld [vmem:[#allocation37_spill] sm:$0xff] }
0x12fd   :  { %16912 = vmatpush3.bf16.msra.mxu1 %v19438_v44 }
0x12fe   :  { %16914 = vmatprep.subr.bf16.mxu1 %v16913_v12  ;;  %v16921_v49 = vpack.c.bf16 %v9862_v38, %v9855_v2 }
0x1300   :  { %15714 = vmatmul.mubr.f32.vlgmr.msra.gmra.mrb[26].mxu1 %v18450_v26 }
0x1301   :  { %16916 = vmatpush3.bf16.msra.mxu1 %v16913_v12  ;;  %15728 = vmatprep.mubr.msk.f32.mxu1 %vm2159_vm11, %v18304_v43 }
0x1302   :  { %16918 = vmatprep.subr.bf16.mxu1 %v16917_v36 }
0x1305   :  { %16920 = vmatpush3.bf16.msra.mxu1 %v16917_v36 }
0x1306   :  { %16922 = vmatprep.subr.bf16.mxu1 %v16921_v49 }
0x1309   :  { %16924 = vmatpush3.bf16.msra.mxu1 %v16921_v49 }
0x130a   :  { %16926 = vmatprep.subr.bf16.mxu1 %v16925_v28 }
0x130c   :  { %15729 = vmatmul.mubr.msk.f32.vlgmr.msra.gmra.mrb[26].mxu1 %vm2159_vm11, %v18369_v62 }
0x130d   :  { %16928 = vmatpush3.bf16.msra.mxu1 %v16925_v28  ;;  %15743 = vmatprep.mubr.f32.mxu1 %v18310_v48 }
0x130e   :  { %16930 = vmatprep.subr.bf16.mxu1 %v16929_v5 }
0x1311   :  { %16932 = vmatpush3.bf16.msra.mxu1 %v16929_v5 }
0x1312   :  { %16934 = vmatprep.subr.bf16.mxu1 %v16933_v45 }
0x1315   :  { %16936 = vmatpush3.bf16.msra.mxu1 %v16933_v45 }
0x1316   :  { %16938 = vmatprep.subr.bf16.mxu1 %v19412_v39 }
0x1318   :  { %15744 = vmatmul.mubr.f32.vlgmr.msra.gmra.mrb[26].mxu1 %v18382_v8 }
0x1319   :  { %16940 = vmatpush3.bf16.msra.mxu1 %v19412_v39  ;;  %15758 = vmatprep.mubr.f32.mxu1 %v18313_v50 }
0x131a   :  { %16942 = vmatprep.subr.bf16.mxu1 %v19426_v40 }
0x131d   :  { %16944 = vmatpush3.bf16.msra.mxu1 %v19426_v40 }
0x131e   :  { %16946 = vmatprep.subr.bf16.mxu1 %v19438_v44 }
0x1321   :  { %16948 = vmatpush3.bf16.msra.mxu1 %v19438_v44 }
0x1322   :  { %16950 = vmatprep.subr.bf16.mxu1 %v16949_v52 }
0x1324   :  { %15759 = vmatmul.mubr.f32.vlgmr.msra.gmra.mrb[26].mxu1 %v18413_v30 }
0x1325   :  { %16952 = vmatpush3.bf16.msra.mxu1 %v16949_v52  ;;  %15773 = vmatprep.mubr.msk.f32.mxu1 %vm2159_vm11, %v18304_v43 }
0x1326   :  { %16954 = vmatprep.subr.bf16.mxu1 %v16953_v51 }
0x1329   :  { %16956 = vmatpush3.bf16.msra.mxu1 %v16953_v51 }
0x132a   :  { %16958 = vmatprep.subr.bf16.mxu1 %v16957_v33 }
0x132d   :  { %16960 = vmatpush3.bf16.msra.mxu1 %v16957_v33 }
0x132e   :  { %16962 = vmatprep.subr.bf16.mxu1 %v19412_v39 }
0x1330   :  { %15774 = vmatmul.mubr.msk.f32.vlgmr.msra.gmra.mrb[26].mxu1 %vm2159_vm11, %v18369_v62 }
0x1331   :  { %16964 = vmatpush3.bf16.msra.mxu1 %v19412_v39  ;;  %15788 = vmatprep.mubr.msk.f32.mxu1 %vm2159_vm11, %v18304_v43 }
0x1332   :  { %16966 = vmatprep.subr.bf16.mxu1 %v19426_v40 }
0x1335   :  { %16968 = vmatpush3.bf16.msra.mxu1 %v19426_v40 }
0x1336   :  { %16970 = vmatprep.subr.bf16.mxu1 %v19438_v44 }
0x1339   :  { %16972 = vmatpush3.bf16.msra.mxu1 %v19438_v44 }
0x133c   :  { %15789 = vmatmul.mubr.msk.f32.vlgmr.msra.gmra.mrb[26].mxu1 %vm2159_vm11, %v18369_v62 }
0x133d   :  { %15881 = vmatprep.mubr.f32.mxu1 %v19994_v32 }
0x140f   :  { %v15790_v18 = vpop.f32.mrb[26].mxu1 }
0x1410   :  { %v10289_v47 = vand.u32 4294901760, %v15790_v18  ;;  %v10275_v21 = vpop.f32.mrb[27].mxu1 }
0x1411   :  { %v10286_v39 = vand.u32 4294901760, %v10275_v21 }
0x1412   :  { %v10421_v17 = vsub.f32 %v15790_v18, %v10289_v47 }
0x1413   :  { %v16973_v42 = vpack.c.bf16 %v10289_v47, %v10286_v39  ;;  %v10414_v0 = vsub.f32 %v10275_v21, %v10286_v39 }
0x1414   :  { %v10422_v29 = vand.u32 4294901760, %v10421_v17 }
0x1415   :  { %v10415_v19 = vand.u32 4294901760, %v10414_v0  ;;  %16974 = vmatprep.subr.bf16.mxu0 %v16973_v42  ;;  %v16981_v40 = vpack.c.bf16 %v10421_v17, %v10414_v0 }
0x1416   :  { %v10423_v53 = vsub.f32 %v10421_v17, %v10422_v29  ;;  %16976 = vmatpush3.bf16.msra.mxu0 %v16973_v42 }
0x1417   :  { %v10416_v13 = vsub.f32 %v10414_v0, %v10415_v19  ;;  %v16989_v44 = vpack.c.bf16 %v10422_v29, %v10415_v19 }
0x1418   :  { %v10424_v41 = vand.u32 4294901760, %v10423_v53 }
0x1419   :  { %15796 = vmatmul.mubr.f32.vlgmr.msra.gmra.mrb[32].mxu0 %v18547_v6  ;;  %v10417_v10 = vand.u32 4294901760, %v10416_v13  ;;  %v20046_v6 = vld [vmem:[#allocation38_spill] sm:$0xff] }
0x141a   :  { %15798 = vmatprep.mubr.f32.mxu0 %v18554_v61  ;;  %v20047_v61 = vld [vmem:[#allocation40_spill] sm:$0xff] }
0x141b   :  { %v16977_v32 = vpack.c.bf16 %v10424_v41, %v10417_v10 }
0x141d   :  { %15799 = vmatmul.mubr.f32.gmra.mrb[34].mxu0 %v18560_v15  ;;  %16978 = vmatprep.subr.bf16.mxu0 %v16977_v32  ;;  %v20048_v15 = vld [vmem:[#allocation33_spill] sm:$0xff] }
0x141e   :  { %15801 = vmatprep.mubr.f32.mxu0 %v18564_v16  ;;  %16980 = vmatpush3.bf16.msra.mxu0 %v16977_v32  ;;  %v20045_v16 = vld [vmem:[#allocation36_spill] sm:$0xff] }
0x141f   :  { %16982 = vmatprep.subr.bf16.mxu0 %v16981_v40 }
0x1421   :  { %15802 = vmatmul.mubr.f32.gmra.mrb[36].mxu0 %v18568_v35  ;;  %v20049_v35 = vld [vmem:[#allocation35_spill] sm:$0xff] }
0x1422   :  { %15808 = vmatprep.mubr.msk.f32.mxu0 %vm1407_vm4, %v18373_v27 }
0x1425   :  { %15809 = vmatmul.mubr.msk.f32.vlgmr.msra.gmra.mrb[32].mxu0 %vm1407_vm4, %v18494_v11 }
0x1426   :  { %16984 = vmatpush3.bf16.msra.mxu0 %v16981_v40  ;;  %15811 = vmatprep.mubr.msk.f32.mxu0 %vm1407_vm4, %v18497_v14 }
0x1427   :  { %16986 = vmatprep.subr.bf16.mxu0 %v16973_v42 }
0x1429   :  { %15812 = vmatmul.mubr.msk.f32.gmra.mrb[34].mxu0 %vm1407_vm4, %v18504_v3 }
0x142a   :  { %15814 = vmatprep.mubr.msk.f32.mxu0 %vm1407_vm4, %v18509_v4 }
0x142d   :  { %15815 = vmatmul.mubr.msk.f32.gmra.mrb[36].mxu0 %vm1407_vm4, %v18519_v1 }
0x142e   :  { %15821 = vmatprep.mubr.f32.mxu0 %v18403_v63  ;;  %v20051_v63 = vld [vmem:[#allocation39_spill] sm:$0xff] }
0x1431   :  { %15822 = vmatmul.mubr.f32.vlgmr.msra.gmra.mrb[32].mxu0 %v18512_v23  ;;  %v20052_v23 = vld [vmem:[#allocation41_spill] sm:$0xff] }
0x1432   :  { %16988 = vmatpush3.bf16.msra.mxu0 %v16973_v42  ;;  %15824 = vmatprep.mubr.f32.mxu0 %v18514_v57  ;;  %v20053_v57 = vld [vmem:[#allocation42_spill] sm:$0xff] }
0x1433   :  { %16990 = vmatprep.subr.bf16.mxu0 %v16989_v44 }
0x1435   :  { %15825 = vmatmul.mubr.f32.gmra.mrb[34].mxu0 %v20045_v16 }
0x1436   :  { %15827 = vmatprep.mubr.f32.mxu0 %v20046_v6 }
0x1439   :  { %15828 = vmatmul.mubr.f32.gmra.mrb[36].mxu0 %v20047_v61 }
0x143a   :  { %15834 = vmatprep.mubr.f32.mxu0 %v20048_v15 }
0x143d   :  { %15835 = vmatmul.mubr.f32.vlgmr.msra.gmra.mrb[32].mxu0 %v20049_v35 }
0x143e   :  { %16992 = vmatpush3.bf16.msra.mxu0 %v16989_v44  ;;  %15837 = vmatprep.mubr.f32.mxu0 %v20050_v9 }
0x143f   :  { %16994 = vmatprep.subr.bf16.mxu0 %v16973_v42 }
0x1441   :  { %15838 = vmatmul.mubr.f32.gmra.mrb[34].mxu0 %v20051_v63 }
0x1442   :  { %15840 = vmatprep.mubr.f32.mxu0 %v20052_v23 }
0x1445   :  { %15841 = vmatmul.mubr.f32.gmra.mrb[36].mxu0 %v20053_v57 }
0x1446   :  { %15847 = vmatprep.mubr.msk.f32.mxu0 %vm1407_vm4, %v18373_v27 }
0x1449   :  { %15848 = vmatmul.mubr.msk.f32.vlgmr.msra.gmra.mrb[32].mxu0 %vm1407_vm4, %v18494_v11 }
0x144a   :  { %16996 = vmatpush3.bf16.msra.mxu0 %v16973_v42  ;;  %15850 = vmatprep.mubr.msk.f32.mxu0 %vm1407_vm4, %v18497_v14 }
0x144d   :  { %15851 = vmatmul.mubr.msk.f32.gmra.mrb[34].mxu0 %vm1407_vm4, %v18504_v3 }
0x144e   :  { %15853 = vmatprep.mubr.msk.f32.mxu0 %vm1407_vm4, %v18509_v4 }
0x1451   :  { %15854 = vmatmul.mubr.msk.f32.gmra.mrb[36].mxu0 %vm1407_vm4, %v18519_v1 }
0x1452   :  { %15860 = vmatprep.mubr.msk.f32.mxu0 %vm1407_vm4, %v18373_v27 }
0x1455   :  { %15861 = vmatmul.mubr.msk.f32.vlgmr.msra.gmra.mrb[32].mxu0 %vm1407_vm4, %v18494_v11 }
0x1456   :  { %15863 = vmatprep.mubr.msk.f32.mxu0 %vm1407_vm4, %v18497_v14 }
0x1459   :  { %15864 = vmatmul.mubr.msk.f32.gmra.mrb[34].mxu0 %vm1407_vm4, %v18504_v3 }
0x145a   :  { %15866 = vmatprep.mubr.msk.f32.mxu0 %vm1407_vm4, %v18509_v4 }
0x145d   :  { %15867 = vmatmul.mubr.msk.f32.gmra.mrb[36].mxu0 %vm1407_vm4, %v18519_v1  ;;  %vm13318_vm4 = vcmask 64512  }
0x1528   :  { %v15862_v12 = vpop.f32.mrb[32].mxu0 }
0x1529   :  { %17767 = vrcp.f32 %v15862_v12  ;;  %v10925_v25 = vpop.f32.mrb[33].mxu0 }
0x152a   :  { %17769 = vrcp.f32 %v10925_v25 }
0x152c   :  { %v15865_v27 = vpop.f32.mrb[34].mxu0 }
0x152d   :  { %17771 = vrcp.f32 %v15865_v27  ;;  %v10937_v36 = vpop.f32.mrb[35].mxu0 }
0x152e   :  { %17773 = vrcp.f32 %v10937_v36 }
0x1530   :  { %v15868_v11 = vpop.f32.mrb[36].mxu0 }
0x1531   :  { %17775 = vrcp.f32 %v15868_v11  ;;  %v10949_v14 = vpop.f32.mrb[37].mxu0 }
0x1532   :  { %17777 = vrcp.f32 %v10949_v14 }
0x1533   :  { %v17768_v2 = vpop.eup %17767 }
0x1534   :  { %v17770_v3 = vpop.eup %17769  ;;  %v10962_v38 = vmul.f32 %v17768_v2, %v19398_v24 }
0x1535   :  { %v10960_v4 = vmul.f32 %v17770_v3, %v19396_v46 }
0x1536   :  { %v10972_v1 = vmul.f32 %v10962_v38, %v19370_v56 }
0x1537   :  { %v17772_v49 = vpop.eup %17771  ;;  %v10971_v28 = vmul.f32 %v10960_v4, %v19372_v59 }
0x1538   :  { %v17774_v5 = vpop.eup %17773  ;;  %v10981_v45 = vand.u32 4294901760, %v10972_v1  ;;  %v10966_v52 = vmul.f32 %v17772_v49, %v19404_v55 }
0x1539   :  { %v10978_v51 = vand.u32 4294901760, %v10971_v28  ;;  %v10964_v33 = vmul.f32 %v17774_v5, %v19401_v60 }
0x153a   :  { %v10974_v18 = vmul.f32 %v10966_v52, %v19375_v58  ;;  %v11077_v47 = vsub.f32 %v10972_v1, %v10981_v45 }
0x153b   :  { %v17776_v21 = vpop.eup %17775  ;;  %v10973_v24 = vmul.f32 %v10964_v33, %v19377_v7  ;;  %v19538_v39 = vpack.c.bf16 %v10981_v45, %v10978_v51  ;;  %v11070_v46 = vsub.f32 %v10971_v28, %v10978_v51  ;;  %v13518_v28 = vld [vmem:[%s19814_s12 + $0x50] sm:$0xff] }
0x153c   :  { %v17778_v56 = vpop.eup %17777  ;;  %v10987_v17 = vand.u32 4294901760, %v10974_v18  ;;  %v10970_v59 = vmul.f32 %v17776_v21, %v19418_v54  ;;  %v11078_v42 = vand.u32 4294901760, %v11077_v47  ;;  %v11554_v5 = vand.u32 4294901760, %v13518_v28 }
0x153d   :  { %v10984_v0 = vand.u32 4294901760, %v10973_v24  ;;  %v10968_v55 = vmul.f32 %v17778_v56, %v19410_v20  ;;  %16998 = vmatprep.subr.bf16.mxu1 %v19538_v39  ;;  %v11071_v60 = vand.u32 4294901760, %v11070_v46  ;;  %v17021_v29 = vpack.c.bf16 %v11077_v47, %v11070_v46 }
0x153e   :  { %v10976_v58 = vmul.f32 %v10970_v59, %v19382_v34  ;;  %17000 = vmatpush3.bf16.msra.mxu1 %v19538_v39  ;;  %v11079_v7 = vsub.f32 %v11077_v47, %v11078_v42  ;;  %v11091_v19 = vsub.f32 %v10974_v18, %v10987_v17  ;;  %v11652_v21 = vsub.f32 %v13518_v28, %v11554_v5 }
0x153f   :  { %v10975_v40 = vmul.f32 %v10968_v55, %v19386_v37  ;;  %v19546_v53 = vpack.c.bf16 %v10987_v17, %v10984_v0  ;;  %v11072_v13 = vsub.f32 %v11070_v46, %v11071_v60  ;;  %v11084_v54 = vsub.f32 %v10973_v24, %v10984_v0 }
0x1540   :  { %v10993_v44 = vand.u32 4294901760, %v10976_v58  ;;  %v11080_v41 = vand.u32 4294901760, %v11079_v7  ;;  %v11092_v10 = vand.u32 4294901760, %v11091_v19  ;;  %v17045_v20 = vpack.c.bf16 %v11078_v42, %v11071_v60 }
0x1541   :  { %v10990_v32 = vand.u32 4294901760, %v10975_v40  ;;  %17002 = vmatprep.subr.bf16.mxu1 %v19546_v53  ;;  %v11073_v16 = vand.u32 4294901760, %v11072_v13  ;;  %v11085_v6 = vand.u32 4294901760, %v11084_v54  ;;  %v17025_v34 = vpack.c.bf16 %v11091_v19, %v11084_v54 }
0x1542   :  { %17004 = vmatpush3.bf16.msra.mxu1 %v19546_v53  ;;  %v11093_v61 = vsub.f32 %v11091_v19, %v11092_v10  ;;  %v11105_v15 = vsub.f32 %v10976_v58, %v10993_v44  ;;  %v11653_v56 = vand.u32 4294901760, %v11652_v21 }
0x1543   :  { %v17005_v35 = vpack.c.bf16 %v10993_v44, %v10990_v32  ;;  %v17009_v37 = vpack.c.bf16 %v11080_v41, %v11073_v16  ;;  %v11086_v9 = vsub.f32 %v11084_v54, %v11085_v6  ;;  %v11098_v63 = vsub.f32 %v10975_v40, %v10990_v32 }
0x1544   :  { %v11094_v23 = vand.u32 4294901760, %v11093_v61  ;;  %v11106_v57 = vand.u32 4294901760, %v11105_v15  ;;  %v17049_v12 = vpack.c.bf16 %v11092_v10, %v11085_v6  ;;  %v11654_v42 = vsub.f32 %v11652_v21, %v11653_v56 }
0x1545   :  { %17006 = vmatprep.subr.bf16.mxu1 %v17005_v35  ;;  %v11087_v25 = vand.u32 4294901760, %v11086_v9  ;;  %v11099_v27 = vand.u32 4294901760, %v11098_v63  ;;  %v17029_v36 = vpack.c.bf16 %v11105_v15, %v11098_v63 }
0x1546   :  { %17008 = vmatpush3.bf16.msra.mxu1 %v17005_v35  ;;  %v11107_v11 = vsub.f32 %v11105_v15, %v11106_v57  ;;  %v11655_v55 = vand.u32 4294901760, %v11654_v42 }
0x1547   :  { %17010 = vmatprep.subr.bf16.mxu1 %v17009_v37  ;;  %v17013_v14 = vpack.c.bf16 %v11094_v23, %v11087_v25  ;;  %v11100_v2 = vsub.f32 %v11098_v63, %v11099_v27  ;;  %v17053_v3 = vpack.c.bf16 %v11106_v57, %v11099_v27 }
0x1548   :  { %v11108_v38 = vand.u32 4294901760, %v11107_v11 }
0x1549   :  { %15882 = vmatmul.mubr.f32.vlgmr.msra.gmra.mrb[28].mxu1 %v18450_v26  ;;  %v11101_v4 = vand.u32 4294901760, %v11100_v2  ;;  %v13523_v2 = vld [vmem:[%s19816_s16 + $0x80] sm:$0xff] }
0x154a   :  { %17012 = vmatpush3.bf16.msra.mxu1 %v17009_v37  ;;  %15896 = vmatprep.mubr.msk.f32.mxu1 %vm2159_vm11, %v18304_v43 }
0x154b   :  { %17014 = vmatprep.subr.bf16.mxu1 %v17013_v14  ;;  %v17017_v1 = vpack.c.bf16 %v11108_v38, %v11101_v4  ;;  %v13525_v38 = vld [vmem:[%s19816_s16 + $0x90] sm:$0xff]  ;;  %v12144_v4 = vand.u32 4294901760, %v13523_v2 }
0x154e   :  { %17016 = vmatpush3.bf16.msra.mxu1 %v17013_v14 }
0x154f   :  { %17018 = vmatprep.subr.bf16.mxu1 %v17017_v1 }
0x1552   :  { %17020 = vmatpush3.bf16.msra.mxu1 %v17017_v1 }
0x1553   :  { %17022 = vmatprep.subr.bf16.mxu1 %v17021_v29 }
0x1555   :  { %15897 = vmatmul.mubr.msk.f32.vlgmr.msra.gmra.mrb[28].mxu1 %vm2159_vm11, %v18369_v62 }
0x1556   :  { %17024 = vmatpush3.bf16.msra.mxu1 %v17021_v29  ;;  %15911 = vmatprep.mubr.f32.mxu1 %v18310_v48  ;;  %v13516_v48 = vld [vmem:[%s19814_s12 + $0x40] sm:$0xff] }
0x1557   :  { %17026 = vmatprep.subr.bf16.mxu1 %v17025_v34 }
0x155a   :  { %17028 = vmatpush3.bf16.msra.mxu1 %v17025_v34 }
0x155b   :  { %17030 = vmatprep.subr.bf16.mxu1 %v17029_v36 }
0x155e   :  { %17032 = vmatpush3.bf16.msra.mxu1 %v17029_v36 }
0x155f   :  { %17034 = vmatprep.subr.bf16.mxu1 %v19538_v39 }
0x1561   :  { %15912 = vmatmul.mubr.f32.vlgmr.msra.gmra.mrb[28].mxu1 %v18382_v8  ;;  %v11548_v8 = vand.u32 4294901760, %v13516_v48 }
0x1562   :  { %17036 = vmatpush3.bf16.msra.mxu1 %v19538_v39  ;;  %15926 = vmatprep.mubr.f32.mxu1 %v18313_v50  ;;  %v13517_v50 = vld [vmem:[%s19814_s12 + $0x48] sm:$0xff] }
0x1563   :  { %17038 = vmatprep.subr.bf16.mxu1 %v19546_v53  ;;  %v11638_v26 = vsub.f32 %v13516_v48, %v11548_v8  ;;  %v13526_v48 = vld [vmem:[%s19816_s16 + $0x98] sm:$0xff] }
0x1565   :  { %v11639_v52 = vand.u32 4294901760, %v11638_v26 }
0x1566   :  { %17040 = vmatpush3.bf16.msra.mxu1 %v19546_v53 }
0x1567   :  { %17042 = vmatprep.subr.bf16.mxu1 %v17005_v35  ;;  %v11640_v18 = vsub.f32 %v11638_v26, %v11639_v52 }
0x156a   :  { %17044 = vmatpush3.bf16.msra.mxu1 %v17005_v35 }
0x156b   :  { %17046 = vmatprep.subr.bf16.mxu1 %v17045_v20 }
0x156d   :  { %15927 = vmatmul.mubr.f32.vlgmr.msra.gmra.mrb[28].mxu1 %v18413_v30  ;;  %v11551_v30 = vand.u32 4294901760, %v13517_v50 }
0x156e   :  { %17048 = vmatpush3.bf16.msra.mxu1 %v17045_v20  ;;  %15941 = vmatprep.mubr.msk.f32.mxu1 %vm2159_vm11, %v18304_v43 }
0x156f   :  { %17050 = vmatprep.subr.bf16.mxu1 %v17049_v12  ;;  %v11645_v49 = vsub.f32 %v13517_v50, %v11551_v30  ;;  %v12150_v50 = vand.u32 4294901760, %v13525_v38 }
0x1571   :  { %v11646_v51 = vand.u32 4294901760, %v11645_v49  ;;  %v17085_v58 = vpack.c.bf16 %v11645_v49, %v11638_v26 }
0x1572   :  { %17052 = vmatpush3.bf16.msra.mxu1 %v17049_v12 }
0x1573   :  { %17054 = vmatprep.subr.bf16.mxu1 %v17053_v3  ;;  %v11647_v47 = vsub.f32 %v11645_v49, %v11646_v51  ;;  %v17101_v19 = vpack.c.bf16 %v11646_v51, %v11639_v52 }
0x1575   :  { %v11648_v46 = vand.u32 4294901760, %v11647_v47  ;;  %v12238_v47 = vsub.f32 %v13523_v2, %v12144_v4 }
0x1576   :  { %17056 = vmatpush3.bf16.msra.mxu1 %v17053_v3  ;;  %v13524_v3 = vld [vmem:[%s19816_s16 + $0x88] sm:$0xff] }
0x1577   :  { %17058 = vmatprep.subr.bf16.mxu1 %v19538_v39  ;;  %v12147_v1 = vand.u32 4294901760, %v13524_v3 }
0x1579   :  { %15942 = vmatmul.mubr.msk.f32.vlgmr.msra.gmra.mrb[28].mxu1 %vm2159_vm11, %v18369_v62  ;;  %v19642_v26 = vpack.c.bf16 %v12147_v1, %v12144_v4 }
0x157a   :  { %17060 = vmatpush3.bf16.msra.mxu1 %v19538_v39  ;;  %15956 = vmatprep.mubr.msk.f32.mxu1 %vm2159_vm11, %v18304_v43  ;;  %v19581_v43 = vpack.c.bf16 %v11551_v30, %v11548_v8  ;;  %v11641_v39 = vand.u32 4294901760, %v11640_v18  ;;  %v13527_v8 = vld [vmem:[%s19816_s16 + $0xa0] sm:$0xff]  ;;  %v13528_v30 = vld [vmem:[%s19816_s16 + $0xa8] sm:$0xff] }
0x157b   :  { %17062 = vmatprep.subr.bf16.mxu1 %v19546_v53  ;;  %v12156_v49 = vand.u32 4294901760, %v13527_v8  ;;  %v12159_v28 = vand.u32 4294901760, %v13528_v30 }
0x157c   :  { %17070 = vmatprep.subr.bf16.mxu0 %v19581_v43  ;;  %v17077_v59 = vpack.c.bf16 %v11648_v46, %v11641_v39 }
0x157d   :  { %17072 = vmatpush3.bf16.msra.mxu0 %v19581_v43  ;;  %v19655_v52 = vpack.c.bf16 %v12159_v28, %v12156_v49 }
0x157e   :  { %17064 = vmatpush3.bf16.msra.mxu1 %v19546_v53 }
0x157f   :  { %17066 = vmatprep.subr.bf16.mxu1 %v17005_v35 }
0x1582   :  { %17068 = vmatpush3.bf16.msra.mxu1 %v17005_v35 }
0x1583   :  { %17118 = vmatprep.subr.bf16.mxu1 %v19642_v26 }
0x1585   :  { %15957 = vmatmul.mubr.msk.f32.vlgmr.msra.gmra.mrb[28].mxu1 %vm2159_vm11, %v18369_v62  ;;  %v13519_v62 = vld [vmem:[%s19814_s12 + $0x58] sm:$0xff] }
0x1586   :  { %v11557_v45 = vand.u32 4294901760, %v13519_v62  ;;  %17120 = vmatpush3.bf16.msra.mxu1 %v19642_v26 }
0x1588   :  { %v19591_v33 = vpack.c.bf16 %v11557_v45, %v11554_v5  ;;  %v11659_v24 = vsub.f32 %v13519_v62, %v11557_v45  ;;  %v13529_v5 = vld [vmem:[%s19816_s16 + $0xb0] sm:$0xff]  ;;  %v13530_v45 = vld [vmem:[%s19816_s16 + $0xb8] sm:$0xff] }
0x1589   :  { %v12162_v51 = vand.u32 4294901760, %v13529_v5 }
0x158a   :  { %17074 = vmatprep.subr.bf16.mxu0 %v19591_v33  ;;  %v11660_v17 = vand.u32 4294901760, %v11659_v24  ;;  %v17089_v7 = vpack.c.bf16 %v11659_v24, %v11652_v21  ;;  %v12245_v21 = vsub.f32 %v13524_v3, %v12147_v1 }
0x158b   :  { %17076 = vmatpush3.bf16.msra.mxu0 %v19591_v33 }
0x158c   :  { %v11661_v0 = vsub.f32 %v11659_v24, %v11660_v17  ;;  %17078 = vmatprep.subr.bf16.mxu0 %v17077_v59  ;;  %v17105_v40 = vpack.c.bf16 %v11660_v17, %v11653_v56  ;;  %v12239_v24 = vand.u32 4294901760, %v12238_v47  ;;  %v12246_v39 = vand.u32 4294901760, %v12245_v21 }
0x158d   :  { %v12252_v17 = vsub.f32 %v13525_v38, %v12150_v50 }
0x158e   :  { %v11662_v60 = vand.u32 4294901760, %v11661_v0  ;;  %v12240_v46 = vsub.f32 %v12238_v47, %v12239_v24  ;;  %v12247_v56 = vsub.f32 %v12245_v21, %v12246_v39 }
0x1590   :  { %v17081_v29 = vpack.c.bf16 %v11662_v60, %v11655_v55  ;;  %v12241_v42 = vand.u32 4294901760, %v12240_v46  ;;  %v12248_v0 = vand.u32 4294901760, %v12247_v56  ;;  %v12253_v55 = vand.u32 4294901760, %v12252_v17  ;;  %v13521_v56 = vld [vmem:[%s19817_s14 + $0x2] ss:$0 sm:$0xff] }
0x1658   :  { %v15958_v53 = vpop.f32.mrb[28].mxu1 }
0x1659   :  { %v17303_v13 = vadd.f32 %v15958_v53, %v19304_v22  ;;  %v11521_v54 = vpop.f32.mrb[29].mxu1  ;;  %v13520_v22 = vld [vmem:[%s19815_s13 + $0x2] ss:$0 sm:$0xff] }
0x165a   :  { %v17304_v44 = vadd.f32 %v11521_v54, %v19306_v31 }
0x165b   :  { %v11545_v41 = vsel %vm2123_vm12, %v17303_v13, 0 }
0x165c   :  { %v11626_v10 = vand.u32 4294901760, %v11545_v41  ;;  %v11542_v20 = vsel %vm2123_vm12, %v17304_v44, 0 }
0x165d   :  { %v11616_v32 = vand.u32 4294901760, %v11542_v20 }
0x165e   :  { %v11627_v16 = vsub.f32 %v11545_v41, %v11626_v10 }
0x165f   :  { %v11617_v6 = vsub.f32 %v11542_v20, %v11616_v32  ;;  %v12280_v20 = vsub.f32 %v13529_v5, %v12162_v51 }
0x1660   :  { %v11628_v34 = vand.u32 4294901760, %v11627_v16 }
0x1661   :  { %v11618_v61 = vand.u32 4294901760, %v11617_v6 }
0x1662   :  { %v11629_v15 = vsub.f32 %v11627_v16, %v11628_v34 }
0x1663   :  { %v11619_v35 = vsub.f32 %v11617_v6, %v11618_v61 }
0x1664   :  { %v11630_v9 = vand.u32 4294901760, %v11629_v15 }
0x1665   :  { %v11620_v37 = vand.u32 4294901760, %v11619_v35 }
0x1667   :  { %15967 = vmatprep.mubr.f32.mxu0 %v11620_v37 }
0x1668   :  { %15968 = vmatmul.mubr.f32.vlgmr.msra.gmra.mrb[38].mxu0 %v11630_v9 }
0x1669   :  { %17080 = vmatpush3.bf16.msra.mxu0 %v17077_v59  ;;  %15978 = vmatprep.mubr.f32.mxu0 %v11616_v32 }
0x166a   :  { %17082 = vmatprep.subr.bf16.mxu0 %v17081_v29 }
0x166d   :  { %17084 = vmatpush3.bf16.msra.mxu0 %v17081_v29  ;;  %v19664_v29 = vpack.c.bf16 %v12248_v0, %v12241_v42  ;;  %v13522_v0 = vld [vmem:[%s19818_s15 + $0x2] ss:$0 sm:$0xff] }
0x166e   :  { %17086 = vmatprep.subr.bf16.mxu0 %v17085_v58 }
0x1670   :  { %15979 = vmatmul.mubr.f32.vlgmr.msra.gmra.mrb[38].mxu0 %v11626_v10 }
0x1671   :  { %17088 = vmatpush3.bf16.msra.mxu0 %v17085_v58  ;;  %15989 = vmatprep.mubr.f32.mxu0 %v11617_v6  ;;  %v12254_v58 = vsub.f32 %v12252_v17, %v12253_v55 }
0x1672   :  { %17090 = vmatprep.subr.bf16.mxu0 %v17089_v7 }
0x1673   :  { %v12255_v53 = vand.u32 4294901760, %v12254_v58 }
0x1675   :  { %17092 = vmatpush3.bf16.msra.mxu0 %v17089_v7 }
0x1676   :  { %17094 = vmatprep.subr.bf16.mxu0 %v19581_v43 }
0x1678   :  { %15990 = vmatmul.mubr.f32.vlgmr.msra.gmra.mrb[38].mxu0 %v11627_v16 }
0x1679   :  { %17096 = vmatpush3.bf16.msra.mxu0 %v19581_v43  ;;  %16000 = vmatprep.mubr.f32.mxu0 %v11618_v61 }
0x167a   :  { %17098 = vmatprep.subr.bf16.mxu0 %v19591_v33 }
0x167d   :  { %17100 = vmatpush3.bf16.msra.mxu0 %v19591_v33 }
0x167e   :  { %17102 = vmatprep.subr.bf16.mxu0 %v17101_v19 }
0x1680   :  { %16001 = vmatmul.mubr.f32.vlgmr.msra.gmra.mrb[38].mxu0 %v11628_v34  ;;  %v12281_v34 = vand.u32 4294901760, %v12280_v20 }
0x1681   :  { %17104 = vmatpush3.bf16.msra.mxu0 %v17101_v19  ;;  %16011 = vmatprep.mubr.f32.mxu0 %v11616_v32  ;;  %v12266_v19 = vsub.f32 %v13527_v8, %v12156_v49 }
0x1682   :  { %17106 = vmatprep.subr.bf16.mxu0 %v17105_v40  ;;  %v12282_v35 = vsub.f32 %v12280_v20, %v12281_v34 }
0x1683   :  { %v12267_v54 = vand.u32 4294901760, %v12266_v19 }
0x1685   :  { %17108 = vmatpush3.bf16.msra.mxu0 %v17105_v40  ;;  %v12273_v40 = vsub.f32 %v13528_v30, %v12159_v28 }
0x1686   :  { %17110 = vmatprep.subr.bf16.mxu0 %v19581_v43 }
0x1687   :  { %v12274_v44 = vand.u32 4294901760, %v12273_v40 }
0x1688   :  { %16012 = vmatmul.mubr.f32.vlgmr.msra.gmra.mrb[38].mxu0 %v11626_v10 }
0x1689   :  { %17112 = vmatpush3.bf16.msra.mxu0 %v19581_v43  ;;  %16022 = vmatprep.mubr.f32.mxu0 %v11616_v32  ;;  %v12153_v43 = vand.u32 4294901760, %v13526_v48  ;;  %v12275_v16 = vsub.f32 %v12273_v40, %v12274_v44  ;;  %v19681_v2 = vpack.c.bf16 %v12274_v44, %v12267_v54 }
0x168a   :  { %17114 = vmatprep.subr.bf16.mxu0 %v19591_v33 }
0x168b   :  { %v19644_v62 = vpack.c.bf16 %v12153_v43, %v12150_v50  ;;  %v12259_v59 = vsub.f32 %v13526_v48, %v12153_v43  ;;  %v12276_v15 = vand.u32 4294901760, %v12275_v16 }
0x168d   :  { %17116 = vmatpush3.bf16.msra.mxu0 %v19591_v33  ;;  %17122 = vmatprep.subr.bf16.mxu1 %v19644_v62  ;;  %v12165_v33 = vand.u32 4294901760, %v13530_v45  ;;  %v12260_v60 = vand.u32 4294901760, %v12259_v59 }
0x168e   :  { %17124 = vmatpush3.bf16.msra.mxu1 %v19644_v62 }
0x168f   :  { %17126 = vmatprep.subr.bf16.mxu1 %v19655_v52  ;;  %v19659_v18 = vpack.c.bf16 %v12165_v33, %v12162_v51  ;;  %v12261_v7 = vsub.f32 %v12259_v59, %v12260_v60  ;;  %v12287_v32 = vsub.f32 %v13530_v45, %v12165_v33 }
0x1690   :  { %16023 = vmatmul.mubr.f32.vlgmr.msra.gmra.mrb[38].mxu0 %v11626_v10  ;;  %v12268_v10 = vsub.f32 %v12266_v19, %v12267_v54 }
0x1691   :  { %v12262_v13 = vand.u32 4294901760, %v12261_v7  ;;  %v12288_v61 = vand.u32 4294901760, %v12287_v32 }
0x1692   :  { %17128 = vmatpush3.bf16.msra.mxu1 %v19655_v52  ;;  %v12269_v6 = vand.u32 4294901760, %v12268_v10 }
0x1693   :  { %17130 = vmatprep.subr.bf16.mxu1 %v19659_v18  ;;  %v19667_v41 = vpack.c.bf16 %v12262_v13, %v12255_v53  ;;  %v12289_v37 = vsub.f32 %v12287_v32, %v12288_v61  ;;  %v19683_v3 = vpack.c.bf16 %v12288_v61, %v12281_v34 }
0x1694   :  { %v17141_v9 = vpack.c.bf16 %v12276_v15, %v12269_v6 }
0x1696   :  { %17132 = vmatpush3.bf16.msra.mxu1 %v19659_v18 }
0x1697   :  { %17134 = vmatprep.subr.bf16.mxu1 %v19664_v29 }
0x1763   :  { %v16024_v31 = vpop.f32.mrb[38].mxu0 }
0x1764   :  { %v19610_v63 = vadd.f32 %v16024_v31, %v13520_v22  ;;  %v12065_v23 = vpop.f32.mrb[39].mxu0  ;;  %v12290_v31 = vand.u32 4294901760, %v12289_v37 }
0x1765   :  { %v19612_v57 = vadd.f32 %v13520_v22, %v12065_v23  ;;  %v12283_v22 = vand.u32 4294901760, %v12282_v35  ;;  %v20054_v35 = vld [vmem:[#allocation26_spill] sm:$0xff] }
0x1766   :  { %v12080_v12 = vsel %vm4529_vm3, %v19610_v63, 0.0  ;;  %v12086_v25 = vmul.f32 %v19610_v63, %v19610_v63 }
0x1767   :  { %12081 = vadd.xlane.f32.xlu0 %v12080_v12  ;;  %v12077_v27 = vsel %vm4529_vm3, %v19612_v57, 0.0  ;;  %v12085_v36 = vmul.f32 %v19612_v57, %v19612_v57  ;;  %v17145_v23 = vpack.c.bf16 %v12290_v31, %v12283_v22  ;;  %v19669_v12 = vpack.c.bf16 %v12245_v21, %v12238_v47 }
0x1768   :  { %12078 = vadd.xlane.f32.xlu1 %v12077_v27  ;;  %v12090_v11 = vsel %vm4529_vm3, %v12086_v25, 0.0  ;;  %v19671_v25 = vpack.c.bf16 %v12259_v59, %v12252_v17  ;;  %v19673_v27 = vpack.c.bf16 %v12273_v40, %v12266_v19 }
0x1769   :  { %v12087_v14 = vsel %vm4529_vm3, %v12085_v36, 0.0  ;;  %v19675_v36 = vpack.c.bf16 %v12287_v32, %v12280_v20 }
0x176b   :  { %12091 = vadd.xlane.f32.xlu0 %v12090_v11  ;;  %v19677_v11 = vpack.c.bf16 %v12246_v39, %v12239_v24 }
0x176c   :  { %12088 = vadd.xlane.f32.xlu1 %v12087_v14  ;;  %v19679_v14 = vpack.c.bf16 %v12260_v60, %v12253_v55 }
0x17f4   :  { %v12082_v38 = vpop.xlane.xlu0 %12081 }
0x17f5   :  { %v12084_v4 = vmul.f32 0.015625, %v12082_v38  ;;  %v12079_v1 = vpop.xlane.xlu1 %12078 }
0x17f6   :  { %v12083_v48 = vmul.f32 0.015625, %v12079_v1 }
0x17f7   :  { %v12096_v8 = vmul.f32 %v12084_v4, %v12084_v4  ;;  %v12102_v24 = vsub.f32 %v19610_v63, %v12084_v4 }
0x17f8   :  { %v12092_v50 = vpop.xlane.xlu0 %12091  ;;  %v12095_v49 = vmul.f32 %v12083_v48, %v12083_v48  ;;  %v12101_v46 = vsub.f32 %v19612_v57, %v12083_v48 }
0x17f9   :  { %v12094_v30 = vmul.f32 0.015625, %v12092_v50  ;;  %v12089_v43 = vpop.xlane.xlu1 %12088 }
0x17fa   :  { %v12093_v28 = vmul.f32 0.015625, %v12089_v43 }
0x17fb   :  { %v12098_v5 = vsub.f32 %v12094_v30, %v12096_v8 }
0x17fc   :  { %v12097_v45 = vsub.f32 %v12093_v28, %v12095_v49 }
0x17fd   :  { %v12100_v51 = vmax.f32 %v12098_v5, 0.0 }
0x17fe   :  { %v12099_v33 = vmax.f32 %v12097_v45, 0.0 }
0x17ff   :  { %v12104_v47 = vadd.f32 1e-05, %v12100_v51 }
0x1800   :  { %v12103_v21 = vadd.f32 1e-05, %v12099_v33 }
0x1801   :  { %17779 = vrsqrt.f32 %v12104_v47 }
0x1802   :  { %17781 = vrsqrt.f32 %v12103_v21 }
0x180b   :  { %v17780_v39 = vpop.eup %17779 }
0x180c   :  { %v17782_v17 = vpop.eup %17781  ;;  %v12108_v59 = vmul.f32 %v17780_v39, %v12102_v24 }
0x180d   :  { %v12107_v42 = vmul.f32 %v17782_v17, %v12101_v46 }
0x180e   :  { %v12114_v55 = vmul.f32 %v13521_v56, %v12108_v59 }
0x180f   :  { %v12113_v60 = vmul.f32 %v13521_v56, %v12107_v42 }
0x1810   :  { %v12120_v58 = vadd.f32 %v13522_v0, %v12114_v55 }
0x1811   :  { %v12119_v7 = vadd.f32 %v13522_v0, %v12113_v60 }
0x1812   :  { %v12122_v19 = vmax.f32 %v12120_v58, 0.0 }
0x1813   :  { %v12121_v63 = vmax.f32 %v12119_v7, 0.0 }
0x1814   :  { %v12141_v40 = vsel %vm4529_vm3, %v12122_v19, 0 }
0x1815   :  { %v12138_v57 = vsel %vm4529_vm3, %v12121_v63, 0  ;;  %v12226_v53 = vand.u32 4294901760, %v12141_v40 }
0x1816   :  { %v12216_v13 = vand.u32 4294901760, %v12138_v57 }
0x1817   :  { %v12227_v54 = vsub.f32 %v12141_v40, %v12226_v53 }
0x1818   :  { %v12217_v44 = vsub.f32 %v12138_v57, %v12216_v13 }
0x1819   :  { %v12228_v10 = vand.u32 4294901760, %v12227_v54 }
0x181a   :  { %v12218_v20 = vand.u32 4294901760, %v12217_v44 }
0x181b   :  { %v12229_v32 = vsub.f32 %v12227_v54, %v12228_v10 }
0x181c   :  { %v12219_v16 = vsub.f32 %v12217_v44, %v12218_v20 }
0x181d   :  { %v12230_v34 = vand.u32 4294901760, %v12229_v32 }
0x181e   :  { %v12220_v6 = vand.u32 4294901760, %v12219_v16 }
0x1820   :  { %16041 = vmatprep.mubr.f32.mxu1 %v12220_v6 }
0x1821   :  { %16042 = vmatmul.mubr.f32.vlgmr.msra.gmra.mrb[30].mxu1 %v12230_v34 }
0x1822   :  { %17136 = vmatpush3.bf16.msra.mxu1 %v19664_v29  ;;  %16060 = vmatprep.mubr.f32.mxu1 %v12216_v13  ;;  %v13531_v29 = vld [vmem:[%s19819_s17 + $0x2] ss:$0 sm:$0xff] }
0x1823   :  { %17138 = vmatprep.subr.bf16.mxu1 %v19667_v41 }
0x1826   :  { %17140 = vmatpush3.bf16.msra.mxu1 %v19667_v41 }
0x1827   :  { %17142 = vmatprep.subr.bf16.mxu1 %v17141_v9 }
0x182a   :  { %17144 = vmatpush3.bf16.msra.mxu1 %v17141_v9 }
0x182b   :  { %17146 = vmatprep.subr.bf16.mxu1 %v17145_v23 }
0x182e   :  { %17148 = vmatpush3.bf16.msra.mxu1 %v17145_v23 }
0x182f   :  { %17150 = vmatprep.subr.bf16.mxu1 %v19669_v12 }
0x1831   :  { %16061 = vmatmul.mubr.f32.vlgmr.msra.gmra.mrb[30].mxu1 %v12226_v53 }
0x1832   :  { %17152 = vmatpush3.bf16.msra.mxu1 %v19669_v12  ;;  %16079 = vmatprep.mubr.f32.mxu1 %v12217_v44 }
0x1833   :  { %17154 = vmatprep.subr.bf16.mxu1 %v19671_v25 }
0x1836   :  { %17156 = vmatpush3.bf16.msra.mxu1 %v19671_v25  ;;  %v12773_v25 = vld [vmem:[%s19822_s18] sm:$0xff] }
0x1837   :  { %17158 = vmatprep.subr.bf16.mxu1 %v19673_v27 }
0x183a   :  { %17160 = vmatpush3.bf16.msra.mxu1 %v19673_v27  ;;  %v12774_v27 = vld [vmem:[%s19822_s18 + $0x8] sm:$0xff] }
0x183b   :  { %17162 = vmatprep.subr.bf16.mxu1 %v19675_v36 }
0x183e   :  { %17164 = vmatpush3.bf16.msra.mxu1 %v19675_v36  ;;  %v12775_v36 = vld [vmem:[%s19822_s18 + $0x10] sm:$0xff] }
0x183f   :  { %17166 = vmatprep.subr.bf16.mxu1 %v19642_v26 }
0x1841   :  { %16080 = vmatmul.mubr.f32.vlgmr.msra.gmra.mrb[30].mxu1 %v12227_v54 }
0x1842   :  { %17168 = vmatpush3.bf16.msra.mxu1 %v19642_v26  ;;  %16098 = vmatprep.mubr.f32.mxu1 %v12218_v20 }
0x1843   :  { %17170 = vmatprep.subr.bf16.mxu1 %v19644_v62 }
0x1846   :  { %17172 = vmatpush3.bf16.msra.mxu1 %v19644_v62 }
0x1847   :  { %17174 = vmatprep.subr.bf16.mxu1 %v19655_v52 }
0x184a   :  { %17176 = vmatpush3.bf16.msra.mxu1 %v19655_v52 }
0x184b   :  { %17178 = vmatprep.subr.bf16.mxu1 %v19659_v18 }
0x184e   :  { %17180 = vmatpush3.bf16.msra.mxu1 %v19659_v18 }
0x184f   :  { %17182 = vmatprep.subr.bf16.mxu1 %v19677_v11 }
0x1851   :  { %16099 = vmatmul.mubr.f32.vlgmr.msra.gmra.mrb[30].mxu1 %v12228_v10 }
0x1852   :  { %17184 = vmatpush3.bf16.msra.mxu1 %v19677_v11  ;;  %16117 = vmatprep.mubr.f32.mxu1 %v12216_v13  ;;  %v12791_v11 = vand.u32 4294901760, %v12773_v25 }
0x1853   :  { %17186 = vmatprep.subr.bf16.mxu1 %v19679_v14 }
0x1854   :  { %v12881_v48 = vsub.f32 %v12773_v25, %v12791_v11 }
0x1856   :  { %17188 = vmatpush3.bf16.msra.mxu1 %v19679_v14  ;;  %v12794_v14 = vand.u32 4294901760, %v12774_v27  ;;  %v12882_v8 = vand.u32 4294901760, %v12881_v48 }
0x1857   :  { %17190 = vmatprep.subr.bf16.mxu1 %v19681_v2 }
0x1858   :  { %v19761_v4 = vpack.c.bf16 %v12794_v14, %v12791_v11  ;;  %v12888_v50 = vsub.f32 %v12774_v27, %v12794_v14  ;;  %v12883_v43 = vsub.f32 %v12881_v48, %v12882_v8 }
0x185a   :  { %17192 = vmatpush3.bf16.msra.mxu1 %v19681_v2  ;;  %v12776_v2 = vld [vmem:[%s19822_s18 + $0x18] sm:$0xff]  ;;  %17214 = vmatprep.subr.bf16.mxu0 %v19761_v4  ;;  %v12889_v30 = vand.u32 4294901760, %v12888_v50  ;;  %v12884_v45 = vand.u32 4294901760, %v12883_v43  ;;  %v17229_v59 = vpack.c.bf16 %v12888_v50, %v12881_v48 }
0x185b   :  { %17194 = vmatprep.subr.bf16.mxu1 %v19683_v3  ;;  %v12800_v38 = vand.u32 4294901760, %v12776_v2  ;;  %17216 = vmatpush3.bf16.msra.mxu0 %v19761_v4 }
0x185c   :  { %v12890_v49 = vsub.f32 %v12888_v50, %v12889_v30  ;;  %v19769_v0 = vpack.c.bf16 %v12889_v30, %v12882_v8  ;;  %v13534_v8 = vld [vmem:[%s19823_s19] ss:$0 sm:$0xff] }
0x185d   :  { %v12902_v5 = vsub.f32 %v12776_v2, %v12800_v38 }
0x185e   :  { %17196 = vmatpush3.bf16.msra.mxu1 %v19683_v3  ;;  %v12797_v3 = vand.u32 4294901760, %v12775_v36  ;;  %v12891_v51 = vand.u32 4294901760, %v12890_v49 }
0x185f   :  { %17198 = vmatprep.subr.bf16.mxu1 %v19642_v26  ;;  %v12903_v47 = vand.u32 4294901760, %v12902_v5 }
0x1860   :  { %v19763_v1 = vpack.c.bf16 %v12800_v38, %v12797_v3  ;;  %v12895_v28 = vsub.f32 %v12775_v36, %v12797_v3  ;;  %v17221_v21 = vpack.c.bf16 %v12891_v51, %v12884_v45 }
0x1861   :  { %16118 = vmatmul.mubr.f32.vlgmr.msra.gmra.mrb[30].mxu1 %v12226_v53  ;;  %v12904_v39 = vsub.f32 %v12902_v5, %v12903_v47 }
0x1862   :  { %17200 = vmatpush3.bf16.msra.mxu1 %v19642_v26  ;;  %16136 = vmatprep.mubr.f32.mxu1 %v12216_v13  ;;  %v12896_v33 = vand.u32 4294901760, %v12895_v28  ;;  %v17233_v42 = vpack.c.bf16 %v12902_v5, %v12895_v28 }
0x1863   :  { %17202 = vmatprep.subr.bf16.mxu1 %v19644_v62  ;;  %17218 = vmatprep.subr.bf16.mxu0 %v19763_v1  ;;  %v12905_v56 = vand.u32 4294901760, %v12904_v39 }
0x1864   :  { %17220 = vmatpush3.bf16.msra.mxu0 %v19763_v1  ;;  %v12897_v24 = vsub.f32 %v12895_v28, %v12896_v33  ;;  %v19771_v55 = vpack.c.bf16 %v12903_v47, %v12896_v33 }
0x1865   :  { %17222 = vmatprep.subr.bf16.mxu0 %v17221_v21 }
0x1866   :  { %17204 = vmatpush3.bf16.msra.mxu1 %v19644_v62  ;;  %v20055_v62 = vld [vmem:[#allocation45_spill] sm:$0xff]  ;;  %v12898_v46 = vand.u32 4294901760, %v12897_v24 }
0x1867   :  { %17206 = vmatprep.subr.bf16.mxu1 %v19655_v52 }
0x1868   :  { %v17225_v17 = vpack.c.bf16 %v12905_v56, %v12898_v46 }
0x186a   :  { %17208 = vmatpush3.bf16.msra.mxu1 %v19655_v52 }
0x186b   :  { %17210 = vmatprep.subr.bf16.mxu1 %v19659_v18 }
0x186e   :  { %17212 = vmatpush3.bf16.msra.mxu1 %v19659_v18 }
0x1871   :  { %16137 = vmatmul.mubr.f32.vlgmr.msra.gmra.mrb[30].mxu1 %v12226_v53 }
0x1944   :  { %v16138_v41 = vpop.f32.mrb[30].mxu1 }
0x1945   :  { %v17307_v26 = vadd.f32 %v16138_v41, %v13531_v29  ;;  %v12713_v61 = vpop.f32.mrb[31].mxu1 }
0x1946   :  { %v17308_v15 = vadd.f32 %v13531_v29, %v12713_v61 }
0x1947   :  { %v19734_v37 = vadd.f32 %v17307_v26, %v20054_v35  ;;  %v13532_v26 = vld [vmem:[%s19820_s9] ss:$0 sm:$0xff] }
0x1948   :  { %v19737_v9 = vadd.f32 %v17308_v15, %v20055_v62  ;;  %v13533_v62 = vld [vmem:[%s19821_s10] ss:$0 sm:$0xff] }
0x1949   :  { %v12730_v52 = vsel %vm2123_vm12, %v19734_v37, 0.0  ;;  %v12736_v18 = vmul.f32 %v19734_v37, %v19734_v37 }
0x194a   :  { %12731 = vadd.xlane.f32.xlu0 %v12730_v52  ;;  %v12727_v22 = vsel %vm2123_vm12, %v19737_v9, 0.0  ;;  %v12735_v31 = vmul.f32 %v19737_v9, %v19737_v9 }
0x194b   :  { %12728 = vadd.xlane.f32.xlu1 %v12727_v22  ;;  %v12740_v23 = vsel %vm2123_vm12, %v12736_v18, 0.0 }
0x194c   :  { %v12737_v12 = vsel %vm2123_vm12, %v12735_v31, 0.0 }
0x194e   :  { %12741 = vadd.xlane.f32.xlu0 %v12740_v23 }
0x194f   :  { %12738 = vadd.xlane.f32.xlu1 %v12737_v12 }
0x19d7   :  { %v12732_v60 = vpop.xlane.xlu0 %12731 }
0x19d8   :  { %v12734_v58 = vmul.f32 0.03125, %v12732_v60  ;;  %v12729_v7 = vpop.xlane.xlu1 %12728 }
0x19d9   :  { %v12733_v19 = vmul.f32 0.03125, %v12729_v7 }
0x19da   :  { %v12746_v40 = vmul.f32 %v12734_v58, %v12734_v58  ;;  %v12752_v34 = vsub.f32 %v19734_v37, %v12734_v58 }
0x19db   :  { %v12742_v63 = vpop.xlane.xlu0 %12741  ;;  %v12745_v13 = vmul.f32 %v12733_v19, %v12733_v19  ;;  %v12751_v41 = vsub.f32 %v19737_v9, %v12733_v19 }
0x19dc   :  { %v12744_v57 = vmul.f32 0.03125, %v12742_v63  ;;  %v12739_v53 = vpop.xlane.xlu1 %12738 }
0x19dd   :  { %v12743_v54 = vmul.f32 0.03125, %v12739_v53 }
0x19de   :  { %v12748_v44 = vsub.f32 %v12744_v57, %v12746_v40 }
0x19df   :  { %v12747_v10 = vsub.f32 %v12743_v54, %v12745_v13 }
0x19e0   :  { %v12750_v20 = vmax.f32 %v12748_v44, 0.0 }
0x19e1   :  { %v12749_v32 = vmax.f32 %v12747_v10, 0.0 }
0x19e2   :  { %v12754_v16 = vadd.f32 1e-05, %v12750_v20 }
0x19e3   :  { %v12753_v6 = vadd.f32 1e-05, %v12749_v32 }
0x19e4   :  { %17783 = vrsqrt.f32 %v12754_v16 }
0x19e5   :  { %17785 = vrsqrt.f32 %v12753_v6 }
0x19ee   :  { %v17784_v29 = vpop.eup %17783 }
0x19ef   :  { %v17786_v61 = vpop.eup %17785  ;;  %v12758_v15 = vmul.f32 %v17784_v29, %v12752_v34 }
0x19f0   :  { %v12757_v35 = vmul.f32 %v17786_v61, %v12751_v41 }
0x19f1   :  { %v12764_v52 = vmul.f32 %v13532_v26, %v12758_v15 }
0x19f2   :  { %v12763_v18 = vmul.f32 %v13532_v26, %v12757_v35 }
0x19f3   :  { %v12770_v22 = vadd.f32 %v13533_v62, %v12764_v52 }
0x19f4   :  { %v12769_v31 = vadd.f32 %v13533_v62, %v12763_v18 }
0x19f5   :  { %v12772_v23 = vmax.f32 %v12770_v22, 0.0 }
0x19f6   :  { %v12771_v37 = vmax.f32 %v12769_v31, 0.0 }
0x19f7   :  { %v12788_v12 = vsel %vm2123_vm12, %v12772_v23, 0 }
0x19f8   :  { %v12785_v9 = vsel %vm2123_vm12, %v12771_v37, 0  ;;  %v12869_v25 = vand.u32 4294901760, %v12788_v12 }
0x19f9   :  { %v12859_v27 = vand.u32 4294901760, %v12785_v9 }
0x19fa   :  { %v12870_v36 = vsub.f32 %v12788_v12, %v12869_v25 }
0x19fb   :  { %v12860_v11 = vsub.f32 %v12785_v9, %v12859_v27 }
0x19fc   :  { %v12871_v14 = vand.u32 4294901760, %v12870_v36 }
0x19fd   :  { %v12861_v2 = vand.u32 4294901760, %v12860_v11 }
0x19fe   :  { %v12872_v3 = vsub.f32 %v12870_v36, %v12871_v14 }
0x19ff   :  { %v12862_v38 = vsub.f32 %v12860_v11, %v12861_v2 }
0x1a00   :  { %v12873_v50 = vand.u32 4294901760, %v12872_v3 }
0x1a01   :  { %v12863_v48 = vand.u32 4294901760, %v12862_v38 }
0x1a03   :  { %16147 = vmatprep.mubr.f32.mxu0 %v12863_v48 }
0x1a04   :  { %16148 = vmatmul.mubr.f32.vlgmr.msra.gmra.mrb[40].mxu0 %v12873_v50 }
0x1a05   :  { %17224 = vmatpush3.bf16.msra.mxu0 %v17221_v21  ;;  %16158 = vmatprep.mubr.f32.mxu0 %v12859_v27 }
0x1a06   :  { %17226 = vmatprep.subr.bf16.mxu0 %v17225_v17 }
0x1a09   :  { %17228 = vmatpush3.bf16.msra.mxu0 %v17225_v17 }
0x1a0a   :  { %17230 = vmatprep.subr.bf16.mxu0 %v17229_v59 }
0x1a0c   :  { %16159 = vmatmul.mubr.f32.vlgmr.msra.gmra.mrb[40].mxu0 %v12869_v25 }
0x1a0d   :  { %17232 = vmatpush3.bf16.msra.mxu0 %v17229_v59  ;;  %16169 = vmatprep.mubr.f32.mxu0 %v12860_v11 }
0x1a0e   :  { %17234 = vmatprep.subr.bf16.mxu0 %v17233_v42 }
0x1a11   :  { %17236 = vmatpush3.bf16.msra.mxu0 %v17233_v42 }
0x1a12   :  { %17238 = vmatprep.subr.bf16.mxu0 %v19761_v4 }
0x1a14   :  { %16170 = vmatmul.mubr.f32.vlgmr.msra.gmra.mrb[40].mxu0 %v12870_v36 }
0x1a15   :  { %17240 = vmatpush3.bf16.msra.mxu0 %v19761_v4  ;;  %16180 = vmatprep.mubr.f32.mxu0 %v12861_v2 }
0x1a16   :  { %17242 = vmatprep.subr.bf16.mxu0 %v19763_v1 }
0x1a19   :  { %17244 = vmatpush3.bf16.msra.mxu0 %v19763_v1 }
0x1a1a   :  { %17246 = vmatprep.subr.bf16.mxu0 %v19769_v0 }
0x1a1c   :  { %16181 = vmatmul.mubr.f32.vlgmr.msra.gmra.mrb[40].mxu0 %v12871_v14 }
0x1a1d   :  { %17248 = vmatpush3.bf16.msra.mxu0 %v19769_v0  ;;  %16191 = vmatprep.mubr.f32.mxu0 %v12859_v27 }
0x1a1e   :  { %17250 = vmatprep.subr.bf16.mxu0 %v19771_v55 }
0x1a21   :  { %17252 = vmatpush3.bf16.msra.mxu0 %v19771_v55 }
0x1a22   :  { %17254 = vmatprep.subr.bf16.mxu0 %v19761_v4 }
0x1a24   :  { %16192 = vmatmul.mubr.f32.vlgmr.msra.gmra.mrb[40].mxu0 %v12869_v25 }
0x1a25   :  { %17256 = vmatpush3.bf16.msra.mxu0 %v19761_v4  ;;  %16202 = vmatprep.mubr.f32.mxu0 %v12859_v27 }
0x1a26   :  { %17258 = vmatprep.subr.bf16.mxu0 %v19763_v1 }
0x1a29   :  { %17260 = vmatpush3.bf16.msra.mxu0 %v19763_v1 }
0x1a2c   :  { %16203 = vmatmul.mubr.f32.vlgmr.msra.gmra.mrb[40].mxu0 %v12869_v25 }
0x1aff   :  { %v16204_v30 = vpop.f32.mrb[40].mxu0 }
0x1b00   :  { %v17309_v43 = vadd.f32 %v16204_v30, %v13534_v8  ;;  %v13308_v49 = vpop.f32.mrb[41].mxu0 }
0x1b01   :  { %v17310_v28 = vadd.f32 %v13534_v8, %v13308_v49 }
0x1b02   :  { %13320 = vst.msk [vmem:[%s19824_s20 + $0x8] sm:$0xff] %vm13318_vm4, %v17309_v43 }
0x1b03   :  { %13319 = vst.msk [vmem:[%s19824_s20] sm:$0xff] %vm13318_vm4, %v17310_v28 }

</bundles_post_ra>
